<compile_context>
chip_gen: v7x
topology: tpu7x:2x2x1
jax: 0.10.0
libtpu: 0.0.40
codegen_flags: <defaults>
</compile_context>

<pallas_src>
import functools

import jax
import jax.numpy as jnp
from jax.experimental import pallas as pl
from jax.experimental.pallas import tpu as pltpu


# ----------------------------------------------------------------------------
# helpers
# ----------------------------------------------------------------------------

def _round_up(n, m):
    return ((n + m - 1) // m) * m


def _m_tiling(M, max_tm=512):
    """Pick (Mp, tm, grid_steps) for the row dimension of a matmul.

    Rows are padded only to a multiple of 8, and we ask for >=2 grid steps
    whenever M >= 16 so both TensorCores get work on megacore parts.
    """
    Mp = _round_up(max(M, 8), 8)
    g = max(1, -(-Mp // max_tm))
    if Mp >= 16:
        g = max(g, 2)
    tm = _round_up(-(-Mp // g), 8)
    return g * tm, tm, g


# ----------------------------------------------------------------------------
# Pallas kernels
# ----------------------------------------------------------------------------

def _conv_pool_kernel(x00_ref, x01_ref, x10_ref, x11_ref, w_ref, b_ref, o_ref):
    """Fused Conv2d(3x3) + bias + ReLU + MaxPool2d(2,2) tile.

    Each x?? operand is the im2col matrix (tm, Kp) for one of the four conv
    output positions inside a 2x2 pool window.  The pool is a max over the
    four MXU results, so the conv-sized intermediate never leaves VMEM.
    """
    w = w_ref[...]
    d00 = jnp.dot(x00_ref[...], w, preferred_element_type=jnp.float32)
    d01 = jnp.dot(x01_ref[...], w, preferred_element_type=jnp.float32)
    d10 = jnp.dot(x10_ref[...], w, preferred_element_type=jnp.float32)
    d11 = jnp.dot(x11_ref[...], w, preferred_element_type=jnp.float32)
    m = jnp.maximum(jnp.maximum(d00, d01), jnp.maximum(d10, d11))
    o_ref[...] = jnp.maximum(m + b_ref[...], 0.0).astype(o_ref.dtype)


def _head_kernel(f_ref, w1_ref, b1_ref, w2_ref, b2_ref, wc_ref, bc_ref,
                 h_ref, o_ref):
    """Fused MLP head: (BN-folded fc1)+ReLU -> fc2+ReLU -> classifier."""
    h1 = jnp.dot(f_ref[...], w1_ref[...], preferred_element_type=jnp.float32)
    h1 = jnp.maximum(h1 + b1_ref[...], 0.0)
    h2 = jnp.dot(h1.astype(w2_ref.dtype), w2_ref[...],
                 preferred_element_type=jnp.float32)
    h2 = jnp.maximum(h2 + b2_ref[...], 0.0)
    h_ref[...] = h2.astype(h_ref.dtype)
    logits = jnp.dot(h2.astype(wc_ref.dtype), wc_ref[...],
                     preferred_element_type=jnp.float32) + bc_ref[...]
    o_ref[...] = logits.astype(o_ref.dtype)


# ----------------------------------------------------------------------------
# Pallas wrappers
# ----------------------------------------------------------------------------

def conv3x3_relu_pool_nhwc(x, w_pad, b, cout, max_tm=512):
    """One fused Conv2d(k=3,s=1,valid)+ReLU+MaxPool2d(2,2) stage.

    x: (B,H,W,C) bf16 NHWC.  w_pad: (Kp, cout) bf16 with rows ordered
    (kh, kw, ci).  b: (1, cout) f32.  Returns (B, PH, PW, cout) bf16.
    """
    B, H, W, C = x.shape
    OH, OW = H - 2, W - 2
    PH, PW = OH // 2, OW // 2          # MaxPool2d floor mode
    K = 9 * C
    Kp = w_pad.shape[0]
    M = B * PH * PW
    Mp, tm, g = _m_tiling(M, max_tm)

    def sub_im2col(di, dj):
        # rows (b, i, j) row-major; cols ordered (kh, kw, ci) to match w_pad.
        taps = [x[:, di + kh: di + kh + 2 * PH: 2,
                   dj + kw: dj + kw + 2 * PW: 2, :]
                for kh in range(3) for kw in range(3)]
        p = jnp.stack(taps, axis=3).reshape(M, K)
        if (Mp, Kp) != (M, K):
            p = jnp.pad(p, ((0, Mp - M), (0, Kp - K)))
        return p

    xs = [sub_im2col(0, 0), sub_im2col(0, 1),
          sub_im2col(1, 0), sub_im2col(1, 1)]

    out = pl.pallas_call(
        _conv_pool_kernel,
        out_shape=jax.ShapeDtypeStruct((Mp, cout), jnp.bfloat16),
        grid=(g,),
        in_specs=[pl.BlockSpec((tm, Kp), lambda i: (i, 0)) for _ in range(4)]
        + [pl.BlockSpec((Kp, cout), lambda i: (0, 0)),
           pl.BlockSpec((1, cout), lambda i: (0, 0))],
        out_specs=pl.BlockSpec((tm, cout), lambda i: (i, 0)),
        compiler_params=pltpu.CompilerParams(
            dimension_semantics=("parallel",)),
    )(*xs, w_pad, b)
    return out[:M].reshape(B, PH, PW, cout)


def pallas_head(f, q, max_tm=512):
    """Fused BN-folded fc1+ReLU -> fc2+ReLU -> classifier.  f: (B, 512)."""
    B, K = f.shape
    Mp, tm, g = _m_tiling(B, max_tm)
    fp = f.astype(jnp.bfloat16)
    if Mp != B:
        fp = jnp.pad(fp, ((0, Mp - B), (0, 0)))
    N1 = q["w1"].shape[1]
    N2 = q["w2"].shape[1]
    Nc = q["wc"].shape[1]
    hidden, logits = pl.pallas_call(
        _head_kernel,
        out_shape=(jax.ShapeDtypeStruct((Mp, N2), jnp.float32),
                   jax.ShapeDtypeStruct((Mp, Nc), jnp.float32)),
        grid=(g,),
        in_specs=[
            pl.BlockSpec((tm, K), lambda i: (i, 0)),
            pl.BlockSpec((K, N1), lambda i: (0, 0)),
            pl.BlockSpec((1, N1), lambda i: (0, 0)),
            pl.BlockSpec((N1, N2), lambda i: (0, 0)),
            pl.BlockSpec((1, N2), lambda i: (0, 0)),
            pl.BlockSpec((N2, Nc), lambda i: (0, 0)),
            pl.BlockSpec((1, Nc), lambda i: (0, 0)),
        ],
        out_specs=(pl.BlockSpec((tm, N2), lambda i: (i, 0)),
                   pl.BlockSpec((tm, Nc), lambda i: (i, 0))),
        compiler_params=pltpu.CompilerParams(
            dimension_semantics=("parallel",)),
    )(fp, q["w1"], q["b1"], q["w2"], q["b2"], q["wc"], q["bc"])
    return hidden[:B], logits[:B]


# ----------------------------------------------------------------------------
# Parameters (PyTorch layout) + one-time prep (layout, padding, bf16, BN fold)
# ----------------------------------------------------------------------------

def init_params(key, num_classes=10):
    ks = jax.random.split(key, 6)
    p = {}
    p["conv1_w"] = 0.05 * jax.random.normal(ks[0], (32, 3, 3, 3), jnp.float32)
    p["conv1_b"] = jnp.zeros((32,), jnp.float32)
    p["conv2_w"] = 0.05 * jax.random.normal(ks[1], (64, 32, 3, 3), jnp.float32)
    p["conv2_b"] = jnp.zeros((64,), jnp.float32)
    p["conv3_w"] = 0.05 * jax.random.normal(ks[2], (128, 64, 3, 3), jnp.float32)
    p["conv3_b"] = jnp.zeros((128,), jnp.float32)
    p["bn_gamma"] = jnp.ones((512,), jnp.float32)
    p["bn_beta"] = jnp.zeros((512,), jnp.float32)
    p["bn_mean"] = jnp.zeros((512,), jnp.float32)
    p["bn_var"] = jnp.ones((512,), jnp.float32)
    p["fc1_w"] = 0.05 * jax.random.normal(ks[3], (256, 512), jnp.float32)
    p["fc1_b"] = jnp.zeros((256,), jnp.float32)
    p["fc2_w"] = 0.05 * jax.random.normal(ks[4], (128, 256), jnp.float32)
    p["fc2_b"] = jnp.zeros((128,), jnp.float32)
    p["cls_w"] = 0.05 * jax.random.normal(ks[5], (num_classes, 128), jnp.float32)
    p["cls_b"] = jnp.zeros((num_classes,), jnp.float32)
    return p


def prepare_params(p, num_classes=10, eps=1e-5):
    """One-time prep: conv weight relayout, bf16 cast, BN->fc1 fold."""
    q = {}

    def prep_conv(w, b):
        cout, cin, kh, kw = w.shape
        K = cin * kh * kw
        Kp = _round_up(K, 32)
        # im2col columns are ordered (kh, kw, ci) -> reorder weight to match.
        wm = jnp.transpose(w, (2, 3, 1, 0)).reshape(K, cout)
        wm = jnp.pad(wm, ((0, Kp - K), (0, 0))).astype(jnp.bfloat16)
        bp = b.astype(jnp.float32).reshape(1, cout)
        return wm, bp

    q["c1_w"], q["c1_b"] = prep_conv(p["conv1_w"], p["conv1_b"])
    q["c2_w"], q["c2_b"] = prep_conv(p["conv2_w"], p["conv2_b"])
    q["c3_w"], q["c3_b"] = prep_conv(p["conv3_w"], p["conv3_b"])

    # Fold eval-mode BatchNorm1d(512) into fc1 (exact affine composition).
    scale = p["bn_gamma"] / jnp.sqrt(p["bn_var"] + eps)          # (512,)
    shift = p["bn_beta"] - p["bn_mean"] * scale                  # (512,)
    w1 = p["fc1_w"].T * scale[:, None]                           # (512, 256)
    b1 = p["fc1_b"] + shift @ p["fc1_w"].T                       # (256,)
    q["w1"] = w1.astype(jnp.bfloat16)
    q["b1"] = b1.astype(jnp.float32).reshape(1, -1)

    q["w2"] = p["fc2_w"].T.astype(jnp.bfloat16)                  # (256, 128)
    q["b2"] = p["fc2_b"].astype(jnp.float32).reshape(1, -1)

    Ncp = _round_up(num_classes, 128)
    wc = jnp.pad(p["cls_w"].T, ((0, 0), (0, Ncp - num_classes))) # (128, Ncp)
    q["wc"] = wc.astype(jnp.bfloat16)
    q["bc"] = jnp.pad(p["cls_b"], (0, Ncp - num_classes)).astype(
        jnp.float32).reshape(1, Ncp)
    return q


# ----------------------------------------------------------------------------
# ConvNet forward (Pallas path)
# ----------------------------------------------------------------------------

@functools.partial(jax.jit, static_argnames=("num_classes", "return_h"))
def convnet_forward(q, x, num_classes=10, return_h=False):
    """x: (B, 3, 32, 32) NCHW float32 (CIFAR).  Matches ConvNet.forward."""
    B = x.shape[0]
    h = jnp.transpose(x, (0, 2, 3, 1)).astype(jnp.bfloat16)   # NCHW->NHWC once
    h = conv3x3_relu_pool_nhwc(h, q["c1_w"], q["c1_b"], 32)   # (B,15,15,32)
    h = conv3x3_relu_pool_nhwc(h, q["c2_w"], q["c2_b"], 64)   # (B,6,6,64)
    h = conv3x3_relu_pool_nhwc(h, q["c3_w"], q["c3_b"], 128)  # (B,2,2,128)
    # Flatten in PyTorch (C, H, W) order so the BN/fc1 weights line up.
    feat = jnp.transpose(h, (0, 3, 1, 2)).reshape(B, 512)
    hidden, logits = pallas_head(feat, q)                     # (B,128), (B,Ncp)
    logits = logits[:, :num_classes]
    if return_h:
        return logits, hidden
    return logits


# ----------------------------------------------------------------------------
# Pure-JAX f32 reference (for numerical validation only)
# ----------------------------------------------------------------------------

@jax.jit
def _reference_forward(p, x, eps=1e-5):
    hi = jax.lax.Precision.HIGHEST

    def conv_relu(h, w, b):
        y = jax.lax.conv_general_dilated(
            h, w, window_strides=(1, 1), padding="VALID",
            dimension_numbers=("NCHW", "OIHW", "NCHW"), precision=hi)
        return jax.nn.relu(y + b[None, :, None, None])

    def pool(h):
        B, C, H, W = h.shape
        h = h[:, :, :H - H % 2, :W - W % 2]
        return jnp.max(h.reshape(B, C, H // 2, 2, W // 2, 2), axis=(3, 5))

    h = pool(conv_relu(x, p["conv1_w"], p["conv1_b"]))
    h = pool(conv_relu(h, p["conv2_w"], p["conv2_b"]))
    h = pool(conv_relu(h, p["conv3_w"], p["conv3_b"]))
    f = h.reshape(h.shape[0], -1)                               # (B, 512)
    f = (f - p["bn_mean"]) / jnp.sqrt(p["bn_var"] + eps) * p["bn_gamma"] \
        + p["bn_beta"]
    h1 = jax.nn.relu(jnp.dot(f, p["fc1_w"].T, precision=hi) + p["fc1_b"])
    h2 = jax.nn.relu(jnp.dot(h1, p["fc2_w"].T, precision=hi) + p["fc2_b"])
    logits = jnp.dot(h2, p["cls_w"].T, precision=hi) + p["cls_b"]
    return logits, h2


if __name__ == "__main__":
    key = jax.random.PRNGKey(0)
    pkey, xkey = jax.random.split(key)
    params = init_params(pkey, num_classes=10)
    prepped = prepare_params(params, num_classes=10)

    # CIFAR-shaped input: spatial must be 32x32 so Flatten yields 512 features.
    x = jax.random.normal(xkey, (4, 3, 32, 32), jnp.float32)

    logits, hidden = convnet_forward(prepped, x, num_classes=10, return_h=True)
    logits = jax.block_until_ready(logits)
    hidden = jax.block_until_ready(hidden)

    assert logits.shape == (4, 10), logits.shape
    assert hidden.shape == (4, 128), hidden.shape
    assert bool(jnp.all(jnp.isfinite(logits)))
    assert bool(jnp.all(jnp.isfinite(hidden)))

    # Numerical check vs pure-JAX f32 reference (bf16 MXU path => loose tol).
    ref_logits, ref_hidden = _reference_forward(params, x)
    ref_logits = jax.block_until_ready(ref_logits)
    assert float(jnp.max(jnp.abs(logits - ref_logits))) < 5e-2
    assert float(jnp.max(jnp.abs(hidden - ref_hidden))) < 5e-2

    print("KERNEL_OK")
</pallas_src>

<mosaic_0001>
module attributes {stable_mosaic.version = 11 : i64} {
  func.func @_conv_pool_kernel(%arg0: i32, %arg1: memref<456x32xbf16, #tpu.memory_space<vmem>>, %arg2: memref<456x32xbf16, #tpu.memory_space<vmem>>, %arg3: memref<456x32xbf16, #tpu.memory_space<vmem>>, %arg4: memref<456x32xbf16, #tpu.memory_space<vmem>>, %arg5: memref<32x32xbf16, #tpu.memory_space<vmem>>, %arg6: memref<1x32xf32, #tpu.memory_space<vmem>>, %arg7: memref<456x32xbf16, #tpu.memory_space<vmem>>) attributes {dimension_semantics = [#tpu.dimension_semantics<parallel>], iteration_bounds = array<i64: 2>, scalar_prefetch = 0 : i64, scratch_operands = 0 : i64, tpu.core_type = #tpu.core_type<tc>, window_params = [{transform_indices = @transform_0, window_bounds = array<i64: 456, 32>}, {transform_indices = @transform_1, window_bounds = array<i64: 456, 32>}, {transform_indices = @transform_2, window_bounds = array<i64: 456, 32>}, {transform_indices = @transform_3, window_bounds = array<i64: 456, 32>}, {pipeline_mode = #tpu.pipeline_mode<synchronous>, transform_indices = @transform_4, window_bounds = array<i64: 32, 32>}, {pipeline_mode = #tpu.pipeline_mode<synchronous>, transform_indices = @transform_5, window_bounds = array<i64: 1, 32>}, {transform_indices = @transform_6, window_bounds = array<i64: 456, 32>}]} {
    %c0 = arith.constant 0 : index
    %c0_0 = arith.constant 0 : index
    %0 = vector.load %arg5[%c0, %c0_0] : memref<32x32xbf16, #tpu.memory_space<vmem>>, vector<32x32xbf16>
    %c0_1 = arith.constant 0 : index
    %c0_2 = arith.constant 0 : index
    %1 = vector.load %arg1[%c0_1, %c0_2] : memref<456x32xbf16, #tpu.memory_space<vmem>>, vector<456x32xbf16>
    %cst = arith.constant dense<0.000000e+00> : vector<456x32xf32>
    %2 = tpu.matmul %1, %0, %cst {dimension_numbers = #tpu.dot_dimension_numbers<[1], [0], [0], [1], [0, 0, 1, 1], [], []>} : vector<456x32xbf16>, vector<32x32xbf16>, vector<456x32xf32> -> vector<456x32xf32>
    %c0_3 = arith.constant 0 : index
    %c0_4 = arith.constant 0 : index
    %3 = vector.load %arg2[%c0_3, %c0_4] : memref<456x32xbf16, #tpu.memory_space<vmem>>, vector<456x32xbf16>
    %cst_5 = arith.constant dense<0.000000e+00> : vector<456x32xf32>
    %4 = tpu.matmul %3, %0, %cst_5 {dimension_numbers = #tpu.dot_dimension_numbers<[1], [0], [0], [1], [0, 0, 1, 1], [], []>} : vector<456x32xbf16>, vector<32x32xbf16>, vector<456x32xf32> -> vector<456x32xf32>
    %c0_6 = arith.constant 0 : index
    %c0_7 = arith.constant 0 : index
    %5 = vector.load %arg3[%c0_6, %c0_7] : memref<456x32xbf16, #tpu.memory_space<vmem>>, vector<456x32xbf16>
    %cst_8 = arith.constant dense<0.000000e+00> : vector<456x32xf32>
    %6 = tpu.matmul %5, %0, %cst_8 {dimension_numbers = #tpu.dot_dimension_numbers<[1], [0], [0], [1], [0, 0, 1, 1], [], []>} : vector<456x32xbf16>, vector<32x32xbf16>, vector<456x32xf32> -> vector<456x32xf32>
    %c0_9 = arith.constant 0 : index
    %c0_10 = arith.constant 0 : index
    %7 = vector.load %arg4[%c0_9, %c0_10] : memref<456x32xbf16, #tpu.memory_space<vmem>>, vector<456x32xbf16>
    %cst_11 = arith.constant dense<0.000000e+00> : vector<456x32xf32>
    %8 = tpu.matmul %7, %0, %cst_11 {dimension_numbers = #tpu.dot_dimension_numbers<[1], [0], [0], [1], [0, 0, 1, 1], [], []>} : vector<456x32xbf16>, vector<32x32xbf16>, vector<456x32xf32> -> vector<456x32xf32>
    %9 = arith.maximumf %2, %4 : vector<456x32xf32>
    %10 = arith.maximumf %6, %8 : vector<456x32xf32>
    %11 = arith.maximumf %9, %10 : vector<456x32xf32>
    %c0_12 = arith.constant 0 : index
    %c0_13 = arith.constant 0 : index
    %12 = vector.load %arg6[%c0_12, %c0_13] : memref<1x32xf32, #tpu.memory_space<vmem>>, vector<1x32xf32>
    %13 = vector.broadcast %12 : vector<1x32xf32> to vector<456x32xf32>
    %14 = arith.addf %11, %13 : vector<456x32xf32>
    %cst_14 = arith.constant 0.000000e+00 : f32
    %15 = vector.broadcast %cst_14 : f32 to vector<456x32xf32>
    %16 = arith.maximumf %14, %15 : vector<456x32xf32>
    %17 = arith.truncf %16 : vector<456x32xf32> to vector<456x32xbf16>
    %c0_15 = arith.constant 0 : index
    %c0_16 = arith.constant 0 : index
    %18 = vector.load %arg7[%c0_15, %c0_16] : memref<456x32xbf16, #tpu.memory_space<vmem>>, vector<456x32xbf16>
    tpu.vector_store %arg7[%c0_15, %c0_16], %17 {strides = array<i32>} : memref<456x32xbf16, #tpu.memory_space<vmem>>, vector<456x32xbf16>,
    return
  }
  func.func @transform_0(%arg0: i32) -> (i32, i32) {
    %c0_i32 = arith.constant 0 : i32
    %c0_i32_0 = arith.constant 0 : i32
    return %arg0, %c0_i32 : i32, i32
  }
  func.func @transform_1(%arg0: i32) -> (i32, i32) {
    %c0_i32 = arith.constant 0 : i32
    %c0_i32_0 = arith.constant 0 : i32
    return %arg0, %c0_i32 : i32, i32
  }
  func.func @transform_2(%arg0: i32) -> (i32, i32) {
    %c0_i32 = arith.constant 0 : i32
    %c0_i32_0 = arith.constant 0 : i32
    return %arg0, %c0_i32 : i32, i32
  }
  func.func @transform_3(%arg0: i32) -> (i32, i32) {
    %c0_i32 = arith.constant 0 : i32
    %c0_i32_0 = arith.constant 0 : i32
    return %arg0, %c0_i32 : i32, i32
  }
  func.func @transform_4(%arg0: i32) -> (i32, i32) {
    %c0_i32 = arith.constant 0 : i32
    %c0_i32_0 = arith.constant 0 : i32
    %c0_i32_1 = arith.constant 0 : i32
    return %c0_i32, %c0_i32_0 : i32, i32
  }
  func.func @transform_5(%arg0: i32) -> (i32, i32) {
    %c0_i32 = arith.constant 0 : i32
    %c0_i32_0 = arith.constant 0 : i32
    %c0_i32_1 = arith.constant 0 : i32
    return %c0_i32, %c0_i32_0 : i32, i32
  }
  func.func @transform_6(%arg0: i32) -> (i32, i32) {
    %c0_i32 = arith.constant 0 : i32
    %c0_i32_0 = arith.constant 0 : i32
    return %arg0, %c0_i32 : i32, i32
  }
}

module attributes {stable_mosaic.version = 11 : i64} {
  func.func @_conv_pool_kernel(%arg0: i32, %arg1: memref<72x288xbf16, #tpu.memory_space<vmem>>, %arg2: memref<72x288xbf16, #tpu.memory_space<vmem>>, %arg3: memref<72x288xbf16, #tpu.memory_space<vmem>>, %arg4: memref<72x288xbf16, #tpu.memory_space<vmem>>, %arg5: memref<288x64xbf16, #tpu.memory_space<vmem>>, %arg6: memref<1x64xf32, #tpu.memory_space<vmem>>, %arg7: memref<72x64xbf16, #tpu.memory_space<vmem>>) attributes {dimension_semantics = [#tpu.dimension_semantics<parallel>], iteration_bounds = array<i64: 2>, scalar_prefetch = 0 : i64, scratch_operands = 0 : i64, tpu.core_type = #tpu.core_type<tc>, window_params = [{transform_indices = @transform_0, window_bounds = array<i64: 72, 288>}, {transform_indices = @transform_1, window_bounds = array<i64: 72, 288>}, {transform_indices = @transform_2, window_bounds = array<i64: 72, 288>}, {transform_indices = @transform_3, window_bounds = array<i64: 72, 288>}, {pipeline_mode = #tpu.pipeline_mode<synchronous>, transform_indices = @transform_4, window_bounds = array<i64: 288, 64>}, {pipeline_mode = #tpu.pipeline_mode<synchronous>, transform_indices = @transform_5, window_bounds = array<i64: 1, 64>}, {transform_indices = @transform_6, window_bounds = array<i64: 72, 64>}]} {
    %c0 = arith.constant 0 : index
    %c0_0 = arith.constant 0 : index
    %0 = vector.load %arg5[%c0, %c0_0] : memref<288x64xbf16, #tpu.memory_space<vmem>>, vector<288x64xbf16>
    %c0_1 = arith.constant 0 : index
    %c0_2 = arith.constant 0 : index
    %1 = vector.load %arg1[%c0_1, %c0_2] : memref<72x288xbf16, #tpu.memory_space<vmem>>, vector<72x288xbf16>
    %cst = arith.constant dense<0.000000e+00> : vector<72x64xf32>
    %2 = tpu.matmul %1, %0, %cst {dimension_numbers = #tpu.dot_dimension_numbers<[1], [0], [0], [1], [0, 0, 1, 1], [], []>} : vector<72x288xbf16>, vector<288x64xbf16>, vector<72x64xf32> -> vector<72x64xf32>
    %c0_3 = arith.constant 0 : index
    %c0_4 = arith.constant 0 : index
    %3 = vector.load %arg2[%c0_3, %c0_4] : memref<72x288xbf16, #tpu.memory_space<vmem>>, vector<72x288xbf16>
    %cst_5 = arith.constant dense<0.000000e+00> : vector<72x64xf32>
    %4 = tpu.matmul %3, %0, %cst_5 {dimension_numbers = #tpu.dot_dimension_numbers<[1], [0], [0], [1], [0, 0, 1, 1], [], []>} : vector<72x288xbf16>, vector<288x64xbf16>, vector<72x64xf32> -> vector<72x64xf32>
    %c0_6 = arith.constant 0 : index
    %c0_7 = arith.constant 0 : index
    %5 = vector.load %arg3[%c0_6, %c0_7] : memref<72x288xbf16, #tpu.memory_space<vmem>>, vector<72x288xbf16>
    %cst_8 = arith.constant dense<0.000000e+00> : vector<72x64xf32>
    %6 = tpu.matmul %5, %0, %cst_8 {dimension_numbers = #tpu.dot_dimension_numbers<[1], [0], [0], [1], [0, 0, 1, 1], [], []>} : vector<72x288xbf16>, vector<288x64xbf16>, vector<72x64xf32> -> vector<72x64xf32>
    %c0_9 = arith.constant 0 : index
    %c0_10 = arith.constant 0 : index
    %7 = vector.load %arg4[%c0_9, %c0_10] : memref<72x288xbf16, #tpu.memory_space<vmem>>, vector<72x288xbf16>
    %cst_11 = arith.constant dense<0.000000e+00> : vector<72x64xf32>
    %8 = tpu.matmul %7, %0, %cst_11 {dimension_numbers = #tpu.dot_dimension_numbers<[1], [0], [0], [1], [0, 0, 1, 1], [], []>} : vector<72x288xbf16>, vector<288x64xbf16>, vector<72x64xf32> -> vector<72x64xf32>
    %9 = arith.maximumf %2, %4 : vector<72x64xf32>
    %10 = arith.maximumf %6, %8 : vector<72x64xf32>
    %11 = arith.maximumf %9, %10 : vector<72x64xf32>
    %c0_12 = arith.constant 0 : index
    %c0_13 = arith.constant 0 : index
    %12 = vector.load %arg6[%c0_12, %c0_13] : memref<1x64xf32, #tpu.memory_space<vmem>>, vector<1x64xf32>
    %13 = vector.broadcast %12 : vector<1x64xf32> to vector<72x64xf32>
    %14 = arith.addf %11, %13 : vector<72x64xf32>
    %cst_14 = arith.constant 0.000000e+00 : f32
    %15 = vector.broadcast %cst_14 : f32 to vector<72x64xf32>
    %16 = arith.maximumf %14, %15 : vector<72x64xf32>
    %17 = arith.truncf %16 : vector<72x64xf32> to vector<72x64xbf16>
    %c0_15 = arith.constant 0 : index
    %c0_16 = arith.constant 0 : index
    %18 = vector.load %arg7[%c0_15, %c0_16] : memref<72x64xbf16, #tpu.memory_space<vmem>>, vector<72x64xbf16>
    tpu.vector_store %arg7[%c0_15, %c0_16], %17 {strides = array<i32>} : memref<72x64xbf16, #tpu.memory_space<vmem>>, vector<72x64xbf16>,
    return
  }
  func.func @transform_0(%arg0: i32) -> (i32, i32) {
    %c0_i32 = arith.constant 0 : i32
    %c0_i32_0 = arith.constant 0 : i32
    return %arg0, %c0_i32 : i32, i32
  }
  func.func @transform_1(%arg0: i32) -> (i32, i32) {
    %c0_i32 = arith.constant 0 : i32
    %c0_i32_0 = arith.constant 0 : i32
    return %arg0, %c0_i32 : i32, i32
  }
  func.func @transform_2(%arg0: i32) -> (i32, i32) {
    %c0_i32 = arith.constant 0 : i32
    %c0_i32_0 = arith.constant 0 : i32
    return %arg0, %c0_i32 : i32, i32
  }
  func.func @transform_3(%arg0: i32) -> (i32, i32) {
    %c0_i32 = arith.constant 0 : i32
    %c0_i32_0 = arith.constant 0 : i32
    return %arg0, %c0_i32 : i32, i32
  }
  func.func @transform_4(%arg0: i32) -> (i32, i32) {
    %c0_i32 = arith.constant 0 : i32
    %c0_i32_0 = arith.constant 0 : i32
    %c0_i32_1 = arith.constant 0 : i32
    return %c0_i32, %c0_i32_0 : i32, i32
  }
  func.func @transform_5(%arg0: i32) -> (i32, i32) {
    %c0_i32 = arith.constant 0 : i32
    %c0_i32_0 = arith.constant 0 : i32
    %c0_i32_1 = arith.constant 0 : i32
    return %c0_i32, %c0_i32_0 : i32, i32
  }
  func.func @transform_6(%arg0: i32) -> (i32, i32) {
    %c0_i32 = arith.constant 0 : i32
    %c0_i32_0 = arith.constant 0 : i32
    return %arg0, %c0_i32 : i32, i32
  }
}

module attributes {stable_mosaic.version = 11 : i64} {
  func.func @_conv_pool_kernel(%arg0: i32, %arg1: memref<8x576xbf16, #tpu.memory_space<vmem>>, %arg2: memref<8x576xbf16, #tpu.memory_space<vmem>>, %arg3: memref<8x576xbf16, #tpu.memory_space<vmem>>, %arg4: memref<8x576xbf16, #tpu.memory_space<vmem>>, %arg5: memref<576x128xbf16, #tpu.memory_space<vmem>>, %arg6: memref<1x128xf32, #tpu.memory_space<vmem>>, %arg7: memref<8x128xbf16, #tpu.memory_space<vmem>>) attributes {dimension_semantics = [#tpu.dimension_semantics<parallel>], iteration_bounds = array<i64: 2>, scalar_prefetch = 0 : i64, scratch_operands = 0 : i64, tpu.core_type = #tpu.core_type<tc>, window_params = [{transform_indices = @transform_0, window_bounds = array<i64: 8, 576>}, {transform_indices = @transform_1, window_bounds = array<i64: 8, 576>}, {transform_indices = @transform_2, window_bounds = array<i64: 8, 576>}, {transform_indices = @transform_3, window_bounds = array<i64: 8, 576>}, {pipeline_mode = #tpu.pipeline_mode<synchronous>, transform_indices = @transform_4, window_bounds = array<i64: 576, 128>}, {pipeline_mode = #tpu.pipeline_mode<synchronous>, transform_indices = @transform_5, window_bounds = array<i64: 1, 128>}, {transform_indices = @transform_6, window_bounds = array<i64: 8, 128>}]} {
    %c0 = arith.constant 0 : index
    %c0_0 = arith.constant 0 : index
    %0 = vector.load %arg5[%c0, %c0_0] : memref<576x128xbf16, #tpu.memory_space<vmem>>, vector<576x128xbf16>
    %c0_1 = arith.constant 0 : index
    %c0_2 = arith.constant 0 : index
    %1 = vector.load %arg1[%c0_1, %c0_2] : memref<8x576xbf16, #tpu.memory_space<vmem>>, vector<8x576xbf16>
    %cst = arith.constant dense<0.000000e+00> : vector<8x128xf32>
    %2 = tpu.matmul %1, %0, %cst {dimension_numbers = #tpu.dot_dimension_numbers<[1], [0], [0], [1], [0, 0, 1, 1], [], []>} : vector<8x576xbf16>, vector<576x128xbf16>, vector<8x128xf32> -> vector<8x128xf32>
    %c0_3 = arith.constant 0 : index
    %c0_4 = arith.constant 0 : index
    %3 = vector.load %arg2[%c0_3, %c0_4] : memref<8x576xbf16, #tpu.memory_space<vmem>>, vector<8x576xbf16>
    %cst_5 = arith.constant dense<0.000000e+00> : vector<8x128xf32>
    %4 = tpu.matmul %3, %0, %cst_5 {dimension_numbers = #tpu.dot_dimension_numbers<[1], [0], [0], [1], [0, 0, 1, 1], [], []>} : vector<8x576xbf16>, vector<576x128xbf16>, vector<8x128xf32> -> vector<8x128xf32>
    %c0_6 = arith.constant 0 : index
    %c0_7 = arith.constant 0 : index
    %5 = vector.load %arg3[%c0_6, %c0_7] : memref<8x576xbf16, #tpu.memory_space<vmem>>, vector<8x576xbf16>
    %cst_8 = arith.constant dense<0.000000e+00> : vector<8x128xf32>
    %6 = tpu.matmul %5, %0, %cst_8 {dimension_numbers = #tpu.dot_dimension_numbers<[1], [0], [0], [1], [0, 0, 1, 1], [], []>} : vector<8x576xbf16>, vector<576x128xbf16>, vector<8x128xf32> -> vector<8x128xf32>
    %c0_9 = arith.constant 0 : index
    %c0_10 = arith.constant 0 : index
    %7 = vector.load %arg4[%c0_9, %c0_10] : memref<8x576xbf16, #tpu.memory_space<vmem>>, vector<8x576xbf16>
    %cst_11 = arith.constant dense<0.000000e+00> : vector<8x128xf32>
    %8 = tpu.matmul %7, %0, %cst_11 {dimension_numbers = #tpu.dot_dimension_numbers<[1], [0], [0], [1], [0, 0, 1, 1], [], []>} : vector<8x576xbf16>, vector<576x128xbf16>, vector<8x128xf32> -> vector<8x128xf32>
    %9 = arith.maximumf %2, %4 : vector<8x128xf32>
    %10 = arith.maximumf %6, %8 : vector<8x128xf32>
    %11 = arith.maximumf %9, %10 : vector<8x128xf32>
    %c0_12 = arith.constant 0 : index
    %c0_13 = arith.constant 0 : index
    %12 = vector.load %arg6[%c0_12, %c0_13] : memref<1x128xf32, #tpu.memory_space<vmem>>, vector<1x128xf32>
    %13 = vector.broadcast %12 : vector<1x128xf32> to vector<8x128xf32>
    %14 = arith.addf %11, %13 : vector<8x128xf32>
    %cst_14 = arith.constant 0.000000e+00 : f32
    %15 = vector.broadcast %cst_14 : f32 to vector<8x128xf32>
    %16 = arith.maximumf %14, %15 : vector<8x128xf32>
    %17 = arith.truncf %16 : vector<8x128xf32> to vector<8x128xbf16>
    %c0_15 = arith.constant 0 : index
    %c0_16 = arith.constant 0 : index
    %18 = vector.load %arg7[%c0_15, %c0_16] : memref<8x128xbf16, #tpu.memory_space<vmem>>, vector<8x128xbf16>
    tpu.vector_store %arg7[%c0_15, %c0_16], %17 {strides = array<i32>} : memref<8x128xbf16, #tpu.memory_space<vmem>>, vector<8x128xbf16>,
    return
  }
  func.func @transform_0(%arg0: i32) -> (i32, i32) {
    %c0_i32 = arith.constant 0 : i32
    %c0_i32_0 = arith.constant 0 : i32
    return %arg0, %c0_i32 : i32, i32
  }
  func.func @transform_1(%arg0: i32) -> (i32, i32) {
    %c0_i32 = arith.constant 0 : i32
    %c0_i32_0 = arith.constant 0 : i32
    return %arg0, %c0_i32 : i32, i32
  }
  func.func @transform_2(%arg0: i32) -> (i32, i32) {
    %c0_i32 = arith.constant 0 : i32
    %c0_i32_0 = arith.constant 0 : i32
    return %arg0, %c0_i32 : i32, i32
  }
  func.func @transform_3(%arg0: i32) -> (i32, i32) {
    %c0_i32 = arith.constant 0 : i32
    %c0_i32_0 = arith.constant 0 : i32
    return %arg0, %c0_i32 : i32, i32
  }
  func.func @transform_4(%arg0: i32) -> (i32, i32) {
    %c0_i32 = arith.constant 0 : i32
    %c0_i32_0 = arith.constant 0 : i32
    %c0_i32_1 = arith.constant 0 : i32
    return %c0_i32, %c0_i32_0 : i32, i32
  }
  func.func @transform_5(%arg0: i32) -> (i32, i32) {
    %c0_i32 = arith.constant 0 : i32
    %c0_i32_0 = arith.constant 0 : i32
    %c0_i32_1 = arith.constant 0 : i32
    return %c0_i32, %c0_i32_0 : i32, i32
  }
  func.func @transform_6(%arg0: i32) -> (i32, i32) {
    %c0_i32 = arith.constant 0 : i32
    %c0_i32_0 = arith.constant 0 : i32
    return %arg0, %c0_i32 : i32, i32
  }
}

module attributes {stable_mosaic.version = 11 : i64} {
  func.func @_head_kernel(%arg0: i32, %arg1: memref<8x512xbf16, #tpu.memory_space<vmem>>, %arg2: memref<512x256xbf16, #tpu.memory_space<vmem>>, %arg3: memref<1x256xf32, #tpu.memory_space<vmem>>, %arg4: memref<256x128xbf16, #tpu.memory_space<vmem>>, %arg5: memref<1x128xf32, #tpu.memory_space<vmem>>, %arg6: memref<128x128xbf16, #tpu.memory_space<vmem>>, %arg7: memref<1x128xf32, #tpu.memory_space<vmem>>, %arg8: memref<8x128xf32, #tpu.memory_space<vmem>>, %arg9: memref<8x128xf32, #tpu.memory_space<vmem>>) attributes {dimension_semantics = [#tpu.dimension_semantics<parallel>], iteration_bounds = array<i64: 1>, scalar_prefetch = 0 : i64, scratch_operands = 0 : i64, tpu.core_type = #tpu.core_type<tc>, window_params = [{transform_indices = @transform_0, window_bounds = array<i64: 8, 512>}, {pipeline_mode = #tpu.pipeline_mode<synchronous>, transform_indices = @transform_1, window_bounds = array<i64: 512, 256>}, {pipeline_mode = #tpu.pipeline_mode<synchronous>, transform_indices = @transform_2, window_bounds = array<i64: 1, 256>}, {pipeline_mode = #tpu.pipeline_mode<synchronous>, transform_indices = @transform_3, window_bounds = array<i64: 256, 128>}, {pipeline_mode = #tpu.pipeline_mode<synchronous>, transform_indices = @transform_4, window_bounds = array<i64: 1, 128>}, {pipeline_mode = #tpu.pipeline_mode<synchronous>, transform_indices = @transform_5, window_bounds = array<i64: 128, 128>}, {pipeline_mode = #tpu.pipeline_mode<synchronous>, transform_indices = @transform_6, window_bounds = array<i64: 1, 128>}, {transform_indices = @transform_7, window_bounds = array<i64: 8, 128>}, {transform_indices = @transform_8, window_bounds = array<i64: 8, 128>}]} {
    %c0 = arith.constant 0 : index
    %c0_0 = arith.constant 0 : index
    %0 = vector.load %arg1[%c0, %c0_0] : memref<8x512xbf16, #tpu.memory_space<vmem>>, vector<8x512xbf16>
    %c0_1 = arith.constant 0 : index
    %c0_2 = arith.constant 0 : index
    %1 = vector.load %arg2[%c0_1, %c0_2] : memref<512x256xbf16, #tpu.memory_space<vmem>>, vector<512x256xbf16>
    %cst = arith.constant dense<0.000000e+00> : vector<8x256xf32>
    %2 = tpu.matmul %0, %1, %cst {dimension_numbers = #tpu.dot_dimension_numbers<[1], [0], [0], [1], [0, 0, 1, 1], [], []>} : vector<8x512xbf16>, vector<512x256xbf16>, vector<8x256xf32> -> vector<8x256xf32>
    %c0_3 = arith.constant 0 : index
    %c0_4 = arith.constant 0 : index
    %3 = vector.load %arg3[%c0_3, %c0_4] : memref<1x256xf32, #tpu.memory_space<vmem>>, vector<1x256xf32>
    %4 = vector.broadcast %3 : vector<1x256xf32> to vector<8x256xf32>
    %5 = arith.addf %2, %4 : vector<8x256xf32>
    %cst_5 = arith.constant 0.000000e+00 : f32
    %6 = vector.broadcast %cst_5 : f32 to vector<8x256xf32>
    %7 = arith.maximumf %5, %6 : vector<8x256xf32>
    %8 = arith.truncf %7 : vector<8x256xf32> to vector<8x256xbf16>
    %c0_6 = arith.constant 0 : index
    %c0_7 = arith.constant 0 : index
    %9 = vector.load %arg4[%c0_6, %c0_7] : memref<256x128xbf16, #tpu.memory_space<vmem>>, vector<256x128xbf16>
    %cst_8 = arith.constant dense<0.000000e+00> : vector<8x128xf32>
    %10 = tpu.matmul %8, %9, %cst_8 {dimension_numbers = #tpu.dot_dimension_numbers<[1], [0], [0], [1], [0, 0, 1, 1], [], []>} : vector<8x256xbf16>, vector<256x128xbf16>, vector<8x128xf32> -> vector<8x128xf32>
    %c0_9 = arith.constant 0 : index
    %c0_10 = arith.constant 0 : index
    %11 = vector.load %arg5[%c0_9, %c0_10] : memref<1x128xf32, #tpu.memory_space<vmem>>, vector<1x128xf32>
    %12 = vector.broadcast %11 : vector<1x128xf32> to vector<8x128xf32>
    %13 = arith.addf %10, %12 : vector<8x128xf32>
    %cst_11 = arith.constant 0.000000e+00 : f32
    %14 = vector.broadcast %cst_11 : f32 to vector<8x128xf32>
    %15 = arith.maximumf %13, %14 : vector<8x128xf32>
    %c0_12 = arith.constant 0 : index
    %c0_13 = arith.constant 0 : index
    %16 = vector.load %arg8[%c0_12, %c0_13] : memref<8x128xf32, #tpu.memory_space<vmem>>, vector<8x128xf32>
    tpu.vector_store %arg8[%c0_12, %c0_13], %15 {strides = array<i32>} : memref<8x128xf32, #tpu.memory_space<vmem>>, vector<8x128xf32>,
    %17 = arith.truncf %15 : vector<8x128xf32> to vector<8x128xbf16>
    %c0_14 = arith.constant 0 : index
    %c0_15 = arith.constant 0 : index
    %18 = vector.load %arg6[%c0_14, %c0_15] : memref<128x128xbf16, #tpu.memory_space<vmem>>, vector<128x128xbf16>
    %cst_16 = arith.constant dense<0.000000e+00> : vector<8x128xf32>
    %19 = tpu.matmul %17, %18, %cst_16 {dimension_numbers = #tpu.dot_dimension_numbers<[1], [0], [0], [1], [0, 0, 1, 1], [], []>} : vector<8x128xbf16>, vector<128x128xbf16>, vector<8x128xf32> -> vector<8x128xf32>
    %c0_17 = arith.constant 0 : index
    %c0_18 = arith.constant 0 : index
    %20 = vector.load %arg7[%c0_17, %c0_18] : memref<1x128xf32, #tpu.memory_space<vmem>>, vector<1x128xf32>
    %21 = vector.broadcast %20 : vector<1x128xf32> to vector<8x128xf32>
    %22 = arith.addf %19, %21 : vector<8x128xf32>
    %c0_19 = arith.constant 0 : index
    %c0_20 = arith.constant 0 : index
    %23 = vector.load %arg9[%c0_19, %c0_20] : memref<8x128xf32, #tpu.memory_space<vmem>>, vector<8x128xf32>
    tpu.vector_store %arg9[%c0_19, %c0_20], %22 {strides = array<i32>} : memref<8x128xf32, #tpu.memory_space<vmem>>, vector<8x128xf32>,
    return
  }
  func.func @transform_0(%arg0: i32) -> (i32, i32) {
    %c0_i32 = arith.constant 0 : i32
    %c0_i32_0 = arith.constant 0 : i32
    return %arg0, %c0_i32 : i32, i32
  }
  func.func @transform_1(%arg0: i32) -> (i32, i32) {
    %c0_i32 = arith.constant 0 : i32
    %c0_i32_0 = arith.constant 0 : i32
    %c0_i32_1 = arith.constant 0 : i32
    return %c0_i32, %c0_i32_0 : i32, i32
  }
  func.func @transform_2(%arg0: i32) -> (i32, i32) {
    %c0_i32 = arith.constant 0 : i32
    %c0_i32_0 = arith.constant 0 : i32
    %c0_i32_1 = arith.constant 0 : i32
    return %c0_i32, %c0_i32_0 : i32, i32
  }
  func.func @transform_3(%arg0: i32) -> (i32, i32) {
    %c0_i32 = arith.constant 0 : i32
    %c0_i32_0 = arith.constant 0 : i32
    %c0_i32_1 = arith.constant 0 : i32
    return %c0_i32, %c0_i32_0 : i32, i32
  }
  func.func @transform_4(%arg0: i32) -> (i32, i32) {
    %c0_i32 = arith.constant 0 : i32
    %c0_i32_0 = arith.constant 0 : i32
    %c0_i32_1 = arith.constant 0 : i32
    return %c0_i32, %c0_i32_0 : i32, i32
  }
  func.func @transform_5(%arg0: i32) -> (i32, i32) {
    %c0_i32 = arith.constant 0 : i32
    %c0_i32_0 = arith.constant 0 : i32
    %c0_i32_1 = arith.constant 0 : i32
    return %c0_i32, %c0_i32_0 : i32, i32
  }
  func.func @transform_6(%arg0: i32) -> (i32, i32) {
    %c0_i32 = arith.constant 0 : i32
    %c0_i32_0 = arith.constant 0 : i32
    %c0_i32_1 = arith.constant 0 : i32
    return %c0_i32, %c0_i32_0 : i32, i32
  }
  func.func @transform_7(%arg0: i32) -> (i32, i32) {
    %c0_i32 = arith.constant 0 : i32
    %c0_i32_0 = arith.constant 0 : i32
    return %arg0, %c0_i32 : i32, i32
  }
  func.func @transform_8(%arg0: i32) -> (i32, i32) {
    %c0_i32 = arith.constant 0 : i32
    %c0_i32_0 = arith.constant 0 : i32
    return %arg0, %c0_i32 : i32, i32
  }
}

</mosaic_0001>

<bundles_post_ra>
// kernel: convnet_forward.4
= control target key start
LH: loop header
LB: loop body
LE: loop exit
PB: predicated region body
PF: predicated region fallthrough
CT: control target
= control target key end

     0   :  { %s4353_s21 = smov 0   ;;  %s5559_s0 = inlined_call_operand.vmem [shape: bf16[912,32], index: 0, kind: input, shape index: {}]   ;;  %s5560_s1 = inlined_call_operand.vmem [shape: bf16[912,32], index: 1, kind: input, shape index: {}]   ;;  %s5561_s2 = inlined_call_operand.vmem [shape: bf16[912,32], index: 2, kind: input, shape index: {}]   ;;  %s5562_s3 = inlined_call_operand.vmem [shape: bf16[912,32], index: 3, kind: input, shape index: {}]   ;;  %s5563_s4 = inlined_call_operand.vmem [shape: bf16[32,32], index: 4, kind: input, shape index: {}]   ;;  %s5564_s5 = inlined_call_operand.vmem [shape: f32[1,32], index: 5, kind: input, shape index: {}]   ;;  %s5565_s6 = inlined_call_operand.vmem [shape: bf16[912,32], index: 6, kind: output, shape index: {}]  }
   0x1 LB: > { %s3214_s22 = sadd.s32 4294967295, %s4314_s21   ;;  %p3218_p0 = scmp.ge.s32.totalorder %s4314_s21, 1  ;;  %s4314_s21 = sphi %s4353_s21, %s16_s21  }
   0x2   : > { %p246_p1 = scmp.lt.s32.totalorder %s4314_s21, 3 }
   0x4   : > { %p247_p2 = pnand %p3218_p0, %p246_p1 }
   0x6   : > { %250 = sbr.rel (%p247_p2) target bundleno = 701 (0x2bd), region = 44 }
   0xd   : > { %v4189_v0 = vld [vmem:[%s5563_s4] sm:$0xff]   ;;  %v5566_v1 = vmov 0.0   ;;  %v4190_v2 = vld [vmem:[%s5563_s4 + $0x8] sm:$0xff]   ;;  %s291_s27 = smul.u32 57, %s3214_s22  ;;  %vm4317_vm0 = vmmov 0   ;;  %vm538_vm1 = vcmask 261120  }
   0xe   : > { %3699 = vmatprep.subr.bf16.mxu0 %v5566_v1  ;;  %3819 = vmatprep.subr.bf16.mxu1 %v5566_v1  ;;  %vm3064_vm2 = vcmask 257024  }
   0xf   : > { %3700 = vmatpush3.bf16.msra.mxu0 %v4189_v0  ;;  %3820 = vmatpush3.bf16.msra.mxu1 %v4189_v0  ;;  %p292_p3 = scmp.lt.s32.totalorder %s291_s27, 113 }
  0x10   : > { %3701 = vmatprep.subr.bf16.mxu0 %v5566_v1  ;;  %3821 = vmatprep.subr.bf16.mxu1 %v5566_v1 }
  0x11   : > { %3703 = vmatprep.mubr.msk.bf16.mxu0 %vm4317_vm0, %v5566_v1  ;;  %3823 = vmatprep.mubr.msk.bf16.mxu1 %vm4317_vm0, %v5566_v1  ;;  %s5825_s27 = smov (!%p292_p3, %s291_s27), 113 }
  0x12   : > { %s4377_s28 = sshll.u32 %s5825_s27, 2 }
  0x13   : > { %3702 = vmatpush3.bf16.msra.mxu0 %v4190_v2  ;;  %3822 = vmatpush3.bf16.msra.mxu1 %v4190_v2  ;;  %s4383_s7 = scalar_lea.vmem %s5559_s0, %s4377_s28  ;;  %s4389_s10 = scalar_lea.vmem %s5560_s1, %s4377_s28 }
  0x14   : > { %3939 = vmatprep.subr.bf16.mxu0 %v5566_v1  ;;  %4059 = vmatprep.subr.bf16.mxu1 %v5566_v1  ;;  %v4191_v3 = vld [vmem:[%s4383_s7] sm:$0xff]   ;;  %v4193_v5 = vld [vmem:[%s4383_s7 + $0x8] sm:$0xff]   ;;  %v4195_v7 = vld [vmem:[%s4383_s7 + $0x10] sm:$0xff]   ;;  %s4503_s13 = scalar_lea.vmem %s5561_s2, %s4377_s28  ;;  %s4509_s16 = scalar_lea.vmem %s5562_s3, %s4377_s28 }
  0x15   : > { %v4192_v4 = vld [vmem:[%s4389_s10] sm:$0xff]   ;;  %v4194_v6 = vld [vmem:[%s4389_s10 + $0x8] sm:$0xff]   ;;  %v4196_v8 = vld [vmem:[%s4389_s10 + $0x10] sm:$0xff]   ;;  %s5220_s22 = scalar_lea.vmem %s5565_s6, %s4377_s28 }
  0x16   : > { %3704 = vmatmul.mubr.msk.bf16.vlgmr.msra.gmra.mrb[0].mxu0 %vm538_vm1, %v4191_v3  ;;  %3824 = vmatmul.mubr.msk.bf16.vlgmr.msra.gmra.mrb[0].mxu1 %vm538_vm1, %v4192_v4  ;;  %v4197_v9 = vld [vmem:[%s4383_s7 + $0x18] sm:$0xff]   ;;  %v4199_v11 = vld [vmem:[%s4383_s7 + $0x20] sm:$0xff]   ;;  %v4201_v13 = vld [vmem:[%s4383_s7 + $0x28] sm:$0xff]  }
  0x17   : > { %3940 = vmatpush3.bf16.msra.mxu0 %v4189_v0  ;;  %4060 = vmatpush3.bf16.msra.mxu1 %v4189_v0  ;;  %v4198_v10 = vld [vmem:[%s4389_s10 + $0x18] sm:$0xff]   ;;  %v4200_v12 = vld [vmem:[%s4389_s10 + $0x20] sm:$0xff]   ;;  %v4202_v14 = vld [vmem:[%s4389_s10 + $0x28] sm:$0xff]  }
  0x18   : > { %3707 = vmatprep.mubr.msk.bf16.mxu0 %vm4317_vm0, %v5566_v1  ;;  %3827 = vmatprep.mubr.msk.bf16.mxu1 %vm4317_vm0, %v5566_v1  ;;  %v4203_v15 = vld [vmem:[%s4383_s7 + $0x30] sm:$0xff]   ;;  %v4205_v17 = vld [vmem:[%s4383_s7 + $0x38] sm:$0xff]   ;;  %v4207_v19 = vld [vmem:[%s4383_s7 + $0x40] sm:$0xff]  }
  0x19   : > { %3941 = vmatprep.subr.bf16.mxu0 %v5566_v1  ;;  %4061 = vmatprep.subr.bf16.mxu1 %v5566_v1  ;;  %v4204_v16 = vld [vmem:[%s4389_s10 + $0x30] sm:$0xff]   ;;  %v4206_v18 = vld [vmem:[%s4389_s10 + $0x38] sm:$0xff]   ;;  %v4208_v20 = vld [vmem:[%s4389_s10 + $0x40] sm:$0xff]  }
  0x1a   : > { %v4209_v21 = vld [vmem:[%s4383_s7 + $0x48] sm:$0xff]   ;;  %v4211_v23 = vld [vmem:[%s4383_s7 + $0x50] sm:$0xff]   ;;  %v4213_v25 = vld [vmem:[%s4383_s7 + $0x58] sm:$0xff]  }
  0x1b   : > { %3942 = vmatpush3.bf16.msra.mxu0 %v4190_v2  ;;  %4062 = vmatpush3.bf16.msra.mxu1 %v4190_v2  ;;  %v4210_v22 = vld [vmem:[%s4389_s10 + $0x48] sm:$0xff]   ;;  %v4212_v24 = vld [vmem:[%s4389_s10 + $0x50] sm:$0xff]   ;;  %v4214_v26 = vld [vmem:[%s4389_s10 + $0x58] sm:$0xff]  }
  0x1c   : > { %v4215_v27 = vld [vmem:[%s4383_s7 + $0x60] sm:$0xff]   ;;  %v4217_v29 = vld [vmem:[%s4383_s7 + $0x68] sm:$0xff]   ;;  %v4219_v31 = vld [vmem:[%s4383_s7 + $0x70] sm:$0xff]  }
  0x1d   : > { %v4216_v28 = vld [vmem:[%s4389_s10 + $0x60] sm:$0xff]   ;;  %v4218_v30 = vld [vmem:[%s4389_s10 + $0x68] sm:$0xff]   ;;  %v4220_v32 = vld [vmem:[%s4389_s10 + $0x70] sm:$0xff]  }
  0x1e   : > { %3708 = vmatmul.mubr.msk.bf16.gmra.mrb[4].mxu0 %vm538_vm1, %v4193_v5  ;;  %3828 = vmatmul.mubr.msk.bf16.gmra.mrb[4].mxu1 %vm538_vm1, %v4194_v6  ;;  %v4221_v33 = vld [vmem:[%s4383_s7 + $0x78] sm:$0xff]   ;;  %v4223_v35 = vld [vmem:[%s4383_s7 + $0x80] sm:$0xff]   ;;  %v4225_v37 = vld [vmem:[%s4383_s7 + $0x88] sm:$0xff]  }
  0x1f   : > { %3711 = vmatprep.mubr.msk.bf16.mxu0 %vm4317_vm0, %v5566_v1  ;;  %3831 = vmatprep.mubr.msk.bf16.mxu1 %vm4317_vm0, %v5566_v1  ;;  %v4222_v34 = vld [vmem:[%s4389_s10 + $0x78] sm:$0xff]   ;;  %v4224_v36 = vld [vmem:[%s4389_s10 + $0x80] sm:$0xff]   ;;  %v4226_v38 = vld [vmem:[%s4389_s10 + $0x88] sm:$0xff]  }
  0x20   : > { %v4227_v39 = vld [vmem:[%s4383_s7 + $0x90] sm:$0xff]   ;;  %v4229_v41 = vld [vmem:[%s4383_s7 + $0x98] sm:$0xff]   ;;  %v4231_v43 = vld [vmem:[%s4383_s7 + $0xa0] sm:$0xff]  }
  0x21   : > { %v4228_v40 = vld [vmem:[%s4389_s10 + $0x90] sm:$0xff]   ;;  %v4230_v42 = vld [vmem:[%s4389_s10 + $0x98] sm:$0xff]   ;;  %v4232_v44 = vld [vmem:[%s4389_s10 + $0xa0] sm:$0xff]  }
  0x22   : > { %v4233_v45 = vld [vmem:[%s4383_s7 + $0xa8] sm:$0xff]   ;;  %v4235_v47 = vld [vmem:[%s4383_s7 + $0xb0] sm:$0xff]   ;;  %v4237_v49 = vld [vmem:[%s4383_s7 + $0xb8] sm:$0xff]  }
  0x23   : > { %v4234_v46 = vld [vmem:[%s4389_s10 + $0xa8] sm:$0xff]   ;;  %v4236_v48 = vld [vmem:[%s4389_s10 + $0xb0] sm:$0xff]   ;;  %v4238_v50 = vld [vmem:[%s4389_s10 + $0xb8] sm:$0xff]  }
  0x24   : > { %v4239_v51 = vld [vmem:[%s4383_s7 + $0xc0] sm:$0xff]   ;;  %v4241_v53 = vld [vmem:[%s4383_s7 + $0xc8] sm:$0xff]   ;;  %v4243_v55 = vld [vmem:[%s4383_s7 + $0xd0] sm:$0xff]  }
  0x25   : > { %v4240_v52 = vld [vmem:[%s4389_s10 + $0xc0] sm:$0xff]   ;;  %v4242_v54 = vld [vmem:[%s4389_s10 + $0xc8] sm:$0xff]   ;;  %v4244_v56 = vld [vmem:[%s4389_s10 + $0xd0] sm:$0xff]  }
  0x26   : > { %3712 = vmatmul.mubr.msk.bf16.gmra.mrb[8].mxu0 %vm538_vm1, %v4195_v7  ;;  %3832 = vmatmul.mubr.msk.bf16.gmra.mrb[8].mxu1 %vm538_vm1, %v4196_v8  ;;  %v4245_v60 = vld [vmem:[%s4383_s7 + $0xd8] sm:$0xff]  }
  0x27   : > { %3715 = vmatprep.mubr.msk.bf16.mxu0 %vm4317_vm0, %v5566_v1  ;;  %3835 = vmatprep.mubr.msk.bf16.mxu1 %vm4317_vm0, %v5566_v1  ;;  %v4246_v0 = vld [vmem:[%s4389_s10 + $0xd8] sm:$0xff]  }
  0x2e   : > { %3716 = vmatmul.mubr.msk.bf16.gmra.mrb[12].mxu0 %vm538_vm1, %v4197_v9  ;;  %3836 = vmatmul.mubr.msk.bf16.gmra.mrb[12].mxu1 %vm538_vm1, %v4198_v10  ;;  %v4247_v9 = vld [vmem:[%s4383_s7 + $0xe0] ss:$0 sps:$4 sm:$0xff]  }
  0x2f   : > { %3719 = vmatprep.mubr.msk.bf16.mxu0 %vm4317_vm0, %v5566_v1  ;;  %3839 = vmatprep.mubr.msk.bf16.mxu1 %vm4317_vm0, %v5566_v1 }
  0x36   : > { %3720 = vmatmul.mubr.msk.bf16.gmra.mrb[16].mxu0 %vm538_vm1, %v4199_v11  ;;  %3840 = vmatmul.mubr.msk.bf16.gmra.mrb[16].mxu1 %vm538_vm1, %v4200_v12 }
  0x37   : > { %3723 = vmatprep.mubr.msk.bf16.mxu0 %vm4317_vm0, %v5566_v1  ;;  %3843 = vmatprep.mubr.msk.bf16.mxu1 %vm4317_vm0, %v5566_v1 }
  0x3e   : > { %3724 = vmatmul.mubr.msk.bf16.gmra.mrb[20].mxu0 %vm538_vm1, %v4201_v13  ;;  %3844 = vmatmul.mubr.msk.bf16.gmra.mrb[20].mxu1 %vm538_vm1, %v4202_v14  ;;  %v4248_v13 = vld [vmem:[%s4389_s10 + $0xe0] ss:$0 sps:$4 sm:$0xff]  }
  0x3f   : > { %3727 = vmatprep.mubr.msk.bf16.mxu0 %vm4317_vm0, %v5566_v1  ;;  %3847 = vmatprep.mubr.msk.bf16.mxu1 %vm4317_vm0, %v5566_v1 }
  0x46   : > { %3728 = vmatmul.mubr.msk.bf16.gmra.mrb[24].mxu0 %vm538_vm1, %v4203_v15  ;;  %3848 = vmatmul.mubr.msk.bf16.gmra.mrb[24].mxu1 %vm538_vm1, %v4204_v16 }
  0x47   : > { %3731 = vmatprep.mubr.msk.bf16.mxu0 %vm4317_vm0, %v5566_v1  ;;  %3851 = vmatprep.mubr.msk.bf16.mxu1 %vm4317_vm0, %v5566_v1 }
  0x4e   : > { %3732 = vmatmul.mubr.msk.bf16.gmra.mrb[28].mxu0 %vm538_vm1, %v4205_v17  ;;  %3852 = vmatmul.mubr.msk.bf16.gmra.mrb[28].mxu1 %vm538_vm1, %v4206_v18 }
  0x4f   : > { %3735 = vmatprep.mubr.msk.bf16.mxu0 %vm4317_vm0, %v5566_v1  ;;  %3855 = vmatprep.mubr.msk.bf16.mxu1 %vm4317_vm0, %v5566_v1 }
  0x56   : > { %3736 = vmatmul.mubr.msk.bf16.gmra.mrb[32].mxu0 %vm538_vm1, %v4207_v19  ;;  %3856 = vmatmul.mubr.msk.bf16.gmra.mrb[32].mxu1 %vm538_vm1, %v4208_v20 }
  0x57   : > { %3739 = vmatprep.mubr.msk.bf16.mxu0 %vm4317_vm0, %v5566_v1  ;;  %3859 = vmatprep.mubr.msk.bf16.mxu1 %vm4317_vm0, %v5566_v1 }
  0x5e   : > { %3740 = vmatmul.mubr.msk.bf16.gmra.mrb[36].mxu0 %vm538_vm1, %v4209_v21  ;;  %3860 = vmatmul.mubr.msk.bf16.gmra.mrb[36].mxu1 %vm538_vm1, %v4210_v22  ;;  %v4249_v21 = vld [vmem:[%s4503_s13] sm:$0xff]  }
  0x5f   : > { %3743 = vmatprep.mubr.msk.bf16.mxu0 %vm4317_vm0, %v5566_v1  ;;  %3863 = vmatprep.mubr.msk.bf16.mxu1 %vm4317_vm0, %v5566_v1 }
  0x66   : > { %3744 = vmatmul.mubr.msk.bf16.gmra.mrb[40].mxu0 %vm538_vm1, %v4211_v23  ;;  %3864 = vmatmul.mubr.msk.bf16.gmra.mrb[40].mxu1 %vm538_vm1, %v4212_v24 }
  0x67   : > { %3747 = vmatprep.mubr.msk.bf16.mxu0 %vm4317_vm0, %v5566_v1  ;;  %3867 = vmatprep.mubr.msk.bf16.mxu1 %vm4317_vm0, %v5566_v1 }
  0x6e   : > { %3748 = vmatmul.mubr.msk.bf16.gmra.mrb[44].mxu0 %vm538_vm1, %v4213_v25  ;;  %3868 = vmatmul.mubr.msk.bf16.gmra.mrb[44].mxu1 %vm538_vm1, %v4214_v26  ;;  %v4250_v25 = vld [vmem:[%s4509_s16] sm:$0xff]  }
  0x6f   : > { %3751 = vmatprep.mubr.msk.bf16.mxu0 %vm4317_vm0, %v5566_v1  ;;  %3871 = vmatprep.mubr.msk.bf16.mxu1 %vm4317_vm0, %v5566_v1 }
  0x76   : > { %3752 = vmatmul.mubr.msk.bf16.gmra.mrb[48].mxu0 %vm538_vm1, %v4215_v27  ;;  %3872 = vmatmul.mubr.msk.bf16.gmra.mrb[48].mxu1 %vm538_vm1, %v4216_v28 }
  0x77   : > { %3755 = vmatprep.mubr.msk.bf16.mxu0 %vm4317_vm0, %v5566_v1  ;;  %3875 = vmatprep.mubr.msk.bf16.mxu1 %vm4317_vm0, %v5566_v1 }
  0x7e   : > { %3756 = vmatmul.mubr.msk.bf16.gmra.mrb[52].mxu0 %vm538_vm1, %v4217_v29  ;;  %3876 = vmatmul.mubr.msk.bf16.gmra.mrb[52].mxu1 %vm538_vm1, %v4218_v30 }
  0x7f   : > { %3759 = vmatprep.mubr.msk.bf16.mxu0 %vm4317_vm0, %v5566_v1  ;;  %3879 = vmatprep.mubr.msk.bf16.mxu1 %vm4317_vm0, %v5566_v1 }
  0x86   : > { %3760 = vmatmul.mubr.msk.bf16.gmra.mrb[56].mxu0 %vm538_vm1, %v4219_v31  ;;  %3880 = vmatmul.mubr.msk.bf16.gmra.mrb[56].mxu1 %vm538_vm1, %v4220_v32 }
  0x87   : > { %3763 = vmatprep.mubr.msk.bf16.mxu0 %vm4317_vm0, %v5566_v1  ;;  %3883 = vmatprep.mubr.msk.bf16.mxu1 %vm4317_vm0, %v5566_v1 }
  0x8e   : > { %3764 = vmatmul.mubr.msk.bf16.gmra.mrb[60].mxu0 %vm538_vm1, %v4221_v33  ;;  %3884 = vmatmul.mubr.msk.bf16.gmra.mrb[60].mxu1 %vm538_vm1, %v4222_v34  ;;  %v4251_v33 = vld [vmem:[%s4503_s13 + $0x8] sm:$0xff]  }
  0x8f   : > { %3767 = vmatprep.mubr.msk.bf16.mxu0 %vm4317_vm0, %v5566_v1  ;;  %3887 = vmatprep.mubr.msk.bf16.mxu1 %vm4317_vm0, %v5566_v1 }
  0x96   : > { %3768 = vmatmul.mubr.msk.bf16.gmra.mrb[64].mxu0 %vm538_vm1, %v4223_v35  ;;  %3888 = vmatmul.mubr.msk.bf16.gmra.mrb[64].mxu1 %vm538_vm1, %v4224_v36 }
  0x97   : > { %3771 = vmatprep.mubr.msk.bf16.mxu0 %vm4317_vm0, %v5566_v1  ;;  %3891 = vmatprep.mubr.msk.bf16.mxu1 %vm4317_vm0, %v5566_v1 }
  0x9e   : > { %3772 = vmatmul.mubr.msk.bf16.gmra.mrb[68].mxu0 %vm538_vm1, %v4225_v37  ;;  %3892 = vmatmul.mubr.msk.bf16.gmra.mrb[68].mxu1 %vm538_vm1, %v4226_v38  ;;  %v4252_v37 = vld [vmem:[%s4509_s16 + $0x8] sm:$0xff]  }
  0x9f   : > { %3775 = vmatprep.mubr.msk.bf16.mxu0 %vm4317_vm0, %v5566_v1  ;;  %3895 = vmatprep.mubr.msk.bf16.mxu1 %vm4317_vm0, %v5566_v1 }
  0xa6   : > { %3776 = vmatmul.mubr.msk.bf16.gmra.mrb[72].mxu0 %vm538_vm1, %v4227_v39  ;;  %3896 = vmatmul.mubr.msk.bf16.gmra.mrb[72].mxu1 %vm538_vm1, %v4228_v40 }
  0xa7   : > { %3779 = vmatprep.mubr.msk.bf16.mxu0 %vm4317_vm0, %v5566_v1  ;;  %3899 = vmatprep.mubr.msk.bf16.mxu1 %vm4317_vm0, %v5566_v1 }
  0xae   : > { %3780 = vmatmul.mubr.msk.bf16.gmra.mrb[76].mxu0 %vm538_vm1, %v4229_v41  ;;  %3900 = vmatmul.mubr.msk.bf16.gmra.mrb[76].mxu1 %vm538_vm1, %v4230_v42 }
  0xaf   : > { %3783 = vmatprep.mubr.msk.bf16.mxu0 %vm4317_vm0, %v5566_v1  ;;  %3903 = vmatprep.mubr.msk.bf16.mxu1 %vm4317_vm0, %v5566_v1 }
  0xb6   : > { %3784 = vmatmul.mubr.msk.bf16.gmra.mrb[80].mxu0 %vm538_vm1, %v4231_v43  ;;  %3904 = vmatmul.mubr.msk.bf16.gmra.mrb[80].mxu1 %vm538_vm1, %v4232_v44 }
  0xb7   : > { %3787 = vmatprep.mubr.msk.bf16.mxu0 %vm4317_vm0, %v5566_v1  ;;  %3907 = vmatprep.mubr.msk.bf16.mxu1 %vm4317_vm0, %v5566_v1 }
  0xbe   : > { %3788 = vmatmul.mubr.msk.bf16.gmra.mrb[84].mxu0 %vm538_vm1, %v4233_v45  ;;  %3908 = vmatmul.mubr.msk.bf16.gmra.mrb[84].mxu1 %vm538_vm1, %v4234_v46  ;;  %v4253_v45 = vld [vmem:[%s4503_s13 + $0x10] sm:$0xff]  }
  0xbf   : > { %3791 = vmatprep.mubr.msk.bf16.mxu0 %vm4317_vm0, %v5566_v1  ;;  %3911 = vmatprep.mubr.msk.bf16.mxu1 %vm4317_vm0, %v5566_v1 }
  0xc6   : > { %3792 = vmatmul.mubr.msk.bf16.gmra.mrb[88].mxu0 %vm538_vm1, %v4235_v47  ;;  %3912 = vmatmul.mubr.msk.bf16.gmra.mrb[88].mxu1 %vm538_vm1, %v4236_v48 }
  0xc7   : > { %3795 = vmatprep.mubr.msk.bf16.mxu0 %vm4317_vm0, %v5566_v1  ;;  %3915 = vmatprep.mubr.msk.bf16.mxu1 %vm4317_vm0, %v5566_v1 }
  0xce   : > { %3796 = vmatmul.mubr.msk.bf16.gmra.mrb[92].mxu0 %vm538_vm1, %v4237_v49  ;;  %3916 = vmatmul.mubr.msk.bf16.gmra.mrb[92].mxu1 %vm538_vm1, %v4238_v50  ;;  %v4254_v49 = vld [vmem:[%s4509_s16 + $0x10] sm:$0xff]  }
  0xcf   : > { %3799 = vmatprep.mubr.msk.bf16.mxu0 %vm4317_vm0, %v5566_v1  ;;  %3919 = vmatprep.mubr.msk.bf16.mxu1 %vm4317_vm0, %v5566_v1 }
  0xd6   : > { %3800 = vmatmul.mubr.msk.bf16.gmra.mrb[96].mxu0 %vm538_vm1, %v4239_v51  ;;  %3920 = vmatmul.mubr.msk.bf16.gmra.mrb[96].mxu1 %vm538_vm1, %v4240_v52 }
  0xd7   : > { %3803 = vmatprep.mubr.msk.bf16.mxu0 %vm4317_vm0, %v5566_v1  ;;  %3923 = vmatprep.mubr.msk.bf16.mxu1 %vm4317_vm0, %v5566_v1 }
  0xde   : > { %3804 = vmatmul.mubr.msk.bf16.gmra.mrb[100].mxu0 %vm538_vm1, %v4241_v53  ;;  %3924 = vmatmul.mubr.msk.bf16.gmra.mrb[100].mxu1 %vm538_vm1, %v4242_v54 }
  0xdf   : > { %3807 = vmatprep.mubr.msk.bf16.mxu0 %vm4317_vm0, %v5566_v1  ;;  %3927 = vmatprep.mubr.msk.bf16.mxu1 %vm4317_vm0, %v5566_v1 }
  0xe6   : > { %3808 = vmatmul.mubr.msk.bf16.gmra.mrb[104].mxu0 %vm538_vm1, %v4243_v55  ;;  %3928 = vmatmul.mubr.msk.bf16.gmra.mrb[104].mxu1 %vm538_vm1, %v4244_v56 }
  0xe7   : > { %3811 = vmatprep.mubr.msk.bf16.mxu0 %vm4317_vm0, %v5566_v1  ;;  %3931 = vmatprep.mubr.msk.bf16.mxu1 %vm4317_vm0, %v5566_v1 }
  0xe9   : > { %v4621_v57 = vpop.f32.mrb[0].mxu0  ;;  %v4623_v58 = vpop.f32.mrb[0].mxu1 }
  0xea   : > { %v3705_v59 = vpop.f32.mrb[1].mxu0  ;;  %v3825_v62 = vpop.f32.mrb[1].mxu1 }
  0xeb   : > { %v4628_v63 = vpop.f32.mrb[2].mxu0  ;;  %v4631_v2 = vpop.f32.mrb[2].mxu1  ;;  %v4255_v59 = vld [vmem:[%s4503_s13 + $0x18] sm:$0xff]  }
  0xec   : > { %v3706_v3 = vpop.f32.mrb[3].mxu0  ;;  %v3826_v5 = vpop.f32.mrb[3].mxu1 }
  0xed   : > { %v4256_v3 = vld [vmem:[%s4509_s16 + $0x18] sm:$0xff]  }
  0xee   : > { %3812 = vmatmul.mubr.msk.bf16.gmra.mrb[108].mxu0 %vm538_vm1, %v4245_v60  ;;  %3932 = vmatmul.mubr.msk.bf16.gmra.mrb[108].mxu1 %vm538_vm1, %v4246_v0 }
  0xef   : > { %3815 = vmatprep.mubr.msk.bf16.mxu0 %vm4317_vm0, %v5566_v1  ;;  %3935 = vmatprep.mubr.msk.bf16.mxu1 %vm4317_vm0, %v5566_v1 }
  0xf1   : > { %v4641_v6 = vpop.f32.mrb[4].mxu0  ;;  %v4643_v7 = vpop.f32.mrb[4].mxu1 }
  0xf2   : > { %v3709_v8 = vpop.f32.mrb[5].mxu0  ;;  %v3829_v11 = vpop.f32.mrb[5].mxu1 }
  0xf3   : > { %v4648_v12 = vpop.f32.mrb[6].mxu0  ;;  %v4651_v14 = vpop.f32.mrb[6].mxu1 }
  0xf4   : > { %v3710_v15 = vpop.f32.mrb[7].mxu0  ;;  %v3830_v17 = vpop.f32.mrb[7].mxu1 }
  0xf6   : > { %3816 = vmatmul.mubr.msk.bf16.gmra.mrb[112].mxu0 %vm538_vm1, %v4247_v9  ;;  %3936 = vmatmul.mubr.msk.bf16.gmra.mrb[112].mxu1 %vm538_vm1, %v4248_v13 }
  0xf7   : > { %3943 = vmatprep.mubr.msk.bf16.mxu0 %vm4317_vm0, %v5566_v1  ;;  %4063 = vmatprep.mubr.msk.bf16.mxu1 %vm4317_vm0, %v5566_v1 }
  0xf9   : > { %v4661_v18 = vpop.f32.mrb[8].mxu0  ;;  %v4663_v19 = vpop.f32.mrb[8].mxu1 }
  0xfa   : > { %v3713_v20 = vpop.f32.mrb[9].mxu0  ;;  %v3833_v23 = vpop.f32.mrb[9].mxu1 }
  0xfb   : > { %v4668_v24 = vpop.f32.mrb[10].mxu0  ;;  %v4671_v26 = vpop.f32.mrb[10].mxu1  ;;  %v4257_v20 = vld [vmem:[%s4503_s13 + $0x20] sm:$0xff]  }
  0xfc   : > { %v3714_v27 = vpop.f32.mrb[11].mxu0  ;;  %v3834_v29 = vpop.f32.mrb[11].mxu1 }
  0xfd   : > { %v4258_v27 = vld [vmem:[%s4509_s16 + $0x20] sm:$0xff]  }
  0xfe   : > { %3944 = vmatmul.mubr.msk.bf16.vlgmr.msra.gmra.mrb[116].mxu0 %vm538_vm1, %v4249_v21  ;;  %4064 = vmatmul.mubr.msk.bf16.vlgmr.msra.gmra.mrb[116].mxu1 %vm538_vm1, %v4250_v25 }
  0xff   : > { %3947 = vmatprep.mubr.msk.bf16.mxu0 %vm4317_vm0, %v5566_v1  ;;  %4067 = vmatprep.mubr.msk.bf16.mxu1 %vm4317_vm0, %v5566_v1 }
 0x101   : > { %v4681_v30 = vpop.f32.mrb[12].mxu0  ;;  %v4683_v31 = vpop.f32.mrb[12].mxu1 }
 0x102   : > { %v3717_v32 = vpop.f32.mrb[13].mxu0  ;;  %v3837_v35 = vpop.f32.mrb[13].mxu1 }
 0x103   : > { %v4688_v36 = vpop.f32.mrb[14].mxu0  ;;  %v4691_v38 = vpop.f32.mrb[14].mxu1 }
 0x104   : > { %v3718_v39 = vpop.f32.mrb[15].mxu0  ;;  %v3838_v41 = vpop.f32.mrb[15].mxu1 }
 0x106   : > { %3948 = vmatmul.mubr.msk.bf16.gmra.mrb[120].mxu0 %vm538_vm1, %v4251_v33  ;;  %4068 = vmatmul.mubr.msk.bf16.gmra.mrb[120].mxu1 %vm538_vm1, %v4252_v37 }
 0x107   : > { %3951 = vmatprep.mubr.msk.bf16.mxu0 %vm4317_vm0, %v5566_v1  ;;  %4071 = vmatprep.mubr.msk.bf16.mxu1 %vm4317_vm0, %v5566_v1 }
 0x109   : > { %v4701_v42 = vpop.f32.mrb[16].mxu0  ;;  %v4703_v43 = vpop.f32.mrb[16].mxu1 }
 0x10a   : > { %v3721_v44 = vpop.f32.mrb[17].mxu0  ;;  %v3841_v47 = vpop.f32.mrb[17].mxu1 }
 0x10b   : > { %v4708_v48 = vpop.f32.mrb[18].mxu0  ;;  %v4711_v50 = vpop.f32.mrb[18].mxu1  ;;  %v4259_v44 = vld [vmem:[%s4503_s13 + $0x28] sm:$0xff]  }
 0x10c   : > { %v3722_v51 = vpop.f32.mrb[19].mxu0  ;;  %v3842_v53 = vpop.f32.mrb[19].mxu1 }
 0x10d   : > { %v4260_v51 = vld [vmem:[%s4509_s16 + $0x28] sm:$0xff]  }
 0x10e   : > { %3952 = vmatmul.mubr.msk.bf16.gmra.mrb[124].mxu0 %vm538_vm1, %v4253_v45  ;;  %4072 = vmatmul.mubr.msk.bf16.gmra.mrb[124].mxu1 %vm538_vm1, %v4254_v49 }
 0x10f   : > { %3955 = vmatprep.mubr.msk.bf16.mxu0 %vm4317_vm0, %v5566_v1  ;;  %4075 = vmatprep.mubr.msk.bf16.mxu1 %vm4317_vm0, %v5566_v1 }
 0x111   : > { %v4721_v54 = vpop.f32.mrb[20].mxu0  ;;  %v4723_v55 = vpop.f32.mrb[20].mxu1 }
 0x112   : > { %v3725_v56 = vpop.f32.mrb[21].mxu0  ;;  %v3845_v62 = vpop.f32.mrb[21].mxu1 }
 0x113   : > { %v4728_v0 = vpop.f32.mrb[22].mxu0  ;;  %v4731_v5 = vpop.f32.mrb[22].mxu1 }
 0x114   : > { %v3726_v8 = vpop.f32.mrb[23].mxu0  ;;  %v3846_v11 = vpop.f32.mrb[23].mxu1 }
 0x116   : > { %3956 = vmatmul.mubr.msk.bf16.gmra.mrb[128].mxu0 %vm538_vm1, %v4255_v59  ;;  %4076 = vmatmul.mubr.msk.bf16.gmra.mrb[128].mxu1 %vm538_vm1, %v4256_v3 }
 0x117   : > { %3959 = vmatprep.mubr.msk.bf16.mxu0 %vm4317_vm0, %v5566_v1  ;;  %4079 = vmatprep.mubr.msk.bf16.mxu1 %vm4317_vm0, %v5566_v1 }
 0x119   : > { %v4741_v13 = vpop.f32.mrb[24].mxu0  ;;  %v4743_v15 = vpop.f32.mrb[24].mxu1 }
 0x11a   : > { %v3729_v17 = vpop.f32.mrb[25].mxu0  ;;  %v3849_v23 = vpop.f32.mrb[25].mxu1 }
 0x11b   : > { %v4748_v25 = vpop.f32.mrb[26].mxu0  ;;  %v4751_v29 = vpop.f32.mrb[26].mxu1  ;;  %v4261_v17 = vld [vmem:[%s4503_s13 + $0x30] sm:$0xff]  }
 0x11c   : > { %v3730_v32 = vpop.f32.mrb[27].mxu0  ;;  %v3850_v35 = vpop.f32.mrb[27].mxu1 }
 0x11d   : > { %v4262_v32 = vld [vmem:[%s4509_s16 + $0x30] sm:$0xff]  }
 0x11e   : > { %3960 = vmatmul.mubr.msk.bf16.gmra.mrb[132].mxu0 %vm538_vm1, %v4257_v20  ;;  %4080 = vmatmul.mubr.msk.bf16.gmra.mrb[132].mxu1 %vm538_vm1, %v4258_v27 }
 0x11f   : > { %3963 = vmatprep.mubr.msk.bf16.mxu0 %vm4317_vm0, %v5566_v1  ;;  %4083 = vmatprep.mubr.msk.bf16.mxu1 %vm4317_vm0, %v5566_v1 }
 0x121   : > { %v4761_v37 = vpop.f32.mrb[28].mxu0  ;;  %v4763_v39 = vpop.f32.mrb[28].mxu1 }
 0x122   : > { %v3733_v41 = vpop.f32.mrb[29].mxu0  ;;  %v3853_v47 = vpop.f32.mrb[29].mxu1 }
 0x123   : > { %v4768_v49 = vpop.f32.mrb[30].mxu0  ;;  %v4771_v53 = vpop.f32.mrb[30].mxu1 }
 0x124   : > { %v3734_v56 = vpop.f32.mrb[31].mxu0  ;;  %v3854_v62 = vpop.f32.mrb[31].mxu1 }
 0x126   : > { %3964 = vmatmul.mubr.msk.bf16.gmra.mrb[136].mxu0 %vm538_vm1, %v4259_v44  ;;  %4084 = vmatmul.mubr.msk.bf16.gmra.mrb[136].mxu1 %vm538_vm1, %v4260_v51 }
 0x127   : > { %3967 = vmatprep.mubr.msk.bf16.mxu0 %vm4317_vm0, %v5566_v1  ;;  %4087 = vmatprep.mubr.msk.bf16.mxu1 %vm4317_vm0, %v5566_v1 }
 0x129   : > { %v4781_v3 = vpop.f32.mrb[32].mxu0  ;;  %v4783_v8 = vpop.f32.mrb[32].mxu1 }
 0x12a   : > { %v3737_v11 = vpop.f32.mrb[33].mxu0  ;;  %v3857_v23 = vpop.f32.mrb[33].mxu1 }
 0x12b   : > { %v4788_v27 = vpop.f32.mrb[34].mxu0  ;;  %v4791_v35 = vpop.f32.mrb[34].mxu1  ;;  %v4263_v11 = vld [vmem:[%s4503_s13 + $0x38] sm:$0xff]  }
 0x12c   : > { %v3738_v41 = vpop.f32.mrb[35].mxu0  ;;  %v3858_v47 = vpop.f32.mrb[35].mxu1 }
 0x12e   : > { %3968 = vmatmul.mubr.msk.bf16.gmra.mrb[140].mxu0 %vm538_vm1, %v4261_v17  ;;  %4088 = vmatmul.mubr.msk.bf16.gmra.mrb[140].mxu1 %vm538_vm1, %v4262_v32  ;;  %v4264_v32 = vld [vmem:[%s4509_s16 + $0x38] sm:$0xff]  }
 0x12f   : > { %3971 = vmatprep.mubr.msk.bf16.mxu0 %vm4317_vm0, %v5566_v1  ;;  %4091 = vmatprep.mubr.msk.bf16.mxu1 %vm4317_vm0, %v5566_v1 }
 0x131   : > { %v4801_v51 = vpop.f32.mrb[36].mxu0  ;;  %v4803_v56 = vpop.f32.mrb[36].mxu1 }
 0x132   : > { %v3741_v62 = vpop.f32.mrb[37].mxu0  ;;  %v3861_v41 = vpop.f32.mrb[37].mxu1 }
 0x133   : > { %v4808_v17 = vpop.f32.mrb[38].mxu0  ;;  %v4811_v47 = vpop.f32.mrb[38].mxu1 }
 0x134   : > { %v3742_v44 = vpop.f32.mrb[39].mxu0  ;;  %v3862_v59 = vpop.f32.mrb[39].mxu1 }
 0x135   : > { %v4265_v44 = vld [vmem:[%s4503_s13 + $0x40] sm:$0xff]  }
 0x136   : > { %3972 = vmatmul.mubr.msk.bf16.gmra.mrb[144].mxu0 %vm538_vm1, %v4263_v11  ;;  %4092 = vmatmul.mubr.msk.bf16.gmra.mrb[144].mxu1 %vm538_vm1, %v4264_v32  ;;  %v4266_v32 = vld [vmem:[%s4509_s16 + $0x40] sm:$0xff]  }
 0x137   : > { %3975 = vmatprep.mubr.msk.bf16.mxu0 %vm4317_vm0, %v5566_v1  ;;  %4095 = vmatprep.mubr.msk.bf16.mxu1 %vm4317_vm0, %v5566_v1 }
 0x139   : > { %v4821_v62 = vpop.f32.mrb[40].mxu0  ;;  %v4823_v41 = vpop.f32.mrb[40].mxu1 }
 0x13a   : > { %v3745_v23 = vpop.f32.mrb[41].mxu0  ;;  %v3865_v20 = vpop.f32.mrb[41].mxu1 }
 0x13b   : > { %v4828_v11 = vpop.f32.mrb[42].mxu0  ;;  %v4831_v45 = vpop.f32.mrb[42].mxu1 }
 0x13c   : > { %v3746_v33 = vpop.f32.mrb[43].mxu0  ;;  %v3866_v9 = vpop.f32.mrb[43].mxu1 }
 0x13d   : > { %v4267_v33 = vld [vmem:[%s4503_s13 + $0x48] sm:$0xff]  }
 0x13e   : > { %3976 = vmatmul.mubr.msk.bf16.gmra.mrb[148].mxu0 %vm538_vm1, %v4265_v44  ;;  %4096 = vmatmul.mubr.msk.bf16.gmra.mrb[148].mxu1 %vm538_vm1, %v4266_v32  ;;  %v4268_v32 = vld [vmem:[%s4509_s16 + $0x48] sm:$0xff]  }
 0x13f   : > { %3979 = vmatprep.mubr.msk.bf16.mxu0 %vm4317_vm0, %v5566_v1  ;;  %4099 = vmatprep.mubr.msk.bf16.mxu1 %vm4317_vm0, %v5566_v1 }
 0x141   : > { %v4841_v20 = vpop.f32.mrb[44].mxu0  ;;  %v4843_v23 = vpop.f32.mrb[44].mxu1 }
 0x142   : > { %v3749_v59 = vpop.f32.mrb[45].mxu0  ;;  %v3869_v21 = vpop.f32.mrb[45].mxu1 }
 0x143   : > { %v4848_v44 = vpop.f32.mrb[46].mxu0  ;;  %v4851_v60 = vpop.f32.mrb[46].mxu1 }
 0x144   : > { %v3750_v52 = vpop.f32.mrb[47].mxu0  ;;  %v3870_v40 = vpop.f32.mrb[47].mxu1 }
 0x145   : > { %v4269_v52 = vld [vmem:[%s4503_s13 + $0x50] sm:$0xff]  }
 0x146   : > { %3980 = vmatmul.mubr.msk.bf16.gmra.mrb[152].mxu0 %vm538_vm1, %v4267_v33  ;;  %4100 = vmatmul.mubr.msk.bf16.gmra.mrb[152].mxu1 %vm538_vm1, %v4268_v32  ;;  %v4270_v32 = vld [vmem:[%s4509_s16 + $0x50] sm:$0xff]  }
 0x147   : > { %3983 = vmatprep.mubr.msk.bf16.mxu0 %vm4317_vm0, %v5566_v1  ;;  %4103 = vmatprep.mubr.msk.bf16.mxu1 %vm4317_vm0, %v5566_v1 }
 0x149   : > { %v4861_v21 = vpop.f32.mrb[48].mxu0  ;;  %v4863_v59 = vpop.f32.mrb[48].mxu1 }
 0x14a   : > { %5634 = vst [vmem:[#allocation2_spill] sm:$0xff] %v4861_v21  ;;  %5635 = vst [vmem:[#allocation3_spill] sm:$0xff] %v4863_v59  ;;  %v3753_v9 = vpop.f32.mrb[49].mxu0  ;;  %v3873_v46 = vpop.f32.mrb[49].mxu1 }
 0x14b   : > { %v4868_v33 = vpop.f32.mrb[50].mxu0  ;;  %v4871_v34 = vpop.f32.mrb[50].mxu1 }
 0x14c   : > { %5636 = vst [vmem:[#allocation4_spill] sm:$0xff] %v4868_v33  ;;  %5637 = vst [vmem:[#allocation5_spill] sm:$0xff] %v4871_v34  ;;  %v3754_v28 = vpop.f32.mrb[51].mxu0  ;;  %v3874_v16 = vpop.f32.mrb[51].mxu1 }
 0x14d   : > { %v4271_v28 = vld [vmem:[%s4503_s13 + $0x58] sm:$0xff]  }
 0x14e   : > { %3984 = vmatmul.mubr.msk.bf16.gmra.mrb[156].mxu0 %vm538_vm1, %v4269_v52  ;;  %4104 = vmatmul.mubr.msk.bf16.gmra.mrb[156].mxu1 %vm538_vm1, %v4270_v32  ;;  %v4272_v32 = vld [vmem:[%s4509_s16 + $0x58] sm:$0xff]  }
 0x14f   : > { %3987 = vmatprep.mubr.msk.bf16.mxu0 %vm4317_vm0, %v5566_v1  ;;  %4107 = vmatprep.mubr.msk.bf16.mxu1 %vm4317_vm0, %v5566_v1 }
 0x151   : > { %v4881_v46 = vpop.f32.mrb[52].mxu0  ;;  %v4883_v9 = vpop.f32.mrb[52].mxu1 }
 0x152   : > { %5638 = vst [vmem:[#allocation6_spill] sm:$0xff] %v4881_v46  ;;  %5639 = vst [vmem:[#allocation7_spill] sm:$0xff] %v4883_v9  ;;  %v3757_v40 = vpop.f32.mrb[53].mxu0  ;;  %v3877_v22 = vpop.f32.mrb[53].mxu1 }
 0x153   : > { %v4888_v52 = vpop.f32.mrb[54].mxu0  ;;  %v4891_v10 = vpop.f32.mrb[54].mxu1  ;;  %v5642_v40 = vmov 0.0  }
 0x154   : > { %5640 = vst [vmem:[#allocation8_spill] sm:$0xff] %v4888_v52  ;;  %5641 = vst [vmem:[#allocation9_spill] sm:$0xff] %v4891_v10  ;;  %v3758_v4 = vpop.f32.mrb[55].mxu0  ;;  %v3878_v1 = vpop.f32.mrb[55].mxu1 }
 0x155   : > { %v4273_v4 = vld [vmem:[%s4503_s13 + $0x60] sm:$0xff]  }
 0x156   : > { %3988 = vmatmul.mubr.msk.bf16.gmra.mrb[160].mxu0 %vm538_vm1, %v4271_v28  ;;  %4108 = vmatmul.mubr.msk.bf16.gmra.mrb[160].mxu1 %vm538_vm1, %v4272_v32  ;;  %v4274_v32 = vld [vmem:[%s4509_s16 + $0x60] sm:$0xff]  }
 0x157   : > { %3991 = vmatprep.mubr.msk.bf16.mxu0 %vm4317_vm0, %v5642_v40  ;;  %4111 = vmatprep.mubr.msk.bf16.mxu1 %vm4317_vm0, %v5642_v40 }
 0x159   : > { %v4901_v22 = vpop.f32.mrb[56].mxu0  ;;  %v4903_v16 = vpop.f32.mrb[56].mxu1 }
 0x15a   : > { %5643 = vst [vmem:[#allocation10_spill] sm:$0xff] %v4901_v22  ;;  %5644 = vst [vmem:[#allocation11_spill] sm:$0xff] %v4903_v16  ;;  %v3761_v9 = vpop.f32.mrb[57].mxu0  ;;  %v3881_v61 = vpop.f32.mrb[57].mxu1 }
 0x15b   : > { %v4908_v28 = vpop.f32.mrb[58].mxu0  ;;  %v4911_v10 = vpop.f32.mrb[58].mxu1 }
 0x15c   : > { %5645 = vst [vmem:[#allocation12_spill] sm:$0xff] %v4908_v28  ;;  %5646 = vst [vmem:[#allocation13_spill] sm:$0xff] %v4911_v10  ;;  %v3762_v52 = vpop.f32.mrb[59].mxu0  ;;  %v3882_v34 = vpop.f32.mrb[59].mxu1 }
 0x15d   : > { %v4275_v52 = vld [vmem:[%s4503_s13 + $0x68] sm:$0xff]  }
 0x15e   : > { %3992 = vmatmul.mubr.msk.bf16.gmra.mrb[164].mxu0 %vm538_vm1, %v4273_v4  ;;  %4112 = vmatmul.mubr.msk.bf16.gmra.mrb[164].mxu1 %vm538_vm1, %v4274_v32  ;;  %v4276_v32 = vld [vmem:[%s4509_s16 + $0x68] sm:$0xff]  }
 0x15f   : > { %3995 = vmatprep.mubr.msk.bf16.mxu0 %vm4317_vm0, %v5642_v40  ;;  %4115 = vmatprep.mubr.msk.bf16.mxu1 %vm4317_vm0, %v5642_v40 }
 0x161   : > { %v4921_v61 = vpop.f32.mrb[60].mxu0  ;;  %v4923_v9 = vpop.f32.mrb[60].mxu1 }
 0x162   : > { %5647 = vst [vmem:[#allocation14_spill] sm:$0xff] %v4921_v61  ;;  %5648 = vst [vmem:[#allocation15_spill] sm:$0xff] %v4923_v9  ;;  %v3765_v1 = vpop.f32.mrb[61].mxu0  ;;  %v3885_v46 = vpop.f32.mrb[61].mxu1 }
 0x163   : > { %v4928_v4 = vpop.f32.mrb[62].mxu0  ;;  %v4931_v10 = vpop.f32.mrb[62].mxu1 }
 0x164   : > { %5649 = vst [vmem:[#allocation16_spill] sm:$0xff] %v4928_v4  ;;  %5650 = vst [vmem:[#allocation17_spill] sm:$0xff] %v4931_v10  ;;  %v3766_v28 = vpop.f32.mrb[63].mxu0  ;;  %v3886_v22 = vpop.f32.mrb[63].mxu1 }
 0x165   : > { %v4277_v28 = vld [vmem:[%s4503_s13 + $0x70] sm:$0xff]  }
 0x166   : > { %3996 = vmatmul.mubr.msk.bf16.gmra.mrb[168].mxu0 %vm538_vm1, %v4275_v52  ;;  %4116 = vmatmul.mubr.msk.bf16.gmra.mrb[168].mxu1 %vm538_vm1, %v4276_v32  ;;  %v4278_v32 = vld [vmem:[%s4509_s16 + $0x70] sm:$0xff]  }
 0x167   : > { %3999 = vmatprep.mubr.msk.bf16.mxu0 %vm4317_vm0, %v5642_v40  ;;  %4119 = vmatprep.mubr.msk.bf16.mxu1 %vm4317_vm0, %v5642_v40 }
 0x169   : > { %v4941_v46 = vpop.f32.mrb[64].mxu0  ;;  %v4943_v1 = vpop.f32.mrb[64].mxu1 }
 0x16a   : > { %5651 = vst [vmem:[#allocation18_spill] sm:$0xff] %v4941_v46  ;;  %5652 = vst [vmem:[#allocation19_spill] sm:$0xff] %v4943_v1  ;;  %v3769_v34 = vpop.f32.mrb[65].mxu0  ;;  %v3889_v16 = vpop.f32.mrb[65].mxu1 }
 0x16b   : > { %v4948_v52 = vpop.f32.mrb[66].mxu0  ;;  %v4951_v10 = vpop.f32.mrb[66].mxu1 }
 0x16c   : > { %5653 = vst [vmem:[#allocation20_spill] sm:$0xff] %v4948_v52  ;;  %5654 = vst [vmem:[#allocation21_spill] sm:$0xff] %v4951_v10  ;;  %v3770_v4 = vpop.f32.mrb[67].mxu0  ;;  %v3890_v61 = vpop.f32.mrb[67].mxu1 }
 0x16d   : > { %v4279_v4 = vld [vmem:[%s4503_s13 + $0x78] sm:$0xff]  }
 0x16e   : > { %4000 = vmatmul.mubr.msk.bf16.gmra.mrb[172].mxu0 %vm538_vm1, %v4277_v28  ;;  %4120 = vmatmul.mubr.msk.bf16.gmra.mrb[172].mxu1 %vm538_vm1, %v4278_v32  ;;  %v4280_v32 = vld [vmem:[%s4509_s16 + $0x78] sm:$0xff]  }
 0x16f   : > { %4003 = vmatprep.mubr.msk.bf16.mxu0 %vm4317_vm0, %v5642_v40  ;;  %4123 = vmatprep.mubr.msk.bf16.mxu1 %vm4317_vm0, %v5642_v40 }
 0x171   : > { %v4961_v16 = vpop.f32.mrb[68].mxu0  ;;  %v4963_v34 = vpop.f32.mrb[68].mxu1 }
 0x172   : > { %5655 = vst [vmem:[#allocation22_spill] sm:$0xff] %v4961_v16  ;;  %5656 = vst [vmem:[#allocation23_spill] sm:$0xff] %v4963_v34  ;;  %v3773_v22 = vpop.f32.mrb[69].mxu0  ;;  %v3893_v9 = vpop.f32.mrb[69].mxu1 }
 0x173   : > { %v4968_v28 = vpop.f32.mrb[70].mxu0  ;;  %v4971_v10 = vpop.f32.mrb[70].mxu1 }
 0x174   : > { %5657 = vst [vmem:[#allocation24_spill] sm:$0xff] %v4968_v28  ;;  %5658 = vst [vmem:[#allocation25_spill] sm:$0xff] %v4971_v10  ;;  %v3774_v52 = vpop.f32.mrb[71].mxu0  ;;  %v3894_v46 = vpop.f32.mrb[71].mxu1 }
 0x175   : > { %v4281_v52 = vld [vmem:[%s4503_s13 + $0x80] sm:$0xff]  }
 0x176   : > { %4004 = vmatmul.mubr.msk.bf16.gmra.mrb[176].mxu0 %vm538_vm1, %v4279_v4  ;;  %4124 = vmatmul.mubr.msk.bf16.gmra.mrb[176].mxu1 %vm538_vm1, %v4280_v32  ;;  %v4282_v32 = vld [vmem:[%s4509_s16 + $0x80] sm:$0xff]  }
 0x177   : > { %4007 = vmatprep.mubr.msk.bf16.mxu0 %vm4317_vm0, %v5642_v40  ;;  %4127 = vmatprep.mubr.msk.bf16.mxu1 %vm4317_vm0, %v5642_v40 }
 0x179   : > { %v4981_v9 = vpop.f32.mrb[72].mxu0  ;;  %v4983_v22 = vpop.f32.mrb[72].mxu1 }
 0x17a   : > { %5659 = vst [vmem:[#allocation26_spill] sm:$0xff] %v4981_v9  ;;  %5660 = vst [vmem:[#allocation27_spill] sm:$0xff] %v4983_v22  ;;  %v3777_v61 = vpop.f32.mrb[73].mxu0  ;;  %v3897_v1 = vpop.f32.mrb[73].mxu1 }
 0x17b   : > { %v4988_v4 = vpop.f32.mrb[74].mxu0  ;;  %v4991_v10 = vpop.f32.mrb[74].mxu1 }
 0x17c   : > { %5661 = vst [vmem:[#allocation28_spill] sm:$0xff] %v4988_v4  ;;  %5662 = vst [vmem:[#allocation29_spill] sm:$0xff] %v4991_v10  ;;  %v3778_v28 = vpop.f32.mrb[75].mxu0  ;;  %v3898_v16 = vpop.f32.mrb[75].mxu1 }
 0x17d   : > { %v4283_v28 = vld [vmem:[%s4503_s13 + $0x88] sm:$0xff]  }
 0x17e   : > { %4008 = vmatmul.mubr.msk.bf16.gmra.mrb[180].mxu0 %vm538_vm1, %v4281_v52  ;;  %4128 = vmatmul.mubr.msk.bf16.gmra.mrb[180].mxu1 %vm538_vm1, %v4282_v32  ;;  %v4284_v32 = vld [vmem:[%s4509_s16 + $0x88] sm:$0xff]  }
 0x17f   : > { %4011 = vmatprep.mubr.msk.bf16.mxu0 %vm4317_vm0, %v5642_v40  ;;  %4131 = vmatprep.mubr.msk.bf16.mxu1 %vm4317_vm0, %v5642_v40 }
 0x181   : > { %v5001_v1 = vpop.f32.mrb[76].mxu0  ;;  %v5003_v61 = vpop.f32.mrb[76].mxu1 }
 0x182   : > { %5663 = vst [vmem:[#allocation30_spill] sm:$0xff] %v5001_v1  ;;  %5664 = vst [vmem:[#allocation31_spill] sm:$0xff] %v5003_v61  ;;  %v3781_v46 = vpop.f32.mrb[77].mxu0  ;;  %v3901_v34 = vpop.f32.mrb[77].mxu1 }
 0x183   : > { %v5008_v52 = vpop.f32.mrb[78].mxu0  ;;  %v5011_v10 = vpop.f32.mrb[78].mxu1 }
 0x184   : > { %5665 = vst [vmem:[#allocation32_spill] sm:$0xff] %v5008_v52  ;;  %5666 = vst [vmem:[#allocation33_spill] sm:$0xff] %v5011_v10  ;;  %v3782_v4 = vpop.f32.mrb[79].mxu0  ;;  %v3902_v9 = vpop.f32.mrb[79].mxu1 }
 0x185   : > { %v4285_v4 = vld [vmem:[%s4503_s13 + $0x90] sm:$0xff]  }
 0x186   : > { %4012 = vmatmul.mubr.msk.bf16.gmra.mrb[184].mxu0 %vm538_vm1, %v4283_v28  ;;  %4132 = vmatmul.mubr.msk.bf16.gmra.mrb[184].mxu1 %vm538_vm1, %v4284_v32  ;;  %v4286_v32 = vld [vmem:[%s4509_s16 + $0x90] sm:$0xff]  }
 0x187   : > { %4015 = vmatprep.mubr.msk.bf16.mxu0 %vm4317_vm0, %v5642_v40  ;;  %4135 = vmatprep.mubr.msk.bf16.mxu1 %vm4317_vm0, %v5642_v40 }
 0x189   : > { %v5021_v34 = vpop.f32.mrb[80].mxu0  ;;  %v5023_v46 = vpop.f32.mrb[80].mxu1 }
 0x18a   : > { %5667 = vst [vmem:[#allocation34_spill] sm:$0xff] %v5021_v34  ;;  %5668 = vst [vmem:[#allocation35_spill] sm:$0xff] %v5023_v46  ;;  %v3785_v16 = vpop.f32.mrb[81].mxu0  ;;  %v3905_v22 = vpop.f32.mrb[81].mxu1 }
 0x18b   : > { %v5028_v28 = vpop.f32.mrb[82].mxu0  ;;  %v5031_v10 = vpop.f32.mrb[82].mxu1 }
 0x18c   : > { %5669 = vst [vmem:[#allocation36_spill] sm:$0xff] %v5028_v28  ;;  %5670 = vst [vmem:[#allocation37_spill] sm:$0xff] %v5031_v10  ;;  %v3786_v52 = vpop.f32.mrb[83].mxu0  ;;  %v3906_v1 = vpop.f32.mrb[83].mxu1 }
 0x18d   : > { %v4287_v52 = vld [vmem:[%s4503_s13 + $0x98] sm:$0xff]  }
 0x18e   : > { %4016 = vmatmul.mubr.msk.bf16.gmra.mrb[188].mxu0 %vm538_vm1, %v4285_v4  ;;  %4136 = vmatmul.mubr.msk.bf16.gmra.mrb[188].mxu1 %vm538_vm1, %v4286_v32  ;;  %v4288_v32 = vld [vmem:[%s4509_s16 + $0x98] sm:$0xff]  }
 0x18f   : > { %4019 = vmatprep.mubr.msk.bf16.mxu0 %vm4317_vm0, %v5642_v40  ;;  %4139 = vmatprep.mubr.msk.bf16.mxu1 %vm4317_vm0, %v5642_v40 }
 0x191   : > { %v5041_v22 = vpop.f32.mrb[84].mxu0  ;;  %v5043_v16 = vpop.f32.mrb[84].mxu1 }
 0x192   : > { %5671 = vst [vmem:[#allocation38_spill] sm:$0xff] %v5041_v22  ;;  %5672 = vst [vmem:[#allocation39_spill] sm:$0xff] %v5043_v16  ;;  %v3789_v9 = vpop.f32.mrb[85].mxu0  ;;  %v3909_v61 = vpop.f32.mrb[85].mxu1 }
 0x193   : > { %v5048_v4 = vpop.f32.mrb[86].mxu0  ;;  %v5051_v10 = vpop.f32.mrb[86].mxu1 }
 0x194   : > { %5673 = vst [vmem:[#allocation40_spill] sm:$0xff] %v5048_v4  ;;  %5674 = vst [vmem:[#allocation41_spill] sm:$0xff] %v5051_v10  ;;  %v3790_v28 = vpop.f32.mrb[87].mxu0  ;;  %v3910_v34 = vpop.f32.mrb[87].mxu1 }
 0x195   : > { %v4289_v28 = vld [vmem:[%s4503_s13 + $0xa0] sm:$0xff]  }
 0x196   : > { %4020 = vmatmul.mubr.msk.bf16.gmra.mrb[192].mxu0 %vm538_vm1, %v4287_v52  ;;  %4140 = vmatmul.mubr.msk.bf16.gmra.mrb[192].mxu1 %vm538_vm1, %v4288_v32  ;;  %v4290_v32 = vld [vmem:[%s4509_s16 + $0xa0] sm:$0xff]  }
 0x197   : > { %4023 = vmatprep.mubr.msk.bf16.mxu0 %vm4317_vm0, %v5642_v40  ;;  %4143 = vmatprep.mubr.msk.bf16.mxu1 %vm4317_vm0, %v5642_v40 }
 0x199   : > { %v5061_v61 = vpop.f32.mrb[88].mxu0  ;;  %v5063_v9 = vpop.f32.mrb[88].mxu1 }
 0x19a   : > { %5675 = vst [vmem:[#allocation42_spill] sm:$0xff] %v5061_v61  ;;  %5676 = vst [vmem:[#allocation43_spill] sm:$0xff] %v5063_v9  ;;  %v3793_v1 = vpop.f32.mrb[89].mxu0  ;;  %v3913_v46 = vpop.f32.mrb[89].mxu1 }
 0x19b   : > { %v5068_v52 = vpop.f32.mrb[90].mxu0  ;;  %v5071_v10 = vpop.f32.mrb[90].mxu1 }
 0x19c   : > { %5677 = vst [vmem:[#allocation44_spill] sm:$0xff] %v5068_v52  ;;  %5678 = vst [vmem:[#allocation45_spill] sm:$0xff] %v5071_v10  ;;  %v3794_v4 = vpop.f32.mrb[91].mxu0  ;;  %v3914_v22 = vpop.f32.mrb[91].mxu1 }
 0x19d   : > { %v4291_v4 = vld [vmem:[%s4503_s13 + $0xa8] sm:$0xff]  }
 0x19e   : > { %4024 = vmatmul.mubr.msk.bf16.gmra.mrb[196].mxu0 %vm538_vm1, %v4289_v28  ;;  %4144 = vmatmul.mubr.msk.bf16.gmra.mrb[196].mxu1 %vm538_vm1, %v4290_v32  ;;  %v4292_v32 = vld [vmem:[%s4509_s16 + $0xa8] sm:$0xff]  }
 0x19f   : > { %4027 = vmatprep.mubr.msk.bf16.mxu0 %vm4317_vm0, %v5642_v40  ;;  %4147 = vmatprep.mubr.msk.bf16.mxu1 %vm4317_vm0, %v5642_v40 }
 0x1a1   : > { %v5081_v46 = vpop.f32.mrb[92].mxu0  ;;  %v5083_v1 = vpop.f32.mrb[92].mxu1 }
 0x1a2   : > { %5679 = vst [vmem:[#allocation46_spill] sm:$0xff] %v5081_v46  ;;  %5680 = vst [vmem:[#allocation47_spill] sm:$0xff] %v5083_v1  ;;  %v3797_v34 = vpop.f32.mrb[93].mxu0  ;;  %v3917_v16 = vpop.f32.mrb[93].mxu1 }
 0x1a3   : > { %v5088_v28 = vpop.f32.mrb[94].mxu0  ;;  %v5091_v10 = vpop.f32.mrb[94].mxu1 }
 0x1a4   : > { %5681 = vst [vmem:[#allocation48_spill] sm:$0xff] %v5088_v28  ;;  %5682 = vst [vmem:[#allocation49_spill] sm:$0xff] %v5091_v10  ;;  %v3798_v52 = vpop.f32.mrb[95].mxu0  ;;  %v3918_v61 = vpop.f32.mrb[95].mxu1 }
 0x1a5   : > { %v4293_v52 = vld [vmem:[%s4503_s13 + $0xb0] sm:$0xff]  }
 0x1a6   : > { %4028 = vmatmul.mubr.msk.bf16.gmra.mrb[200].mxu0 %vm538_vm1, %v4291_v4  ;;  %4148 = vmatmul.mubr.msk.bf16.gmra.mrb[200].mxu1 %vm538_vm1, %v4292_v32  ;;  %v4294_v32 = vld [vmem:[%s4509_s16 + $0xb0] sm:$0xff]  }
 0x1a7   : > { %4031 = vmatprep.mubr.msk.bf16.mxu0 %vm4317_vm0, %v5642_v40  ;;  %4151 = vmatprep.mubr.msk.bf16.mxu1 %vm4317_vm0, %v5642_v40 }
 0x1a9   : > { %v5101_v16 = vpop.f32.mrb[96].mxu0  ;;  %v5103_v34 = vpop.f32.mrb[96].mxu1 }
 0x1aa   : > { %5683 = vst [vmem:[#allocation50_spill] sm:$0xff] %v5101_v16  ;;  %5684 = vst [vmem:[#allocation51_spill] sm:$0xff] %v5103_v34  ;;  %v3801_v22 = vpop.f32.mrb[97].mxu0  ;;  %v3921_v9 = vpop.f32.mrb[97].mxu1 }
 0x1ab   : > { %v5108_v4 = vpop.f32.mrb[98].mxu0  ;;  %v5111_v10 = vpop.f32.mrb[98].mxu1 }
 0x1ac   : > { %5685 = vst [vmem:[#allocation52_spill] sm:$0xff] %v5108_v4  ;;  %5686 = vst [vmem:[#allocation53_spill] sm:$0xff] %v5111_v10  ;;  %v3802_v28 = vpop.f32.mrb[99].mxu0  ;;  %v3922_v46 = vpop.f32.mrb[99].mxu1 }
 0x1ad   : > { %v4295_v28 = vld [vmem:[%s4503_s13 + $0xb8] sm:$0xff]  }
 0x1ae   : > { %4032 = vmatmul.mubr.msk.bf16.gmra.mrb[204].mxu0 %vm538_vm1, %v4293_v52  ;;  %4152 = vmatmul.mubr.msk.bf16.gmra.mrb[204].mxu1 %vm538_vm1, %v4294_v32  ;;  %v4296_v32 = vld [vmem:[%s4509_s16 + $0xb8] sm:$0xff]  }
 0x1af   : > { %4035 = vmatprep.mubr.msk.bf16.mxu0 %vm4317_vm0, %v5642_v40  ;;  %4155 = vmatprep.mubr.msk.bf16.mxu1 %vm4317_vm0, %v5642_v40 }
 0x1b1   : > { %v5121_v9 = vpop.f32.mrb[100].mxu0  ;;  %v5123_v22 = vpop.f32.mrb[100].mxu1 }
 0x1b2   : > { %5687 = vst [vmem:[#allocation54_spill] sm:$0xff] %v5121_v9  ;;  %5688 = vst [vmem:[#allocation55_spill] sm:$0xff] %v5123_v22  ;;  %v3805_v61 = vpop.f32.mrb[101].mxu0  ;;  %v3925_v1 = vpop.f32.mrb[101].mxu1 }
 0x1b3   : > { %v5128_v52 = vpop.f32.mrb[102].mxu0  ;;  %v5131_v10 = vpop.f32.mrb[102].mxu1 }
 0x1b4   : > { %5689 = vst [vmem:[#allocation56_spill] sm:$0xff] %v5128_v52  ;;  %5690 = vst [vmem:[#allocation57_spill] sm:$0xff] %v5131_v10  ;;  %v3806_v4 = vpop.f32.mrb[103].mxu0  ;;  %v3926_v16 = vpop.f32.mrb[103].mxu1 }
 0x1b5   : > { %v4297_v4 = vld [vmem:[%s4503_s13 + $0xc0] sm:$0xff]  }
 0x1b6   : > { %4036 = vmatmul.mubr.msk.bf16.gmra.mrb[208].mxu0 %vm538_vm1, %v4295_v28  ;;  %4156 = vmatmul.mubr.msk.bf16.gmra.mrb[208].mxu1 %vm538_vm1, %v4296_v32  ;;  %v4298_v32 = vld [vmem:[%s4509_s16 + $0xc0] sm:$0xff]  }
 0x1b7   : > { %4039 = vmatprep.mubr.msk.bf16.mxu0 %vm4317_vm0, %v5642_v40  ;;  %4159 = vmatprep.mubr.msk.bf16.mxu1 %vm4317_vm0, %v5642_v40 }
 0x1b9   : > { %v5141_v1 = vpop.f32.mrb[104].mxu0  ;;  %v5143_v61 = vpop.f32.mrb[104].mxu1 }
 0x1ba   : > { %5691 = vst [vmem:[#allocation58_spill] sm:$0xff] %v5141_v1  ;;  %5692 = vst [vmem:[#allocation59_spill] sm:$0xff] %v5143_v61  ;;  %v3809_v46 = vpop.f32.mrb[105].mxu0  ;;  %v3929_v34 = vpop.f32.mrb[105].mxu1 }
 0x1bb   : > { %v5148_v28 = vpop.f32.mrb[106].mxu0  ;;  %v5151_v10 = vpop.f32.mrb[106].mxu1 }
 0x1bc   : > { %5693 = vst [vmem:[#allocation60_spill] sm:$0xff] %v5148_v28  ;;  %5694 = vst [vmem:[#allocation61_spill] sm:$0xff] %v5151_v10  ;;  %v3810_v52 = vpop.f32.mrb[107].mxu0  ;;  %v3930_v9 = vpop.f32.mrb[107].mxu1 }
 0x1bd   : > { %v4299_v52 = vld [vmem:[%s4503_s13 + $0xc8] sm:$0xff]  }
 0x1be   : > { %4040 = vmatmul.mubr.msk.bf16.gmra.mrb[212].mxu0 %vm538_vm1, %v4297_v4  ;;  %4160 = vmatmul.mubr.msk.bf16.gmra.mrb[212].mxu1 %vm538_vm1, %v4298_v32  ;;  %v4300_v32 = vld [vmem:[%s4509_s16 + $0xc8] sm:$0xff]  }
 0x1bf   : > { %4043 = vmatprep.mubr.msk.bf16.mxu0 %vm4317_vm0, %v5642_v40  ;;  %4163 = vmatprep.mubr.msk.bf16.mxu1 %vm4317_vm0, %v5642_v40 }
 0x1c1   : > { %v5161_v34 = vpop.f32.mrb[108].mxu0  ;;  %v5163_v46 = vpop.f32.mrb[108].mxu1 }
 0x1c2   : > { %5695 = vst [vmem:[#allocation62_spill] sm:$0xff] %v5161_v34  ;;  %5696 = vst [vmem:[#allocation63_spill] sm:$0xff] %v5163_v46  ;;  %v3813_v16 = vpop.f32.mrb[109].mxu0  ;;  %v3933_v22 = vpop.f32.mrb[109].mxu1 }
 0x1c3   : > { %v5168_v4 = vpop.f32.mrb[110].mxu0  ;;  %v5171_v10 = vpop.f32.mrb[110].mxu1 }
 0x1c4   : > { %5697 = vst [vmem:[#allocation64_spill] sm:$0xff] %v5168_v4  ;;  %5698 = vst [vmem:[#allocation65_spill] sm:$0xff] %v5171_v10  ;;  %v3814_v28 = vpop.f32.mrb[111].mxu0  ;;  %v3934_v1 = vpop.f32.mrb[111].mxu1 }
 0x1c5   : > { %v4301_v28 = vld [vmem:[%s4503_s13 + $0xd0] sm:$0xff]  }
 0x1c6   : > { %4044 = vmatmul.mubr.msk.bf16.gmra.mrb[216].mxu0 %vm538_vm1, %v4299_v52  ;;  %4164 = vmatmul.mubr.msk.bf16.gmra.mrb[216].mxu1 %vm538_vm1, %v4300_v32  ;;  %v4302_v32 = vld [vmem:[%s4509_s16 + $0xd0] sm:$0xff]  }
 0x1c7   : > { %4047 = vmatprep.mubr.msk.bf16.mxu0 %vm4317_vm0, %v5642_v40  ;;  %4167 = vmatprep.mubr.msk.bf16.mxu1 %vm4317_vm0, %v5642_v40 }
 0x1c9   : > { %v5181_v22 = vpop.f32.mrb[112].mxu0  ;;  %v5183_v16 = vpop.f32.mrb[112].mxu1 }
 0x1ca   : > { %5699 = vst [vmem:[#allocation66_spill] sm:$0xff] %v5181_v22  ;;  %5700 = vst [vmem:[#allocation67_spill] sm:$0xff] %v5183_v16  ;;  %v3817_v9 = vpop.f32.mrb[113].mxu0  ;;  %v3937_v61 = vpop.f32.mrb[113].mxu1 }
 0x1cb   : > { %v887_v52 = vpop.f32.mrb[114].mxu0  ;;  %v1438_v10 = vpop.f32.mrb[114].mxu1  ;;  %v4303_v61 = vld [vmem:[%s4503_s13 + $0xd8] sm:$0xff]  }
 0x1cc   : > { %v3818_v4 = vpop.f32.mrb[115].mxu0  ;;  %v3938_v46 = vpop.f32.mrb[115].mxu1  ;;  %v4304_v10 = vld [vmem:[%s4509_s16 + $0xd8] sm:$0xff]  }
 0x1cd   : > { %v5200_v46 = vld [vmem:[%s5564_s5] ss:$0 sm:$0xff] }
 0x1ce   : > { %4048 = vmatmul.mubr.msk.bf16.gmra.mrb[220].mxu0 %vm538_vm1, %v4301_v28  ;;  %4168 = vmatmul.mubr.msk.bf16.gmra.mrb[220].mxu1 %vm538_vm1, %v4302_v32  ;;  %v5701_v32 = vmax.f32 %v4621_v57, %v4623_v58 }
 0x1cf   : > { %4051 = vmatprep.mubr.msk.bf16.mxu0 %vm4317_vm0, %v5642_v40  ;;  %4171 = vmatprep.mubr.msk.bf16.mxu1 %vm4317_vm0, %v5642_v40 }
 0x1d1   : > { %v1762_v9 = vpop.f32.mrb[116].mxu0  ;;  %v2313_v34 = vpop.f32.mrb[116].mxu1 }
 0x1d2   : > { %v3945_v1 = vpop.f32.mrb[117].mxu0  ;;  %v2600_v52 = vmax.f32 %v1762_v9, %v2313_v34  ;;  %v4065_v16 = vpop.f32.mrb[117].mxu1 }
 0x1d3   : > { %v1765_v22 = vpop.f32.mrb[118].mxu0  ;;  %v2316_v4 = vpop.f32.mrb[118].mxu1  ;;  %v5702_v16 = vmax.f32 %v4628_v63, %v4631_v2 }
 0x1d4   : > { %v3946_v28 = vpop.f32.mrb[119].mxu0  ;;  %v2657_v33 = vmax.f32 %v5701_v32, %v2600_v52  ;;  %v2601_v59 = vmax.f32 %v1765_v22, %v2316_v4  ;;  %v4066_v1 = vpop.f32.mrb[119].mxu1  ;;  %v4306_v4 = vld [vmem:[%s4509_s16 + $0xe0] ss:$0 sps:$4 sm:$0xff]  }
 0x1d6   : > { %4052 = vmatmul.mubr.msk.bf16.gmra.mrb[224].mxu0 %vm538_vm1, %v4303_v61  ;;  %v2721_v34 = vadd.f32 %v5200_v46, %v2657_v33  ;;  %v2658_v9 = vmax.f32 %v5702_v16, %v2601_v59  ;;  %4172 = vmatmul.mubr.msk.bf16.gmra.mrb[224].mxu1 %vm538_vm1, %v4304_v10  ;;  %v4305_v59 = vld [vmem:[%s4503_s13 + $0xe0] ss:$0 sps:$4 sm:$0xff]  }
 0x1d7   : > { %4055 = vmatprep.mubr.msk.bf16.mxu0 %vm4317_vm0, %v5642_v40  ;;  %4175 = vmatprep.mubr.msk.bf16.mxu1 %vm4317_vm0, %v5642_v40 }
 0x1d8   : > { %v2778_v57 = vmax.f32 %v2721_v34, 0.0  ;;  %v2722_v58 = vadd.f32 %v5200_v46, %v2658_v9  ;;  %v5703_v34 = vmax.f32 %v4641_v6, %v4643_v7 }
 0x1d9   : > { %v1770_v22 = vpop.f32.mrb[120].mxu0  ;;  %v2321_v63 = vpop.f32.mrb[120].mxu1 }
 0x1da   : > { %v3949_v2 = vpop.f32.mrb[121].mxu0  ;;  %v3518_v33 = vpack.c.bf16 %v2778_v57, %v2778_v57  ;;  %v2779_v61 = vmax.f32 %v2722_v58, 0.0  ;;  %v2602_v52 = vmax.f32 %v1770_v22, %v2321_v63  ;;  %v4069_v10 = vpop.f32.mrb[121].mxu1  ;;  %v5704_v58 = vmax.f32 %v4648_v12, %v4651_v14 }
 0x1db   : > { %v1773_v40 = vpop.f32.mrb[122].mxu0  ;;  %v2324_v28 = vpop.f32.mrb[122].mxu1  ;;  %v5705_v14 = vmax.f32 %v4661_v18, %v4663_v19 }
 0x1dc   : > { %v3950_v32 = vpop.f32.mrb[123].mxu0  ;;  %3065 = vst.msk [vmem:[%s5220_s22] sm:$0xf] %vm3064_vm2, %v3518_v33  ;;  %v3519_v1 = vpack.c.bf16 %v2779_v61, %v2779_v61  ;;  %v2659_v16 = vmax.f32 %v5703_v34, %v2602_v52  ;;  %v2603_v9 = vmax.f32 %v1773_v40, %v2324_v28  ;;  %v4070_v21 = vpop.f32.mrb[123].mxu1 }
 0x1de   : > { %4056 = vmatmul.mubr.msk.bf16.gmra.mrb[228].mxu0 %vm538_vm1, %v4305_v59  ;;  %3066 = vst.msk [vmem:[%s5220_s22 + $0x4] sm:$0xf] %vm3064_vm2, %v3519_v1  ;;  %v2723_v57 = vadd.f32 %v5200_v46, %v2659_v16  ;;  %v2660_v22 = vmax.f32 %v5704_v58, %v2603_v9  ;;  %4176 = vmatmul.mubr.msk.bf16.gmra.mrb[228].mxu1 %vm538_vm1, %v4306_v4 }
 0x1df   : > { %v5706_v16 = vmax.f32 %v4668_v24, %v4671_v26  ;;  %v5707_v24 = vmax.f32 %v4681_v30, %v4683_v31 }
 0x1e0   : > { %v2780_v63 = vmax.f32 %v2723_v57, 0.0  ;;  %v2724_v2 = vadd.f32 %v5200_v46, %v2660_v22 }
 0x1e1   : > { %v1778_v6 = vpop.f32.mrb[124].mxu0  ;;  %v2329_v7 = vpop.f32.mrb[124].mxu1 }
 0x1e2   : > { %v3953_v21 = vpop.f32.mrb[125].mxu0  ;;  %v3520_v33 = vpack.c.bf16 %v2780_v63, %v2780_v63  ;;  %v2781_v59 = vmax.f32 %v2724_v2, 0.0  ;;  %v2604_v61 = vmax.f32 %v1778_v6, %v2329_v7  ;;  %v4073_v52 = vpop.f32.mrb[125].mxu1 }
 0x1e3   : > { %v1781_v10 = vpop.f32.mrb[126].mxu0  ;;  %v2332_v40 = vpop.f32.mrb[126].mxu1 }
 0x1e4   : > { %v3954_v28 = vpop.f32.mrb[127].mxu0  ;;  %3067 = vst.msk [vmem:[%s5220_s22 + $0x8] sm:$0xf] %vm3064_vm2, %v3520_v33  ;;  %v3521_v12 = vpack.c.bf16 %v2781_v59, %v2781_v59  ;;  %v2661_v4 = vmax.f32 %v5705_v14, %v2604_v61  ;;  %v2605_v32 = vmax.f32 %v1781_v10, %v2332_v40  ;;  %v4074_v1 = vpop.f32.mrb[127].mxu1 }
 0x1e5   : > { %v5708_v28 = vmax.f32 %v4688_v36, %v4691_v38  ;;  %v5709_v36 = vmax.f32 %v4701_v42, %v4703_v43 }
 0x1e6   : > { %3068 = vst.msk [vmem:[%s5220_s22 + $0xc] sm:$0xf] %vm3064_vm2, %v3521_v12  ;;  %v2725_v34 = vadd.f32 %v5200_v46, %v2661_v4  ;;  %v2662_v9 = vmax.f32 %v5706_v16, %v2605_v32 }
 0x1e8   : > { %v2782_v57 = vmax.f32 %v2725_v34, 0.0  ;;  %v2726_v58 = vadd.f32 %v5200_v46, %v2662_v9 }
 0x1e9   : > { %v1786_v22 = vpop.f32.mrb[128].mxu0  ;;  %v2337_v63 = vpop.f32.mrb[128].mxu1 }
 0x1ea   : > { %v3957_v2 = vpop.f32.mrb[129].mxu0  ;;  %v3522_v18 = vpack.c.bf16 %v2782_v57, %v2782_v57  ;;  %v2783_v19 = vmax.f32 %v2726_v58, 0.0  ;;  %v2606_v6 = vmax.f32 %v1786_v22, %v2337_v63  ;;  %v4077_v7 = vpop.f32.mrb[129].mxu1 }
 0x1eb   : > { %v1789_v21 = vpop.f32.mrb[130].mxu0  ;;  %v2340_v33 = vpop.f32.mrb[130].mxu1 }
 0x1ec   : > { %v3958_v59 = vpop.f32.mrb[131].mxu0  ;;  %3069 = vst.msk [vmem:[%s5220_s22 + $0x10] sm:$0xf] %vm3064_vm2, %v3522_v18  ;;  %v3523_v61 = vpack.c.bf16 %v2783_v19, %v2783_v19  ;;  %v2663_v26 = vmax.f32 %v5707_v24, %v2606_v6  ;;  %v2607_v52 = vmax.f32 %v1789_v21, %v2340_v33  ;;  %v4078_v10 = vpop.f32.mrb[131].mxu1  ;;  %v5710_v6 = vmax.f32 %v4708_v48, %v4711_v50 }
 0x1ed   : > { %v5711_v48 = vmax.f32 %v4721_v54, %v4723_v55 }
 0x1ee   : > { %3070 = vst.msk [vmem:[%s5220_s22 + $0x14] sm:$0xf] %vm3064_vm2, %v3523_v61  ;;  %v2727_v40 = vadd.f32 %v5200_v46, %v2663_v26  ;;  %v2664_v12 = vmax.f32 %v5708_v28, %v2607_v52 }
 0x1f0   : > { %v2784_v14 = vmax.f32 %v2727_v40, 0.0  ;;  %v2728_v4 = vadd.f32 %v5200_v46, %v2664_v12 }
 0x1f1   : > { %v1794_v32 = vpop.f32.mrb[132].mxu0  ;;  %v2345_v1 = vpop.f32.mrb[132].mxu1 }
 0x1f2   : > { %v3961_v34 = vpop.f32.mrb[133].mxu0  ;;  %v3524_v30 = vpack.c.bf16 %v2784_v14, %v2784_v14  ;;  %v2785_v31 = vmax.f32 %v2728_v4, 0.0  ;;  %v2608_v16 = vmax.f32 %v1794_v32, %v2345_v1  ;;  %v4081_v9 = vpop.f32.mrb[133].mxu1  ;;  %v5712_v1 = vmax.f32 %v4728_v0, %v4731_v5 }
 0x1f3   : > { %v1797_v57 = vpop.f32.mrb[134].mxu0  ;;  %v2348_v58 = vpop.f32.mrb[134].mxu1  ;;  %v5713_v0 = vmax.f32 %v4741_v13, %v4743_v15 }
 0x1f4   : > { %v3962_v22 = vpop.f32.mrb[135].mxu0  ;;  %3071 = vst.msk [vmem:[%s5220_s22 + $0x18] sm:$0xf] %vm3064_vm2, %v3524_v30  ;;  %v3525_v63 = vpack.c.bf16 %v2785_v31, %v2785_v31  ;;  %v2665_v38 = vmax.f32 %v5709_v36, %v2608_v16  ;;  %v2609_v2 = vmax.f32 %v1797_v57, %v2348_v58  ;;  %v4082_v18 = vpop.f32.mrb[135].mxu1 }
 0x1f6   : > { %3072 = vst.msk [vmem:[%s5220_s22 + $0x1c] sm:$0xf] %vm3064_vm2, %v3525_v63  ;;  %v2729_v19 = vadd.f32 %v5200_v46, %v2665_v38  ;;  %v2666_v7 = vmax.f32 %v5710_v6, %v2609_v2 }
 0x1f8   : > { %v2786_v21 = vmax.f32 %v2729_v19, 0.0  ;;  %v2730_v33 = vadd.f32 %v5200_v46, %v2666_v7  ;;  %v5714_v7 = vmax.f32 %v4748_v25, %v4751_v29  ;;  %v5715_v25 = vmax.f32 %v4761_v37, %v4763_v39 }
 0x1f9   : > { %v1802_v59 = vpop.f32.mrb[136].mxu0  ;;  %v2353_v61 = vpop.f32.mrb[136].mxu1 }
 0x1fa   : > { %v3965_v24 = vpop.f32.mrb[137].mxu0  ;;  %v3526_v42 = vpack.c.bf16 %v2786_v21, %v2786_v21  ;;  %v2787_v43 = vmax.f32 %v2730_v33, 0.0  ;;  %v2610_v26 = vmax.f32 %v1802_v59, %v2353_v61  ;;  %v4085_v52 = vpop.f32.mrb[137].mxu1 }
 0x1fb   : > { %v1805_v10 = vpop.f32.mrb[138].mxu0  ;;  %v2356_v40 = vpop.f32.mrb[138].mxu1 }
 0x1fc   : > { %v3966_v28 = vpop.f32.mrb[139].mxu0  ;;  %3073 = vst.msk [vmem:[%s5220_s22 + $0x20] sm:$0xf] %vm3064_vm2, %v3526_v42  ;;  %v3527_v12 = vpack.c.bf16 %v2787_v43, %v2787_v43  ;;  %v2667_v50 = vmax.f32 %v5711_v48, %v2610_v26  ;;  %v2611_v14 = vmax.f32 %v1805_v10, %v2356_v40  ;;  %v4086_v4 = vpop.f32.mrb[139].mxu1 }
 0x1fe   : > { %3074 = vst.msk [vmem:[%s5220_s22 + $0x24] sm:$0xf] %vm3064_vm2, %v3527_v12  ;;  %v2731_v32 = vadd.f32 %v5200_v46, %v2667_v50  ;;  %v2668_v34 = vmax.f32 %v5712_v1, %v2611_v14  ;;  %v5716_v14 = vmax.f32 %v4768_v49, %v4771_v53  ;;  %v5717_v49 = vmax.f32 %v4781_v3, %v4783_v8 }
 0x200   : > { %v2788_v30 = vmax.f32 %v2731_v32, 0.0  ;;  %v2732_v31 = vadd.f32 %v5200_v46, %v2668_v34 }
 0x201   : > { %v1810_v16 = vpop.f32.mrb[140].mxu0  ;;  %v2361_v9 = vpop.f32.mrb[140].mxu1 }
 0x202   : > { %v3969_v57 = vpop.f32.mrb[141].mxu0  ;;  %v3528_v54 = vpack.c.bf16 %v2788_v30, %v2788_v30  ;;  %v2789_v55 = vmax.f32 %v2732_v31, 0.0  ;;  %v2612_v58 = vmax.f32 %v1810_v16, %v2361_v9  ;;  %v4089_v22 = vpop.f32.mrb[141].mxu1 }
 0x203   : > { %v1813_v63 = vpop.f32.mrb[142].mxu0  ;;  %v2364_v36 = vpop.f32.mrb[142].mxu1 }
 0x204   : > { %v3970_v38 = vpop.f32.mrb[143].mxu0  ;;  %3075 = vst.msk [vmem:[%s5220_s22 + $0x28] sm:$0xf] %vm3064_vm2, %v3528_v54  ;;  %v3529_v2 = vpack.c.bf16 %v2789_v55, %v2789_v55  ;;  %v2669_v5 = vmax.f32 %v5713_v0, %v2612_v58  ;;  %v2613_v18 = vmax.f32 %v1813_v63, %v2364_v36  ;;  %v4090_v19 = vpop.f32.mrb[143].mxu1 }
 0x205   : > { %v5718_v38 = vmax.f32 %v4788_v27, %v4791_v35  ;;  %v5719_v27 = vmax.f32 %v4801_v51, %v4803_v56 }
 0x206   : > { %3076 = vst.msk [vmem:[%s5220_s22 + $0x2c] sm:$0xf] %vm3064_vm2, %v3529_v2  ;;  %v2733_v6 = vadd.f32 %v5200_v46, %v2669_v5  ;;  %v2670_v21 = vmax.f32 %v5714_v7, %v2613_v18 }
 0x208   : > { %v2790_v33 = vmax.f32 %v2733_v6, 0.0  ;;  %v2734_v59 = vadd.f32 %v5200_v46, %v2670_v21 }
 0x209   : > { %v1818_v61 = vpop.f32.mrb[144].mxu0  ;;  %v2369_v24 = vpop.f32.mrb[144].mxu1 }
 0x20a   : > { %v3973_v42 = vpop.f32.mrb[145].mxu0  ;;  %v3530_v13 = vpack.c.bf16 %v2790_v33, %v2790_v33  ;;  %v2791_v15 = vmax.f32 %v2734_v59, 0.0  ;;  %v2614_v43 = vmax.f32 %v1818_v61, %v2369_v24  ;;  %v4093_v26 = vpop.f32.mrb[145].mxu1 }
 0x20b   : > { %v1821_v52 = vpop.f32.mrb[146].mxu0  ;;  %v2372_v10 = vpop.f32.mrb[146].mxu1 }
 0x20c   : > { %v3974_v40 = vpop.f32.mrb[147].mxu0  ;;  %3077 = vst.msk [vmem:[%s5220_s22 + $0x30] sm:$0xf] %vm3064_vm2, %v3530_v13  ;;  %v3531_v28 = vpack.c.bf16 %v2791_v15, %v2791_v15  ;;  %v2671_v29 = vmax.f32 %v5715_v25, %v2614_v43  ;;  %v2615_v12 = vmax.f32 %v1821_v52, %v2372_v10  ;;  %v4094_v48 = vpop.f32.mrb[147].mxu1  ;;  %v5720_v43 = vmax.f32 %v4808_v17, %v4811_v47 }
 0x20d   : > { %v5721_v17 = vmax.f32 %v4821_v62, %v4823_v41 }
 0x20e   : > { %3078 = vst.msk [vmem:[%s5220_s22 + $0x34] sm:$0xf] %vm3064_vm2, %v3531_v28  ;;  %v2735_v50 = vadd.f32 %v5200_v46, %v2671_v29  ;;  %v2672_v4 = vmax.f32 %v5716_v14, %v2615_v12 }
 0x210   : > { %v2792_v32 = vmax.f32 %v2735_v50, 0.0  ;;  %v2736_v1 = vadd.f32 %v5200_v46, %v2672_v4 }
 0x211   : > { %v1826_v34 = vpop.f32.mrb[148].mxu0  ;;  %v2377_v30 = vpop.f32.mrb[148].mxu1 }
 0x212   : > { %v3977_v31 = vpop.f32.mrb[149].mxu0  ;;  %v3532_v37 = vpack.c.bf16 %v2792_v32, %v2792_v32  ;;  %v2793_v39 = vmax.f32 %v2736_v1, 0.0  ;;  %v2616_v16 = vmax.f32 %v1826_v34, %v2377_v30  ;;  %v4097_v9 = vpop.f32.mrb[149].mxu1  ;;  %v5722_v30 = vmax.f32 %v4828_v11, %v4831_v45 }
 0x213   : > { %v1829_v57 = vpop.f32.mrb[150].mxu0  ;;  %v2380_v54 = vpop.f32.mrb[150].mxu1  ;;  %v5723_v45 = vmax.f32 %v4841_v20, %v4843_v23 }
 0x214   : > { %v3978_v55 = vpop.f32.mrb[151].mxu0  ;;  %3079 = vst.msk [vmem:[%s5220_s22 + $0x38] sm:$0xf] %vm3064_vm2, %v3532_v37  ;;  %v3533_v58 = vpack.c.bf16 %v2793_v39, %v2793_v39  ;;  %v2673_v53 = vmax.f32 %v5717_v49, %v2616_v16  ;;  %v2617_v22 = vmax.f32 %v1829_v57, %v2380_v54  ;;  %v4098_v63 = vpop.f32.mrb[151].mxu1 }
 0x216   : > { %3080 = vst.msk [vmem:[%s5220_s22 + $0x3c] sm:$0xf] %vm3064_vm2, %v3533_v58  ;;  %v2737_v36 = vadd.f32 %v5200_v46, %v2673_v53  ;;  %v2674_v2 = vmax.f32 %v5718_v38, %v2617_v22 }
 0x218   : > { %v2794_v0 = vmax.f32 %v2737_v36, 0.0  ;;  %v2738_v5 = vadd.f32 %v5200_v46, %v2674_v2  ;;  %v5724_v2 = vmax.f32 %v4848_v44, %v4851_v60  ;;  %v5726_v60 = vld [vmem:[#allocation3_spill] sm:$0xff] }
 0x219   : > { %v1834_v18 = vpop.f32.mrb[152].mxu0  ;;  %v2385_v19 = vpop.f32.mrb[152].mxu1 }
 0x21a   : > { %v3981_v6 = vpop.f32.mrb[153].mxu0  ;;  %v3534_v3 = vpack.c.bf16 %v2794_v0, %v2794_v0  ;;  %v2795_v8 = vmax.f32 %v2738_v5, 0.0  ;;  %v2618_v7 = vmax.f32 %v1834_v18, %v2385_v19  ;;  %v4101_v21 = vpop.f32.mrb[153].mxu1 }
 0x21b   : > { %v1837_v33 = vpop.f32.mrb[154].mxu0  ;;  %v2388_v59 = vpop.f32.mrb[154].mxu1 }
 0x21c   : > { %v3982_v61 = vpop.f32.mrb[155].mxu0  ;;  %3081 = vst.msk [vmem:[%s5220_s22 + $0x40] sm:$0xf] %vm3064_vm2, %v3534_v3  ;;  %v3535_v24 = vpack.c.bf16 %v2795_v8, %v2795_v8  ;;  %v2675_v35 = vmax.f32 %v5719_v27, %v2618_v7  ;;  %v2619_v42 = vmax.f32 %v1837_v33, %v2388_v59  ;;  %v4102_v13 = vpop.f32.mrb[155].mxu1 }
 0x21e   : > { %3082 = vst.msk [vmem:[%s5220_s22 + $0x44] sm:$0xf] %vm3064_vm2, %v3535_v24  ;;  %v2739_v15 = vadd.f32 %v5200_v46, %v2675_v35  ;;  %v2676_v26 = vmax.f32 %v5720_v43, %v2619_v42  ;;  %v5725_v24 = vld [vmem:[#allocation2_spill] sm:$0xff]  ;;  %v5729_v43 = vld [vmem:[#allocation5_spill] sm:$0xff] }
 0x21f   : > { %v5727_v44 = vmax.f32 %v5725_v24, %v5726_v60 }
 0x220   : > { %v2796_v52 = vmax.f32 %v2739_v15, 0.0  ;;  %v2740_v10 = vadd.f32 %v5200_v46, %v2676_v26  ;;  %v5728_v15 = vld [vmem:[#allocation4_spill] sm:$0xff] }
 0x221   : > { %v1842_v40 = vpop.f32.mrb[156].mxu0  ;;  %v2393_v28 = vpop.f32.mrb[156].mxu1  ;;  %v5730_v26 = vmax.f32 %v5728_v15, %v5729_v43 }
 0x222   : > { %v3985_v25 = vpop.f32.mrb[157].mxu0  ;;  %v3536_v51 = vpack.c.bf16 %v2796_v52, %v2796_v52  ;;  %v2797_v56 = vmax.f32 %v2740_v10, 0.0  ;;  %v2620_v29 = vmax.f32 %v1842_v40, %v2393_v28  ;;  %v4105_v12 = vpop.f32.mrb[157].mxu1 }
 0x223   : > { %v1845_v48 = vpop.f32.mrb[158].mxu0  ;;  %v2396_v50 = vpop.f32.mrb[158].mxu1 }
 0x224   : > { %v3986_v14 = vpop.f32.mrb[159].mxu0  ;;  %3083 = vst.msk [vmem:[%s5220_s22 + $0x48] sm:$0xf] %vm3064_vm2, %v3536_v51  ;;  %v3537_v4 = vpack.c.bf16 %v2797_v56, %v2797_v56  ;;  %v2677_v47 = vmax.f32 %v5721_v17, %v2620_v29  ;;  %v2621_v32 = vmax.f32 %v1845_v48, %v2396_v50  ;;  %v4106_v1 = vpop.f32.mrb[159].mxu1 }
 0x226   : > { %3084 = vst.msk [vmem:[%s5220_s22 + $0x4c] sm:$0xf] %vm3064_vm2, %v3537_v4  ;;  %v2741_v34 = vadd.f32 %v5200_v46, %v2677_v47  ;;  %v2678_v31 = vmax.f32 %v5722_v30, %v2621_v32  ;;  %v5731_v47 = vld [vmem:[#allocation6_spill] sm:$0xff]  ;;  %v5732_v32 = vld [vmem:[#allocation7_spill] sm:$0xff] }
 0x227   : > { %v5733_v1 = vmax.f32 %v5731_v47, %v5732_v32 }
 0x228   : > { %v2798_v37 = vmax.f32 %v2741_v34, 0.0  ;;  %v2742_v39 = vadd.f32 %v5200_v46, %v2678_v31 }
 0x229   : > { %v1850_v16 = vpop.f32.mrb[160].mxu0  ;;  %v2401_v9 = vpop.f32.mrb[160].mxu1 }
 0x22a   : > { %v3989_v57 = vpop.f32.mrb[161].mxu0  ;;  %v3538_v62 = vpack.c.bf16 %v2798_v37, %v2798_v37  ;;  %v2799_v41 = vmax.f32 %v2742_v39, 0.0  ;;  %v2622_v54 = vmax.f32 %v1850_v16, %v2401_v9  ;;  %v4109_v55 = vpop.f32.mrb[161].mxu1  ;;  %v5734_v39 = vld [vmem:[#allocation8_spill] sm:$0xff]  ;;  %v5735_v16 = vld [vmem:[#allocation9_spill] sm:$0xff] }
 0x22b   : > { %v1853_v58 = vpop.f32.mrb[162].mxu0  ;;  %v2404_v49 = vpop.f32.mrb[162].mxu1  ;;  %v5736_v9 = vmax.f32 %v5734_v39, %v5735_v16 }
 0x22c   : > { %v3990_v53 = vpop.f32.mrb[163].mxu0  ;;  %3085 = vst.msk [vmem:[%s5220_s22 + $0x50] sm:$0xf] %vm3064_vm2, %v3538_v62  ;;  %v3539_v22 = vpack.c.bf16 %v2799_v41, %v2799_v41  ;;  %v2679_v11 = vmax.f32 %v5723_v45, %v2622_v54  ;;  %v2623_v63 = vmax.f32 %v1853_v58, %v2404_v49  ;;  %v4110_v36 = vpop.f32.mrb[163].mxu1 }
 0x22e   : > { %3086 = vst.msk [vmem:[%s5220_s22 + $0x54] sm:$0xf] %vm3064_vm2, %v3539_v22  ;;  %v2743_v38 = vadd.f32 %v5200_v46, %v2679_v11  ;;  %v2680_v0 = vmax.f32 %v5724_v2, %v2623_v63  ;;  %v5737_v2 = vld [vmem:[#allocation10_spill] sm:$0xff] }
 0x230   : > { %v2800_v5 = vmax.f32 %v2743_v38, 0.0  ;;  %v2744_v18 = vadd.f32 %v5200_v46, %v2680_v0  ;;  %v5738_v0 = vld [vmem:[#allocation11_spill] sm:$0xff] }
 0x231   : > { %v1858_v19 = vpop.f32.mrb[164].mxu0  ;;  %v2409_v6 = vpop.f32.mrb[164].mxu1 }
 0x232   : > { %v3993_v3 = vpop.f32.mrb[165].mxu0  ;;  %v3540_v20 = vpack.c.bf16 %v2800_v5, %v2800_v5  ;;  %v2801_v23 = vmax.f32 %v2744_v18, 0.0  ;;  %v2624_v8 = vmax.f32 %v1858_v19, %v2409_v6  ;;  %v4113_v7 = vpop.f32.mrb[165].mxu1  ;;  %v5739_v5 = vmax.f32 %v5737_v2, %v5738_v0 }
 0x233   : > { %v1861_v21 = vpop.f32.mrb[166].mxu0  ;;  %v2412_v33 = vpop.f32.mrb[166].mxu1 }
 0x234   : > { %v3994_v59 = vpop.f32.mrb[167].mxu0  ;;  %3087 = vst.msk [vmem:[%s5220_s22 + $0x58] sm:$0xf] %vm3064_vm2, %v3540_v20  ;;  %v3541_v61 = vpack.c.bf16 %v2801_v23, %v2801_v23  ;;  %v2681_v27 = vmax.f32 %v5727_v44, %v2624_v8  ;;  %v2625_v35 = vmax.f32 %v1861_v21, %v2412_v33  ;;  %v4114_v42 = vpop.f32.mrb[167].mxu1  ;;  %v5740_v20 = vld [vmem:[#allocation12_spill] sm:$0xff]  ;;  %v5741_v23 = vld [vmem:[#allocation13_spill] sm:$0xff] }
 0x235   : > { %v5742_v8 = vmax.f32 %v5740_v20, %v5741_v23 }
 0x236   : > { %3088 = vst.msk [vmem:[%s5220_s22 + $0x5c] sm:$0xf] %vm3064_vm2, %v3541_v61  ;;  %v2745_v13 = vadd.f32 %v5200_v46, %v2681_v27  ;;  %v2682_v52 = vmax.f32 %v5730_v26, %v2625_v35  ;;  %v5743_v26 = vld [vmem:[#allocation14_spill] sm:$0xff] }
 0x238   : > { %v2802_v10 = vmax.f32 %v2745_v13, 0.0  ;;  %v2746_v40 = vadd.f32 %v5200_v46, %v2682_v52  ;;  %v5744_v52 = vld [vmem:[#allocation15_spill] sm:$0xff] }
 0x239   : > { %v1866_v28 = vpop.f32.mrb[168].mxu0  ;;  %v2417_v25 = vpop.f32.mrb[168].mxu1 }
 0x23a   : > { %v3997_v51 = vpop.f32.mrb[169].mxu0  ;;  %v3542_v56 = vpack.c.bf16 %v2802_v10, %v2802_v10  ;;  %v2803_v29 = vmax.f32 %v2746_v40, 0.0  ;;  %v2626_v12 = vmax.f32 %v1866_v28, %v2417_v25  ;;  %v4117_v48 = vpop.f32.mrb[169].mxu1  ;;  %v5745_v10 = vmax.f32 %v5743_v26, %v5744_v52 }
 0x23b   : > { %v1869_v50 = vpop.f32.mrb[170].mxu0  ;;  %v2420_v14 = vpop.f32.mrb[170].mxu1 }
 0x23c   : > { %v3998_v4 = vpop.f32.mrb[171].mxu0  ;;  %3089 = vst.msk [vmem:[%s5220_s22 + $0x60] sm:$0xf] %vm3064_vm2, %v3542_v56  ;;  %v3543_v17 = vpack.c.bf16 %v2803_v29, %v2803_v29  ;;  %v2683_v34 = vmax.f32 %v5733_v1, %v2626_v12  ;;  %v2627_v30 = vmax.f32 %v1869_v50, %v2420_v14  ;;  %v4118_v31 = vpop.f32.mrb[171].mxu1  ;;  %v5746_v56 = vld [vmem:[#allocation16_spill] sm:$0xff]  ;;  %v5747_v29 = vld [vmem:[#allocation17_spill] sm:$0xff] }
 0x23d   : > { %v5748_v12 = vmax.f32 %v5746_v56, %v5747_v29 }
 0x23e   : > { %3090 = vst.msk [vmem:[%s5220_s22 + $0x64] sm:$0xf] %vm3064_vm2, %v3543_v17  ;;  %v2747_v37 = vadd.f32 %v5200_v46, %v2683_v34  ;;  %v2684_v57 = vmax.f32 %v5736_v9, %v2627_v30  ;;  %v5749_v9 = vld [vmem:[#allocation18_spill] sm:$0xff] }
 0x240   : > { %v2804_v62 = vmax.f32 %v2747_v37, 0.0  ;;  %v2748_v41 = vadd.f32 %v5200_v46, %v2684_v57  ;;  %v5750_v57 = vld [vmem:[#allocation19_spill] sm:$0xff] }
 0x241   : > { %v1874_v54 = vpop.f32.mrb[172].mxu0  ;;  %v2425_v55 = vpop.f32.mrb[172].mxu1 }
 0x242   : > { %v4001_v58 = vpop.f32.mrb[173].mxu0  ;;  %v3544_v49 = vpack.c.bf16 %v2804_v62, %v2804_v62  ;;  %v2805_v53 = vmax.f32 %v2748_v41, 0.0  ;;  %v2628_v22 = vmax.f32 %v1874_v54, %v2425_v55  ;;  %v4121_v45 = vpop.f32.mrb[173].mxu1  ;;  %v5751_v62 = vmax.f32 %v5749_v9, %v5750_v57 }
 0x243   : > { %v1877_v11 = vpop.f32.mrb[174].mxu0  ;;  %v2428_v63 = vpop.f32.mrb[174].mxu1 }
 0x244   : > { %v4002_v36 = vpop.f32.mrb[175].mxu0  ;;  %3091 = vst.msk [vmem:[%s5220_s22 + $0x68] sm:$0xf] %vm3064_vm2, %v3544_v49  ;;  %v3545_v38 = vpack.c.bf16 %v2805_v53, %v2805_v53  ;;  %v2685_v18 = vmax.f32 %v5739_v5, %v2628_v22  ;;  %v2629_v19 = vmax.f32 %v1877_v11, %v2428_v63  ;;  %v4122_v6 = vpop.f32.mrb[175].mxu1  ;;  %v5752_v49 = vld [vmem:[#allocation20_spill] sm:$0xff]  ;;  %v5753_v53 = vld [vmem:[#allocation21_spill] sm:$0xff] }
 0x245   : > { %v5754_v22 = vmax.f32 %v5752_v49, %v5753_v53 }
 0x246   : > { %3092 = vst.msk [vmem:[%s5220_s22 + $0x6c] sm:$0xf] %vm3064_vm2, %v3545_v38  ;;  %v2749_v3 = vadd.f32 %v5200_v46, %v2685_v18  ;;  %v2686_v7 = vmax.f32 %v5742_v8, %v2629_v19  ;;  %v5755_v8 = vld [vmem:[#allocation22_spill] sm:$0xff] }
 0x248   : > { %v2806_v21 = vmax.f32 %v2749_v3, 0.0  ;;  %v2750_v33 = vadd.f32 %v5200_v46, %v2686_v7  ;;  %v5756_v7 = vld [vmem:[#allocation23_spill] sm:$0xff] }
 0x249   : > { %v1882_v59 = vpop.f32.mrb[176].mxu0  ;;  %v2433_v61 = vpop.f32.mrb[176].mxu1 }
 0x24a   : > { %v4005_v24 = vpop.f32.mrb[177].mxu0  ;;  %v3546_v60 = vpack.c.bf16 %v2806_v21, %v2806_v21  ;;  %v2807_v44 = vmax.f32 %v2750_v33, 0.0  ;;  %v2630_v27 = vmax.f32 %v1882_v59, %v2433_v61  ;;  %v4125_v35 = vpop.f32.mrb[177].mxu1  ;;  %v5757_v21 = vmax.f32 %v5755_v8, %v5756_v7 }
 0x24b   : > { %v1885_v42 = vpop.f32.mrb[178].mxu0  ;;  %v2436_v13 = vpop.f32.mrb[178].mxu1 }
 0x24c   : > { %v4006_v15 = vpop.f32.mrb[179].mxu0  ;;  %3093 = vst.msk [vmem:[%s5220_s22 + $0x70] sm:$0xf] %vm3064_vm2, %v3546_v60  ;;  %v3547_v43 = vpack.c.bf16 %v2807_v44, %v2807_v44  ;;  %v2687_v40 = vmax.f32 %v5745_v10, %v2630_v27  ;;  %v2631_v28 = vmax.f32 %v1885_v42, %v2436_v13  ;;  %v4126_v25 = vpop.f32.mrb[179].mxu1  ;;  %v5758_v60 = vld [vmem:[#allocation24_spill] sm:$0xff]  ;;  %v5759_v44 = vld [vmem:[#allocation25_spill] sm:$0xff] }
 0x24d   : > { %v5760_v27 = vmax.f32 %v5758_v60, %v5759_v44 }
 0x24e   : > { %3094 = vst.msk [vmem:[%s5220_s22 + $0x74] sm:$0xf] %vm3064_vm2, %v3547_v43  ;;  %v2751_v51 = vadd.f32 %v5200_v46, %v2687_v40  ;;  %v2688_v48 = vmax.f32 %v5748_v12, %v2631_v28  ;;  %v5761_v12 = vld [vmem:[#allocation26_spill] sm:$0xff] }
 0x250   : > { %v2808_v50 = vmax.f32 %v2751_v51, 0.0  ;;  %v2752_v14 = vadd.f32 %v5200_v46, %v2688_v48  ;;  %v5762_v48 = vld [vmem:[#allocation27_spill] sm:$0xff] }
 0x251   : > { %v1890_v4 = vpop.f32.mrb[180].mxu0  ;;  %v2441_v17 = vpop.f32.mrb[180].mxu1 }
 0x252   : > { %v4009_v47 = vpop.f32.mrb[181].mxu0  ;;  %v3548_v32 = vpack.c.bf16 %v2808_v50, %v2808_v50  ;;  %v2809_v1 = vmax.f32 %v2752_v14, 0.0  ;;  %v2632_v34 = vmax.f32 %v1890_v4, %v2441_v17  ;;  %v4129_v30 = vpop.f32.mrb[181].mxu1  ;;  %v5763_v50 = vmax.f32 %v5761_v12, %v5762_v48 }
 0x253   : > { %v1893_v31 = vpop.f32.mrb[182].mxu0  ;;  %v2444_v37 = vpop.f32.mrb[182].mxu1 }
 0x254   : > { %v4010_v39 = vpop.f32.mrb[183].mxu0  ;;  %3095 = vst.msk [vmem:[%s5220_s22 + $0x78] sm:$0xf] %vm3064_vm2, %v3548_v32  ;;  %v3549_v16 = vpack.c.bf16 %v2809_v1, %v2809_v1  ;;  %v2689_v41 = vmax.f32 %v5751_v62, %v2632_v34  ;;  %v2633_v54 = vmax.f32 %v1893_v31, %v2444_v37  ;;  %v4130_v55 = vpop.f32.mrb[183].mxu1  ;;  %v5764_v32 = vld [vmem:[#allocation28_spill] sm:$0xff]  ;;  %v5765_v1 = vld [vmem:[#allocation29_spill] sm:$0xff] }
 0x255   : > { %v5766_v34 = vmax.f32 %v5764_v32, %v5765_v1 }
 0x256   : > { %3096 = vst.msk [vmem:[%s5220_s22 + $0x7c] sm:$0xf] %vm3064_vm2, %v3549_v16  ;;  %v2753_v58 = vadd.f32 %v5200_v46, %v2689_v41  ;;  %v2690_v45 = vmax.f32 %v5754_v22, %v2633_v54  ;;  %v5767_v22 = vld [vmem:[#allocation30_spill] sm:$0xff] }
 0x258   : > { %v2810_v11 = vmax.f32 %v2753_v58, 0.0  ;;  %v2754_v63 = vadd.f32 %v5200_v46, %v2690_v45  ;;  %v5768_v45 = vld [vmem:[#allocation31_spill] sm:$0xff] }
 0x259   : > { %v1898_v36 = vpop.f32.mrb[184].mxu0  ;;  %v2449_v38 = vpop.f32.mrb[184].mxu1 }
 0x25a   : > { %v4013_v2 = vpop.f32.mrb[185].mxu0  ;;  %v3550_v0 = vpack.c.bf16 %v2810_v11, %v2810_v11  ;;  %v2811_v5 = vmax.f32 %v2754_v63, 0.0  ;;  %v2634_v18 = vmax.f32 %v1898_v36, %v2449_v38  ;;  %v4133_v19 = vpop.f32.mrb[185].mxu1  ;;  %v5769_v11 = vmax.f32 %v5767_v22, %v5768_v45 }
 0x25b   : > { %v1901_v6 = vpop.f32.mrb[186].mxu0  ;;  %v2452_v3 = vpop.f32.mrb[186].mxu1 }
 0x25c   : > { %v4014_v20 = vpop.f32.mrb[187].mxu0  ;;  %3097 = vst.msk [vmem:[%s5220_s22 + $0x80] sm:$0xf] %vm3064_vm2, %v3550_v0  ;;  %v3551_v23 = vpack.c.bf16 %v2811_v5, %v2811_v5  ;;  %v2691_v33 = vmax.f32 %v5757_v21, %v2634_v18  ;;  %v2635_v59 = vmax.f32 %v1901_v6, %v2452_v3  ;;  %v4134_v61 = vpop.f32.mrb[187].mxu1  ;;  %v5770_v0 = vld [vmem:[#allocation32_spill] sm:$0xff]  ;;  %v5771_v5 = vld [vmem:[#allocation33_spill] sm:$0xff] }
 0x25d   : > { %v5772_v18 = vmax.f32 %v5770_v0, %v5771_v5 }
 0x25e   : > { %3098 = vst.msk [vmem:[%s5220_s22 + $0x84] sm:$0xf] %vm3064_vm2, %v3551_v23  ;;  %v2755_v24 = vadd.f32 %v5200_v46, %v2691_v33  ;;  %v2692_v35 = vmax.f32 %v5760_v27, %v2635_v59  ;;  %v5773_v27 = vld [vmem:[#allocation34_spill] sm:$0xff] }
 0x260   : > { %v2812_v42 = vmax.f32 %v2755_v24, 0.0  ;;  %v2756_v13 = vadd.f32 %v5200_v46, %v2692_v35  ;;  %v5774_v35 = vld [vmem:[#allocation35_spill] sm:$0xff] }
 0x261   : > { %v1906_v15 = vpop.f32.mrb[188].mxu0  ;;  %v2457_v43 = vpop.f32.mrb[188].mxu1 }
 0x262   : > { %v4017_v26 = vpop.f32.mrb[189].mxu0  ;;  %v3552_v52 = vpack.c.bf16 %v2812_v42, %v2812_v42  ;;  %v2813_v10 = vmax.f32 %v2756_v13, 0.0  ;;  %v2636_v40 = vmax.f32 %v1906_v15, %v2457_v43  ;;  %v4137_v28 = vpop.f32.mrb[189].mxu1  ;;  %v5775_v42 = vmax.f32 %v5773_v27, %v5774_v35 }
 0x263   : > { %v1909_v25 = vpop.f32.mrb[190].mxu0  ;;  %v2460_v51 = vpop.f32.mrb[190].mxu1 }
 0x264   : > { %v4018_v56 = vpop.f32.mrb[191].mxu0  ;;  %3099 = vst.msk [vmem:[%s5220_s22 + $0x88] sm:$0xf] %vm3064_vm2, %v3552_v52  ;;  %v3553_v29 = vpack.c.bf16 %v2813_v10, %v2813_v10  ;;  %v2693_v14 = vmax.f32 %v5763_v50, %v2636_v40  ;;  %v2637_v4 = vmax.f32 %v1909_v25, %v2460_v51  ;;  %v4138_v17 = vpop.f32.mrb[191].mxu1  ;;  %v5776_v52 = vld [vmem:[#allocation36_spill] sm:$0xff]  ;;  %v5777_v10 = vld [vmem:[#allocation37_spill] sm:$0xff] }
 0x265   : > { %v5778_v40 = vmax.f32 %v5776_v52, %v5777_v10 }
 0x266   : > { %3100 = vst.msk [vmem:[%s5220_s22 + $0x8c] sm:$0xf] %vm3064_vm2, %v3553_v29  ;;  %v2757_v47 = vadd.f32 %v5200_v46, %v2693_v14  ;;  %v2694_v30 = vmax.f32 %v5766_v34, %v2637_v4  ;;  %v5779_v34 = vld [vmem:[#allocation38_spill] sm:$0xff] }
 0x268   : > { %v2814_v31 = vmax.f32 %v2757_v47, 0.0  ;;  %v2758_v37 = vadd.f32 %v5200_v46, %v2694_v30  ;;  %v5780_v30 = vld [vmem:[#allocation39_spill] sm:$0xff] }
 0x269   : > { %v1914_v39 = vpop.f32.mrb[192].mxu0  ;;  %v2465_v16 = vpop.f32.mrb[192].mxu1 }
 0x26a   : > { %v4021_v9 = vpop.f32.mrb[193].mxu0  ;;  %v3554_v57 = vpack.c.bf16 %v2814_v31, %v2814_v31  ;;  %v2815_v62 = vmax.f32 %v2758_v37, 0.0  ;;  %v2638_v41 = vmax.f32 %v1914_v39, %v2465_v16  ;;  %v4141_v54 = vpop.f32.mrb[193].mxu1  ;;  %v5781_v31 = vmax.f32 %v5779_v34, %v5780_v30 }
 0x26b   : > { %v1917_v55 = vpop.f32.mrb[194].mxu0  ;;  %v2468_v58 = vpop.f32.mrb[194].mxu1 }
 0x26c   : > { %v4022_v49 = vpop.f32.mrb[195].mxu0  ;;  %3101 = vst.msk [vmem:[%s5220_s22 + $0x90] sm:$0xf] %vm3064_vm2, %v3554_v57  ;;  %v3555_v53 = vpack.c.bf16 %v2815_v62, %v2815_v62  ;;  %v2695_v63 = vmax.f32 %v5769_v11, %v2638_v41  ;;  %v2639_v36 = vmax.f32 %v1917_v55, %v2468_v58  ;;  %v4142_v38 = vpop.f32.mrb[195].mxu1  ;;  %v5782_v57 = vld [vmem:[#allocation40_spill] sm:$0xff]  ;;  %v5783_v62 = vld [vmem:[#allocation41_spill] sm:$0xff] }
 0x26d   : > { %v5784_v41 = vmax.f32 %v5782_v57, %v5783_v62 }
 0x26e   : > { %3102 = vst.msk [vmem:[%s5220_s22 + $0x94] sm:$0xf] %vm3064_vm2, %v3555_v53  ;;  %v2759_v2 = vadd.f32 %v5200_v46, %v2695_v63  ;;  %v2696_v19 = vmax.f32 %v5772_v18, %v2639_v36  ;;  %v5785_v18 = vld [vmem:[#allocation42_spill] sm:$0xff] }
 0x270   : > { %v2816_v6 = vmax.f32 %v2759_v2, 0.0  ;;  %v2760_v3 = vadd.f32 %v5200_v46, %v2696_v19  ;;  %v5786_v19 = vld [vmem:[#allocation43_spill] sm:$0xff] }
 0x271   : > { %v1922_v20 = vpop.f32.mrb[196].mxu0  ;;  %v2473_v23 = vpop.f32.mrb[196].mxu1 }
 0x272   : > { %v4025_v8 = vpop.f32.mrb[197].mxu0  ;;  %v3556_v7 = vpack.c.bf16 %v2816_v6, %v2816_v6  ;;  %v2817_v21 = vmax.f32 %v2760_v3, 0.0  ;;  %v2640_v33 = vmax.f32 %v1922_v20, %v2473_v23  ;;  %v4145_v59 = vpop.f32.mrb[197].mxu1  ;;  %v5787_v6 = vmax.f32 %v5785_v18, %v5786_v19 }
 0x273   : > { %v1925_v61 = vpop.f32.mrb[198].mxu0  ;;  %v2476_v24 = vpop.f32.mrb[198].mxu1 }
 0x274   : > { %v4026_v60 = vpop.f32.mrb[199].mxu0  ;;  %3103 = vst.msk [vmem:[%s5220_s22 + $0x98] sm:$0xf] %vm3064_vm2, %v3556_v7  ;;  %v3557_v44 = vpack.c.bf16 %v2817_v21, %v2817_v21  ;;  %v2697_v13 = vmax.f32 %v5775_v42, %v2640_v33  ;;  %v2641_v15 = vmax.f32 %v1925_v61, %v2476_v24  ;;  %v4146_v43 = vpop.f32.mrb[199].mxu1  ;;  %v5788_v7 = vld [vmem:[#allocation44_spill] sm:$0xff]  ;;  %v5789_v21 = vld [vmem:[#allocation45_spill] sm:$0xff] }
 0x275   : > { %v5790_v33 = vmax.f32 %v5788_v7, %v5789_v21 }
 0x276   : > { %3104 = vst.msk [vmem:[%s5220_s22 + $0x9c] sm:$0xf] %vm3064_vm2, %v3557_v44  ;;  %v2761_v26 = vadd.f32 %v5200_v46, %v2697_v13  ;;  %v2698_v28 = vmax.f32 %v5778_v40, %v2641_v15  ;;  %v5791_v40 = vld [vmem:[#allocation46_spill] sm:$0xff] }
 0x278   : > { %v2818_v25 = vmax.f32 %v2761_v26, 0.0  ;;  %v2762_v51 = vadd.f32 %v5200_v46, %v2698_v28  ;;  %v5792_v28 = vld [vmem:[#allocation47_spill] sm:$0xff] }
 0x279   : > { %v1930_v56 = vpop.f32.mrb[200].mxu0  ;;  %v2481_v29 = vpop.f32.mrb[200].mxu1 }
 0x27a   : > { %v4029_v12 = vpop.f32.mrb[201].mxu0  ;;  %v3558_v48 = vpack.c.bf16 %v2818_v25, %v2818_v25  ;;  %v2819_v50 = vmax.f32 %v2762_v51, 0.0  ;;  %v2642_v14 = vmax.f32 %v1930_v56, %v2481_v29  ;;  %v4149_v4 = vpop.f32.mrb[201].mxu1  ;;  %v5793_v25 = vmax.f32 %v5791_v40, %v5792_v28 }
 0x27b   : > { %v1933_v17 = vpop.f32.mrb[202].mxu0  ;;  %v2484_v47 = vpop.f32.mrb[202].mxu1 }
 0x27c   : > { %v4030_v32 = vpop.f32.mrb[203].mxu0  ;;  %3105 = vst.msk [vmem:[%s5220_s22 + $0xa0] sm:$0xf] %vm3064_vm2, %v3558_v48  ;;  %v3559_v1 = vpack.c.bf16 %v2819_v50, %v2819_v50  ;;  %v2699_v37 = vmax.f32 %v5781_v31, %v2642_v14  ;;  %v2643_v39 = vmax.f32 %v1933_v17, %v2484_v47  ;;  %v4150_v16 = vpop.f32.mrb[203].mxu1  ;;  %v5794_v48 = vld [vmem:[#allocation48_spill] sm:$0xff]  ;;  %v5795_v50 = vld [vmem:[#allocation49_spill] sm:$0xff] }
 0x27d   : > { %v5796_v14 = vmax.f32 %v5794_v48, %v5795_v50 }
 0x27e   : > { %3106 = vst.msk [vmem:[%s5220_s22 + $0xa4] sm:$0xf] %vm3064_vm2, %v3559_v1  ;;  %v2763_v9 = vadd.f32 %v5200_v46, %v2699_v37  ;;  %v2700_v54 = vmax.f32 %v5784_v41, %v2643_v39  ;;  %v5797_v41 = vld [vmem:[#allocation50_spill] sm:$0xff] }
 0x280   : > { %v2820_v55 = vmax.f32 %v2763_v9, 0.0  ;;  %v2764_v58 = vadd.f32 %v5200_v46, %v2700_v54  ;;  %v5798_v54 = vld [vmem:[#allocation51_spill] sm:$0xff] }
 0x281   : > { %v1938_v49 = vpop.f32.mrb[204].mxu0  ;;  %v2489_v53 = vpop.f32.mrb[204].mxu1 }
 0x282   : > { %v4033_v22 = vpop.f32.mrb[205].mxu0  ;;  %v3560_v45 = vpack.c.bf16 %v2820_v55, %v2820_v55  ;;  %v2821_v11 = vmax.f32 %v2764_v58, 0.0  ;;  %v2644_v63 = vmax.f32 %v1938_v49, %v2489_v53  ;;  %v4153_v36 = vpop.f32.mrb[205].mxu1  ;;  %v5799_v55 = vmax.f32 %v5797_v41, %v5798_v54 }
 0x283   : > { %v1941_v38 = vpop.f32.mrb[206].mxu0  ;;  %v2492_v2 = vpop.f32.mrb[206].mxu1 }
 0x284   : > { %v4034_v0 = vpop.f32.mrb[207].mxu0  ;;  %3107 = vst.msk [vmem:[%s5220_s22 + $0xa8] sm:$0xf] %vm3064_vm2, %v3560_v45  ;;  %v3561_v5 = vpack.c.bf16 %v2821_v11, %v2821_v11  ;;  %v2701_v3 = vmax.f32 %v5787_v6, %v2644_v63  ;;  %v2645_v20 = vmax.f32 %v1941_v38, %v2492_v2  ;;  %v4154_v23 = vpop.f32.mrb[207].mxu1  ;;  %v5800_v45 = vld [vmem:[#allocation52_spill] sm:$0xff]  ;;  %v5801_v11 = vld [vmem:[#allocation53_spill] sm:$0xff] }
 0x285   : > { %v5802_v63 = vmax.f32 %v5800_v45, %v5801_v11 }
 0x286   : > { %3108 = vst.msk [vmem:[%s5220_s22 + $0xac] sm:$0xf] %vm3064_vm2, %v3561_v5  ;;  %v2765_v8 = vadd.f32 %v5200_v46, %v2701_v3  ;;  %v2702_v59 = vmax.f32 %v5790_v33, %v2645_v20  ;;  %v5803_v33 = vld [vmem:[#allocation54_spill] sm:$0xff] }
 0x288   : > { %v2822_v61 = vmax.f32 %v2765_v8, 0.0  ;;  %v2766_v24 = vadd.f32 %v5200_v46, %v2702_v59  ;;  %v5804_v59 = vld [vmem:[#allocation55_spill] sm:$0xff] }
 0x289   : > { %v1946_v60 = vpop.f32.mrb[208].mxu0  ;;  %v2497_v44 = vpop.f32.mrb[208].mxu1 }
 0x28a   : > { %v4037_v27 = vpop.f32.mrb[209].mxu0  ;;  %v3562_v35 = vpack.c.bf16 %v2822_v61, %v2822_v61  ;;  %v2823_v42 = vmax.f32 %v2766_v24, 0.0  ;;  %v2646_v13 = vmax.f32 %v1946_v60, %v2497_v44  ;;  %v4157_v15 = vpop.f32.mrb[209].mxu1  ;;  %v5805_v61 = vmax.f32 %v5803_v33, %v5804_v59  ;;  %v4307_v44 = vld [vmem:[%s5564_s5] ss:$0 sm:$0xff] }
 0x28b   : > { %v1949_v43 = vpop.f32.mrb[210].mxu0  ;;  %v2500_v26 = vpop.f32.mrb[210].mxu1 }
 0x28c   : > { %v4038_v52 = vpop.f32.mrb[211].mxu0  ;;  %3109 = vst.msk [vmem:[%s5220_s22 + $0xb0] sm:$0xf] %vm3064_vm2, %v3562_v35  ;;  %v3563_v10 = vpack.c.bf16 %v2823_v42, %v2823_v42  ;;  %v2703_v51 = vmax.f32 %v5793_v25, %v2646_v13  ;;  %v2647_v56 = vmax.f32 %v1949_v43, %v2500_v26  ;;  %v4158_v29 = vpop.f32.mrb[211].mxu1  ;;  %v5806_v35 = vld [vmem:[#allocation56_spill] sm:$0xff]  ;;  %v5807_v42 = vld [vmem:[#allocation57_spill] sm:$0xff] }
 0x28d   : > { %v5808_v13 = vmax.f32 %v5806_v35, %v5807_v42 }
 0x28e   : > { %3110 = vst.msk [vmem:[%s5220_s22 + $0xb4] sm:$0xf] %vm3064_vm2, %v3563_v10  ;;  %v2767_v12 = vadd.f32 %v5200_v46, %v2703_v51  ;;  %v2704_v4 = vmax.f32 %v5796_v14, %v2647_v56  ;;  %v5809_v14 = vld [vmem:[#allocation58_spill] sm:$0xff] }
 0x290   : > { %v2824_v17 = vmax.f32 %v2767_v12, 0.0  ;;  %v2768_v47 = vadd.f32 %v5200_v46, %v2704_v4  ;;  %v5810_v4 = vld [vmem:[#allocation59_spill] sm:$0xff] }
 0x291   : > { %v1954_v32 = vpop.f32.mrb[212].mxu0  ;;  %v2505_v1 = vpop.f32.mrb[212].mxu1 }
 0x292   : > { %v4041_v34 = vpop.f32.mrb[213].mxu0  ;;  %v3564_v30 = vpack.c.bf16 %v2824_v17, %v2824_v17  ;;  %v2825_v31 = vmax.f32 %v2768_v47, 0.0  ;;  %v2648_v37 = vmax.f32 %v1954_v32, %v2505_v1  ;;  %v4161_v39 = vpop.f32.mrb[213].mxu1  ;;  %v5811_v17 = vmax.f32 %v5809_v14, %v5810_v4 }
 0x293   : > { %v1957_v16 = vpop.f32.mrb[214].mxu0  ;;  %v2508_v9 = vpop.f32.mrb[214].mxu1 }
 0x294   : > { %v4042_v57 = vpop.f32.mrb[215].mxu0  ;;  %3111 = vst.msk [vmem:[%s5220_s22 + $0xb8] sm:$0xf] %vm3064_vm2, %v3564_v30  ;;  %v3565_v62 = vpack.c.bf16 %v2825_v31, %v2825_v31  ;;  %v2705_v58 = vmax.f32 %v5799_v55, %v2648_v37  ;;  %v2649_v49 = vmax.f32 %v1957_v16, %v2508_v9  ;;  %v4162_v53 = vpop.f32.mrb[215].mxu1  ;;  %v5812_v30 = vld [vmem:[#allocation60_spill] sm:$0xff]  ;;  %v5813_v31 = vld [vmem:[#allocation61_spill] sm:$0xff] }
 0x295   : > { %v5814_v37 = vmax.f32 %v5812_v30, %v5813_v31 }
 0x296   : > { %3112 = vst.msk [vmem:[%s5220_s22 + $0xbc] sm:$0xf] %vm3064_vm2, %v3565_v62  ;;  %v2769_v22 = vadd.f32 %v5200_v46, %v2705_v58  ;;  %v2706_v36 = vmax.f32 %v5802_v63, %v2649_v49  ;;  %v5815_v63 = vld [vmem:[#allocation62_spill] sm:$0xff] }
 0x298   : > { %v2826_v38 = vmax.f32 %v2769_v22, 0.0  ;;  %v2770_v2 = vadd.f32 %v5200_v46, %v2706_v36  ;;  %v5816_v36 = vld [vmem:[#allocation63_spill] sm:$0xff] }
 0x299   : > { %v1962_v0 = vpop.f32.mrb[216].mxu0  ;;  %v2513_v5 = vpop.f32.mrb[216].mxu1 }
 0x29a   : > { %v4045_v18 = vpop.f32.mrb[217].mxu0  ;;  %v3566_v19 = vpack.c.bf16 %v2826_v38, %v2826_v38  ;;  %v2827_v6 = vmax.f32 %v2770_v2, 0.0  ;;  %v2650_v3 = vmax.f32 %v1962_v0, %v2513_v5  ;;  %v4165_v20 = vpop.f32.mrb[217].mxu1  ;;  %v5817_v38 = vmax.f32 %v5815_v63, %v5816_v36 }
 0x29b   : > { %v1965_v23 = vpop.f32.mrb[218].mxu0  ;;  %v2516_v8 = vpop.f32.mrb[218].mxu1 }
 0x29c   : > { %v4046_v7 = vpop.f32.mrb[219].mxu0  ;;  %3113 = vst.msk [vmem:[%s5220_s22 + $0xc0] sm:$0xf] %vm3064_vm2, %v3566_v19  ;;  %v3567_v21 = vpack.c.bf16 %v2827_v6, %v2827_v6  ;;  %v2707_v24 = vmax.f32 %v5805_v61, %v2650_v3  ;;  %v2651_v60 = vmax.f32 %v1965_v23, %v2516_v8  ;;  %v4166_v46 = vpop.f32.mrb[219].mxu1  ;;  %v5818_v19 = vld [vmem:[#allocation64_spill] sm:$0xff]  ;;  %v5819_v6 = vld [vmem:[#allocation65_spill] sm:$0xff] }
 0x29d   : > { %v5820_v3 = vmax.f32 %v5818_v19, %v5819_v6 }
 0x29e   : > { %3114 = vst.msk [vmem:[%s5220_s22 + $0xc4] sm:$0xf] %vm3064_vm2, %v3567_v21  ;;  %v2771_v27 = vadd.f32 %v4307_v44, %v2707_v24  ;;  %v2708_v15 = vmax.f32 %v5808_v13, %v2651_v60  ;;  %v5821_v13 = vld [vmem:[#allocation66_spill] sm:$0xff] }
 0x2a0   : > { %v2828_v43 = vmax.f32 %v2771_v27, 0.0  ;;  %v2772_v26 = vadd.f32 %v4307_v44, %v2708_v15  ;;  %v5822_v15 = vld [vmem:[#allocation67_spill] sm:$0xff] }
 0x2a1   : > { %v1970_v52 = vpop.f32.mrb[220].mxu0  ;;  %v2521_v10 = vpop.f32.mrb[220].mxu1 }
 0x2a2   : > { %v4049_v40 = vpop.f32.mrb[221].mxu0  ;;  %v3568_v28 = vpack.c.bf16 %v2828_v43, %v2828_v43  ;;  %v2829_v25 = vmax.f32 %v2772_v26, 0.0  ;;  %v2652_v51 = vmax.f32 %v1970_v52, %v2521_v10  ;;  %v4169_v56 = vpop.f32.mrb[221].mxu1  ;;  %v5823_v43 = vmax.f32 %v5821_v13, %v5822_v15 }
 0x2a3   : > { %v1973_v29 = vpop.f32.mrb[222].mxu0  ;;  %v2524_v12 = vpop.f32.mrb[222].mxu1 }
 0x2a4   : > { %v4050_v48 = vpop.f32.mrb[223].mxu0  ;;  %3115 = vst.msk [vmem:[%s5220_s22 + $0xc8] sm:$0xf] %vm3064_vm2, %v3568_v28  ;;  %v3569_v50 = vpack.c.bf16 %v2829_v25, %v2829_v25  ;;  %v2709_v47 = vmax.f32 %v5811_v17, %v2652_v51  ;;  %v2653_v32 = vmax.f32 %v1973_v29, %v2524_v12  ;;  %v4170_v1 = vpop.f32.mrb[223].mxu1 }
 0x2a6   : > { %3116 = vst.msk [vmem:[%s5220_s22 + $0xcc] sm:$0xf] %vm3064_vm2, %v3569_v50  ;;  %v2773_v34 = vadd.f32 %v4307_v44, %v2709_v47  ;;  %v2710_v39 = vmax.f32 %v5814_v37, %v2653_v32 }
 0x2a8   : > { %v2830_v16 = vmax.f32 %v2773_v34, 0.0  ;;  %v2774_v9 = vadd.f32 %v4307_v44, %v2710_v39 }
 0x2a9   : > { %v1978_v57 = vpop.f32.mrb[224].mxu0  ;;  %v2529_v62 = vpop.f32.mrb[224].mxu1 }
 0x2aa   : > { %v4053_v41 = vpop.f32.mrb[225].mxu0  ;;  %v3570_v54 = vpack.c.bf16 %v2830_v16, %v2830_v16  ;;  %v2831_v55 = vmax.f32 %v2774_v9, 0.0  ;;  %v2654_v58 = vmax.f32 %v1978_v57, %v2529_v62  ;;  %v4173_v49 = vpop.f32.mrb[225].mxu1 }
 0x2ab   : > { %v1981_v53 = vpop.f32.mrb[226].mxu0  ;;  %v2532_v22 = vpop.f32.mrb[226].mxu1 }
 0x2ac   : > { %v4054_v45 = vpop.f32.mrb[227].mxu0  ;;  %3117 = vst.msk [vmem:[%s5220_s22 + $0xd0] sm:$0xf] %vm3064_vm2, %v3570_v54  ;;  %v3571_v11 = vpack.c.bf16 %v2831_v55, %v2831_v55  ;;  %v2711_v2 = vmax.f32 %v5817_v38, %v2654_v58  ;;  %v2655_v0 = vmax.f32 %v1981_v53, %v2532_v22  ;;  %v4174_v5 = vpop.f32.mrb[227].mxu1 }
 0x2ae   : > { %3118 = vst.msk [vmem:[%s5220_s22 + $0xd4] sm:$0xf] %vm3064_vm2, %v3571_v11  ;;  %v2775_v18 = vadd.f32 %v4307_v44, %v2711_v2  ;;  %v2712_v20 = vmax.f32 %v5820_v3, %v2655_v0 }
 0x2b0   : > { %v2832_v23 = vmax.f32 %v2775_v18, 0.0  ;;  %v2776_v8 = vadd.f32 %v4307_v44, %v2712_v20 }
 0x2b1   : > { %v1986_v7 = vpop.f32.mrb[228].mxu0  ;;  %v2537_v21 = vpop.f32.mrb[228].mxu1 }
 0x2b2   : > { %v4057_v33 = vpop.f32.mrb[229].mxu0  ;;  %v3572_v59 = vpack.c.bf16 %v2832_v23, %v2832_v23  ;;  %v2833_v61 = vmax.f32 %v2776_v8, 0.0  ;;  %v2656_v24 = vmax.f32 %v1986_v7, %v2537_v21  ;;  %v4177_v60 = vpop.f32.mrb[229].mxu1 }
 0x2b3   : > { %v1989_v46 = vpop.f32.mrb[230].mxu0  ;;  %v2540_v27 = vpop.f32.mrb[230].mxu1 }
 0x2b4   : > { %v4058_v35 = vpop.f32.mrb[231].mxu0  ;;  %3119 = vst.msk [vmem:[%s5220_s22 + $0xd8] sm:$0xf] %vm3064_vm2, %v3572_v59  ;;  %v3573_v42 = vpack.c.bf16 %v2833_v61, %v2833_v61  ;;  %v2713_v26 = vmax.f32 %v5823_v43, %v2656_v24  ;;  %v4178_v52 = vpop.f32.mrb[231].mxu1 }
 0x2b6   : > { %3120 = vst.msk [vmem:[%s5220_s22 + $0xdc] sm:$0xf] %vm3064_vm2, %v3573_v42  ;;  %v2777_v10 = vadd.f32 %v4307_v44, %v2713_v26 }
 0x2b8   : > { %v2834_v40 = vmax.f32 %v2777_v10, 0.0 }
 0x2ba   : > { %v3574_v28 = vpack.c.bf16 %v2834_v40, %v2834_v40 }
 0x2bc   : > { %3121 = vst.msk [vmem:[%s5220_s22 + $0xe0] sm:$0xf] %vm3064_vm2, %v3574_v28 }
 0x2bd PF: > { %s16_s21 = sadd.s32 1, %s4314_s21  }
 0x2be   : > { %p13_p4 = scmp.ge.s32.totalorder %s16_s21, 4  }
 0x2c0   :  { %15 = sbr.rel (!%p13_p4) target bundleno = 1 (0x1), region = 83 }

// kernel: convnet_forward.5
= control target key start
LH: loop header
LB: loop body
LE: loop exit
PB: predicated region body
PF: predicated region fallthrough
CT: control target
= control target key end

     0   :  { %s2249_s21 = smov 0   ;;  %s2725_s0 = inlined_call_operand.vmem [shape: bf16[144,288], index: 0, kind: input, shape index: {}]   ;;  %s2726_s1 = inlined_call_operand.vmem [shape: bf16[144,288], index: 1, kind: input, shape index: {}]   ;;  %s2727_s2 = inlined_call_operand.vmem [shape: bf16[144,288], index: 2, kind: input, shape index: {}]   ;;  %s2728_s3 = inlined_call_operand.vmem [shape: bf16[144,288], index: 3, kind: input, shape index: {}]   ;;  %s2729_s4 = inlined_call_operand.vmem [shape: bf16[288,64], index: 4, kind: input, shape index: {}]   ;;  %s2730_s5 = inlined_call_operand.vmem [shape: f32[1,64], index: 5, kind: input, shape index: {}]   ;;  %s2731_s6 = inlined_call_operand.vmem [shape: bf16[144,64], index: 6, kind: output, shape index: {}]  }
   0x1 LB: > { %s1658_s22 = sadd.s32 4294967295, %s2210_s21   ;;  %p1662_p0 = scmp.ge.s32.totalorder %s2210_s21, 1  ;;  %s2210_s21 = sphi %s2249_s21, %s16_s21  }
   0x2   : > { %p250_p1 = scmp.lt.s32.totalorder %s2210_s21, 3 }
   0x4   : > { %p251_p2 = pnand %p1662_p0, %p250_p1 }
   0x5   : > { %v2260_v0 = vld [vmem:[%s2729_s4 + $0x40] sm:$0xff] (!%p251_p2)   ;;  %v2212_v2 = vmov (!%p251_p2), 0.0   ;;  %vm2213_vm0 = vmmov (!%p251_p2), 0   ;;  %s299_s29 = smul.u32 (!%p251_p2), 9, %s1658_s22  ;;  %v2280_v4 = vld [vmem:[%s2729_s4 + $0x48] sm:$0xff] (!%p251_p2)   ;;  %v2298_v7 = vld [vmem:[%s2729_s4 + $0x50] sm:$0xff] (!%p251_p2)  }
   0x6   : > { %254 = sbr.rel (%p251_p2) target bundleno = 410 (0x19a), region = 44  ;;  %v2265_v1 = vld [vmem:[%s2729_s4] sm:$0xff] (!%p251_p2)   ;;  %1999 = vmatprep.subr.bf16.mxu1 (!%p251_p2), %v2212_v2  ;;  %1787 = vmatprep.subr.bf16.mxu0 (!%p251_p2), %v2260_v0  ;;  %v2286_v5 = vld [vmem:[%s2729_s4 + $0x8] sm:$0xff] (!%p251_p2)   ;;  %v2306_v8 = vld [vmem:[%s2729_s4 + $0x10] sm:$0xff] (!%p251_p2)   ;;  %vm566_vm1 = vcmask (!%p251_p2), 261120   ;;  %vm1556_vm2 = vcmask (!%p251_p2), 519168  }
   0x7   : > { %v2272_v3 = vld [vmem:[%s2729_s4 + $0x80] sm:$0xff] (!%p251_p2)   ;;  %2003 = vmatprep.mubr.msk.bf16.mxu1 (!%p251_p2), %vm2213_vm0, %v2212_v2  ;;  %1788 = vmatpush3.bf16.msra.mxu0 (!%p251_p2), %v2265_v1  ;;  %p300_p3 = scmp.lt.s32.totalorder (!%p251_p2), %s299_s29, 17  ;;  %v2293_v6 = vld [vmem:[%s2729_s4 + $0x88] sm:$0xff] (!%p251_p2)   ;;  %v2316_v9 = vld [vmem:[%s2729_s4 + $0x58] sm:$0xff] (!%p251_p2)  }
   0x8   : > { %2000 = vmatpush3.bf16.msra.mxu1 (!%p251_p2), %v2272_v3  ;;  %1789 = vmatprep.subr.bf16.mxu0 (!%p251_p2), %v2280_v4  ;;  %v2328_v10 = vld [vmem:[%s2729_s4 + $0x18] sm:$0xff] (!%p251_p2)   ;;  %v2336_v12 = vld [vmem:[%s2729_s4 + $0x60] sm:$0xff] (!%p251_p2)   ;;  %v2353_v14 = vld [vmem:[%s2729_s4 + $0x68] sm:$0xff] (!%p251_p2)  }
   0x9   : > { %2001 = vmatprep.subr.bf16.mxu1 (!%p251_p2), %v2212_v2  ;;  %v2346_v13 = vld [vmem:[%s2729_s4 + $0x20] sm:$0xff] (!%p251_p2)   ;;  %v2361_v16 = vld [vmem:[%s2729_s4 + $0x28] sm:$0xff] (!%p251_p2)   ;;  %v2368_v17 = vld [vmem:[%s2729_s4 + $0x70] sm:$0xff] (!%p251_p2)  }
   0xa   : > { %v2379_v19 = vld [vmem:[%s2729_s4 + $0x30] sm:$0xff] (!%p251_p2)   ;;  %v2386_v20 = vld [vmem:[%s2729_s4 + $0x78] sm:$0xff] (!%p251_p2)  }
   0xb   : > { %1790 = vmatpush3.bf16.msra.mxu0 (!%p251_p2), %v2286_v5  ;;  %v2400_v22 = vld [vmem:[%s2729_s4 + $0x38] sm:$0xff] (!%p251_p2)  }
   0xc   : > { %2002 = vmatpush3.bf16.msra.mxu1 (!%p251_p2), %v2293_v6  ;;  %1791 = vmatprep.subr.bf16.mxu0 (!%p251_p2), %v2298_v7 }
   0xd   : > { %s2733_s29 = smov (!%p300_p3, %s299_s29), 17  ;;  %1840 = vmatprep.subr.bf16.mxu1 %v2260_v0 }
   0xe   : > { %s2311_s16 = smul.u32 12, %s2733_s29  ;;  %s1667_s7 = sshll.u32 %s2733_s29, 2 }
   0xf   : > { %1792 = vmatpush3.bf16.msra.mxu0 %v2306_v8  ;;  %s2667_s10 = scalar_lea.vmem %s2731_s6, %s1667_s7 }
  0x10   : > { %s2323_s22 = scalar_lea.vmem %s2725_s0, %s2311_s16  ;;  %1793 = vmatprep.subr.bf16.mxu0 %v2316_v9  ;;  %s2393_s19 = scalar_lea.vmem %s2726_s1, %s2311_s16 }
  0x11   : > { %v2118_v11 = vld [vmem:[%s2323_s22 + $0x8] ss:$12 sps:$4 sm:$0xff]   ;;  %v2123_v15 = vld [vmem:[%s2323_s22 + $0x20] ss:$12 sps:$4 sm:$0xff]   ;;  %v2133_v18 = vld [vmem:[%s2323_s22 + $0x4] ss:$12 sps:$4 sm:$0xff]   ;;  %s2422_s26 = scalar_lea.vmem %s2727_s2, %s2311_s16  ;;  %s2443_s30 = scalar_lea.vmem %s2728_s3, %s2311_s16 }
  0x12   : > { %2004 = vmatmul.mubr.msk.bf16.vlgmr.msra.gmra.mrb[0].mxu1 %vm566_vm1, %v2118_v11  ;;  %614 = vmatprep.mubr.bf16.mxu0 %v2133_v18  ;;  %v2128_v21 = vld [vmem:[%s2323_s22 + $0x38] ss:$12 sps:$4 sm:$0xff]   ;;  %v2131_v23 = vld [vmem:[%s2323_s22] ss:$12 sps:$4 sm:$0xff]   ;;  %v2135_v24 = vld [vmem:[%s2323_s22 + $0x1c] ss:$12 sps:$4 sm:$0xff]  }
  0x13   : > { %2007 = vmatprep.mubr.msk.bf16.mxu1 %vm2213_vm0, %v2212_v2  ;;  %1841 = vmatpush3.bf16.msra.mxu1 %v2265_v1  ;;  %v2134_v25 = vld [vmem:[%s2323_s22 + $0x50] ss:$12 sps:$4 sm:$0xff]   ;;  %v2137_v26 = vld [vmem:[%s2323_s22 + $0x18] ss:$12 sps:$4 sm:$0xff]   ;;  %v2139_v27 = vld [vmem:[%s2323_s22 + $0x34] ss:$12 sps:$4 sm:$0xff]  }
  0x14   : > { %1794 = vmatpush3.bf16.msra.mxu0 %v2328_v10  ;;  %1842 = vmatprep.subr.bf16.mxu1 %v2280_v4  ;;  %v2138_v28 = vld [vmem:[%s2323_s22 + $0x68] ss:$0 sps:$4 sm:$0xff]   ;;  %v2144_v29 = vld [vmem:[%s2393_s19 + $0x4] ss:$12 sps:$4 sm:$0xff]   ;;  %v2145_v31 = vld [vmem:[%s2323_s22 + $0x4c] ss:$12 sps:$4 sm:$0xff]  }
  0x15   : > { %1795 = vmatprep.subr.bf16.mxu0 %v2336_v12  ;;  %v2141_v30 = vld [vmem:[%s2323_s22 + $0x30] ss:$12 sps:$4 sm:$0xff]   ;;  %v2142_v32 = vld [vmem:[%s2393_s19] ss:$12 sps:$4 sm:$0xff]   ;;  %v2147_v35 = vld [vmem:[%s2323_s22 + $0x48] ss:$12 sps:$4 sm:$0xff]  }
  0x16   : > { %v2148_v33 = vld [vmem:[%s2393_s19 + $0x1c] ss:$12 sps:$4 sm:$0xff]   ;;  %v386_v34 = vld [vmem:[%s2323_s22 + $0x60] sm:$0xff]  ;;  %v2156_v41 = vld [vmem:[%s2393_s19 + $0x4c] ss:$12 sps:$4 sm:$0xff]  }
  0x17   : > { %1843 = vmatpush3.bf16.msra.mxu1 %v2286_v5  ;;  %v1681_v36 = vcombine.high %v386_v34, %v386_v34  ;;  %v2150_v37 = vld [vmem:[%s2393_s19 + $0x18] ss:$12 sps:$4 sm:$0xff]   ;;  %v2153_v38 = vld [vmem:[%s2393_s19 + $0x34] ss:$12 sps:$4 sm:$0xff]   ;;  %v1680_v39 = vcombine.low %v386_v34, %v386_v34  ;;  %v2155_v40 = vld [vmem:[%s2393_s19 + $0x30] ss:$12 sps:$4 sm:$0xff]  }
  0x18   : > { %1796 = vmatpush3.bf16.msra.mxu0 %v2346_v13  ;;  %1844 = vmatprep.subr.bf16.mxu1 %v2298_v7  ;;  %v2158_v42 = vld [vmem:[%s2393_s19 + $0x8] ss:$12 sps:$4 sm:$0xff]   ;;  %v742_v43 = vld [vmem:[%s2393_s19 + $0x60] sm:$0xff]  ;;  %v2167_v52 = vld [vmem:[%s2393_s19 + $0x50] ss:$12 sps:$4 sm:$0xff]  }
  0x19   : > { %1797 = vmatprep.subr.bf16.mxu0 %v2353_v14  ;;  %v2159_v44 = vld [vmem:[%s2393_s19 + $0x48] ss:$12 sps:$4 sm:$0xff]   ;;  %v1719_v45 = vcombine.high %v742_v43, %v742_v43  ;;  %v2161_v46 = vld [vmem:[%s2393_s19 + $0x20] ss:$12 sps:$4 sm:$0xff]   ;;  %v1718_v47 = vcombine.low %v742_v43, %v742_v43  ;;  %v2166_v48 = vld [vmem:[%s2422_s26 + $0x4] ss:$12 sps:$4 sm:$0xff]  }
  0x1a   : > { %2008 = vmatmul.mubr.msk.bf16.gmra.mrb[4].mxu1 %vm566_vm1, %v2123_v15  ;;  %v2163_v49 = vld [vmem:[%s2393_s19 + $0x38] ss:$12 sps:$4 sm:$0xff]   ;;  %v2164_v50 = vld [vmem:[%s2422_s26] ss:$12 sps:$4 sm:$0xff]   ;;  %v2168_v51 = vld [vmem:[%s2422_s26 + $0x1c] ss:$12 sps:$4 sm:$0xff]  }
  0x1b   : > { %2011 = vmatprep.mubr.msk.bf16.mxu1 %vm2213_vm0, %v2212_v2  ;;  %1845 = vmatpush3.bf16.msra.mxu1 %v2306_v8  ;;  %v2170_v53 = vld [vmem:[%s2422_s26 + $0x18] ss:$12 sps:$4 sm:$0xff]   ;;  %v2172_v54 = vld [vmem:[%s2422_s26 + $0x34] ss:$12 sps:$4 sm:$0xff]   ;;  %v2171_v55 = vld [vmem:[%s2393_s19 + $0x68] ss:$0 sps:$4 sm:$0xff]  }
  0x1c   : > { %1798 = vmatpush3.bf16.msra.mxu0 %v2361_v16  ;;  %1846 = vmatprep.subr.bf16.mxu1 %v2316_v9  ;;  %v2174_v56 = vld [vmem:[%s2422_s26 + $0x30] ss:$12 sps:$4 sm:$0xff]   ;;  %v2175_v57 = vld [vmem:[%s2422_s26 + $0x4c] ss:$12 sps:$4 sm:$0xff]   ;;  %v2177_v58 = vld [vmem:[%s2422_s26 + $0x8] ss:$12 sps:$4 sm:$0xff]  }
  0x1d   : > { %1799 = vmatprep.subr.bf16.mxu0 %v2368_v17  ;;  %v989_v59 = vld [vmem:[%s2422_s26 + $0x60] sm:$0xff]  ;;  %v2178_v60 = vld [vmem:[%s2422_s26 + $0x48] ss:$12 sps:$4 sm:$0xff]   ;;  %v2193_v11 = vld [vmem:[%s2443_s30 + $0x30] ss:$12 sps:$4 sm:$0xff]  }
  0x1e   : > { %v1739_v61 = vcombine.high %v989_v59, %v989_v59  ;;  %v2180_v62 = vld [vmem:[%s2422_s26 + $0x20] ss:$12 sps:$4 sm:$0xff]   ;;  %v1738_v63 = vcombine.low %v989_v59, %v989_v59  ;;  %v2202_v18 = vld [vmem:[%s2443_s30 + $0x68] ss:$0 sps:$4 sm:$0xff]  }
  0x1f   : > { %1847 = vmatpush3.bf16.msra.mxu1 %v2328_v10  ;;  %v2199_v15 = vld [vmem:[%s2443_s30 + $0x20] ss:$12 sps:$4 sm:$0xff]  }
  0x20   : > { %1800 = vmatpush3.bf16.msra.mxu0 %v2379_v19  ;;  %1848 = vmatprep.subr.bf16.mxu1 %v2336_v12 }
  0x21   : > { %1801 = vmatprep.subr.bf16.mxu0 %v2386_v20 }
  0x22   : > { %2012 = vmatmul.mubr.msk.bf16.gmra.mrb[8].mxu1 %vm566_vm1, %v2128_v21 }
  0x23   : > { %2015 = vmatprep.mubr.msk.bf16.mxu1 %vm2213_vm0, %v2212_v2  ;;  %1849 = vmatpush3.bf16.msra.mxu1 %v2346_v13 }
  0x24   : > { %1802 = vmatpush3.bf16.msra.mxu0 %v2400_v22  ;;  %1850 = vmatprep.subr.bf16.mxu1 %v2353_v14 }
  0x25   : > { %2023 = vmatprep.subr.bf16.mxu0 %v2212_v2 }
  0x27   : > { %615 = vmatmul.mubr.bf16.vlgmr.msra.gmra.mrb[0].mxu0 %v2131_v23  ;;  %1851 = vmatpush3.bf16.msra.mxu1 %v2361_v16 }
  0x28   : > { %2024 = vmatpush3.bf16.msra.mxu0 %v2272_v3  ;;  %622 = vmatprep.mubr.bf16.mxu0 %v2135_v24 }
  0x29   : > { %1852 = vmatprep.subr.bf16.mxu1 %v2368_v17  ;;  %2025 = vmatprep.subr.bf16.mxu0 %v2212_v2 }
  0x2a   : > { %2016 = vmatmul.mubr.msk.bf16.gmra.mrb[12].mxu1 %vm566_vm1, %v2134_v25 }
  0x2b   : > { %2019 = vmatprep.mubr.msk.bf16.mxu1 %vm2213_vm0, %v2212_v2  ;;  %1853 = vmatpush3.bf16.msra.mxu1 %v2379_v19 }
  0x2c   : > { %1854 = vmatprep.subr.bf16.mxu1 %v2386_v20  ;;  %2026 = vmatpush3.bf16.msra.mxu0 %v2293_v6 }
  0x2d   : > { %2047 = vmatprep.subr.bf16.mxu0 %v2212_v2 }
  0x2f   : > { %623 = vmatmul.mubr.bf16.gmra.mrb[4].mxu0 %v2137_v26  ;;  %1855 = vmatpush3.bf16.msra.mxu1 %v2400_v22 }
  0x30   : > { %630 = vmatprep.mubr.bf16.mxu0 %v2139_v27  ;;  %1893 = vmatprep.subr.bf16.mxu1 %v2260_v0 }
  0x32   : > { %2020 = vmatmul.mubr.msk.bf16.gmra.mrb[16].mxu1 %vm566_vm1, %v2138_v28 }
  0x33   : > { %861 = vmatprep.mubr.bf16.mxu1 %v2144_v29 }
  0x37   : > { %631 = vmatmul.mubr.bf16.gmra.mrb[8].mxu0 %v2141_v30 }
  0x38   : > { %638 = vmatprep.mubr.bf16.mxu0 %v2145_v31 }
  0x3a   : > { %862 = vmatmul.mubr.bf16.vlgmr.msra.gmra.mrb[20].mxu1 %v2142_v32 }
  0x3b   : > { %869 = vmatprep.mubr.bf16.mxu1 %v2148_v33  ;;  %1894 = vmatpush3.bf16.msra.mxu1 %v2265_v1 }
  0x3c   : > { %1895 = vmatprep.subr.bf16.mxu1 %v2280_v4 }
  0x3f   : > { %639 = vmatmul.mubr.bf16.gmra.mrb[12].mxu0 %v2147_v35  ;;  %1896 = vmatpush3.bf16.msra.mxu1 %v2286_v5 }
  0x40   : > { %646 = vmatprep.mubr.bf16.mxu0 %v1681_v36  ;;  %1897 = vmatprep.subr.bf16.mxu1 %v2298_v7 }
  0x42   : > { %870 = vmatmul.mubr.bf16.gmra.mrb[24].mxu1 %v2150_v37 }
  0x43   : > { %877 = vmatprep.mubr.bf16.mxu1 %v2153_v38  ;;  %1898 = vmatpush3.bf16.msra.mxu1 %v2306_v8 }
  0x44   : > { %1899 = vmatprep.subr.bf16.mxu1 %v2316_v9 }
  0x47   : > { %647 = vmatmul.mubr.bf16.gmra.mrb[16].mxu0 %v1680_v39  ;;  %1900 = vmatpush3.bf16.msra.mxu1 %v2328_v10 }
  0x48   : > { %2027 = vmatprep.mubr.msk.bf16.mxu0 %vm2213_vm0, %v2212_v2  ;;  %1901 = vmatprep.subr.bf16.mxu1 %v2336_v12 }
  0x4a   : > { %878 = vmatmul.mubr.bf16.gmra.mrb[28].mxu1 %v2155_v40 }
  0x4b   : > { %885 = vmatprep.mubr.bf16.mxu1 %v2156_v41  ;;  %1902 = vmatpush3.bf16.msra.mxu1 %v2346_v13 }
  0x4c   : > { %1903 = vmatprep.subr.bf16.mxu1 %v2353_v14 }
  0x4f   : > { %2028 = vmatmul.mubr.msk.bf16.vlgmr.msra.gmra.mrb[20].mxu0 %vm566_vm1, %v2158_v42  ;;  %1904 = vmatpush3.bf16.msra.mxu1 %v2361_v16 }
  0x50   : > { %2048 = vmatpush3.bf16.msra.mxu0 %v2272_v3  ;;  %2031 = vmatprep.mubr.msk.bf16.mxu0 %vm2213_vm0, %v2212_v2 }
  0x51   : > { %1905 = vmatprep.subr.bf16.mxu1 %v2368_v17  ;;  %2049 = vmatprep.subr.bf16.mxu0 %v2212_v2 }
  0x52   : > { %886 = vmatmul.mubr.bf16.gmra.mrb[32].mxu1 %v2159_v44 }
  0x53   : > { %893 = vmatprep.mubr.bf16.mxu1 %v1719_v45  ;;  %1906 = vmatpush3.bf16.msra.mxu1 %v2379_v19 }
  0x54   : > { %1907 = vmatprep.subr.bf16.mxu1 %v2386_v20  ;;  %2050 = vmatpush3.bf16.msra.mxu0 %v2293_v6 }
  0x55   : > { %2071 = vmatprep.subr.bf16.mxu0 %v2212_v2 }
  0x57   : > { %2032 = vmatmul.mubr.msk.bf16.gmra.mrb[24].mxu0 %vm566_vm1, %v2161_v46  ;;  %1908 = vmatpush3.bf16.msra.mxu1 %v2400_v22 }
  0x58   : > { %2035 = vmatprep.mubr.msk.bf16.mxu0 %vm2213_vm0, %v2212_v2  ;;  %1946 = vmatprep.subr.bf16.mxu1 %v2260_v0  ;;  %v2185_v0 = vld [vmem:[%s2443_s30 + $0x4] ss:$12 sps:$4 sm:$0xff]  }
  0x5a   : > { %894 = vmatmul.mubr.bf16.gmra.mrb[36].mxu1 %v1718_v47 }
  0x5b   : > { %1108 = vmatprep.mubr.bf16.mxu1 %v2166_v48 }
  0x5f   : > { %2036 = vmatmul.mubr.msk.bf16.gmra.mrb[28].mxu0 %vm566_vm1, %v2163_v49 }
  0x60   : > { %2039 = vmatprep.mubr.msk.bf16.mxu0 %vm2213_vm0, %v2212_v2 }
  0x62   : > { %1109 = vmatmul.mubr.bf16.vlgmr.msra.gmra.mrb[40].mxu1 %v2164_v50 }
  0x63   : > { %1116 = vmatprep.mubr.bf16.mxu1 %v2168_v51  ;;  %1947 = vmatpush3.bf16.msra.mxu1 %v2265_v1  ;;  %v2182_v1 = vld [vmem:[%s2422_s26 + $0x38] ss:$12 sps:$4 sm:$0xff]  }
  0x64   : > { %1948 = vmatprep.subr.bf16.mxu1 %v2280_v4  ;;  %v2183_v4 = vld [vmem:[%s2443_s30] ss:$12 sps:$4 sm:$0xff]  }
  0x67   : > { %2040 = vmatmul.mubr.msk.bf16.gmra.mrb[32].mxu0 %vm566_vm1, %v2167_v52  ;;  %1949 = vmatpush3.bf16.msra.mxu1 %v2286_v5  ;;  %v2187_v5 = vld [vmem:[%s2443_s30 + $0x1c] ss:$12 sps:$4 sm:$0xff]  }
  0x68   : > { %2043 = vmatprep.mubr.msk.bf16.mxu0 %vm2213_vm0, %v2212_v2  ;;  %1950 = vmatprep.subr.bf16.mxu1 %v2298_v7  ;;  %v2186_v7 = vld [vmem:[%s2422_s26 + $0x50] ss:$12 sps:$4 sm:$0xff]  }
  0x6a   : > { %1117 = vmatmul.mubr.bf16.gmra.mrb[44].mxu1 %v2170_v53 }
  0x6b   : > { %1124 = vmatprep.mubr.bf16.mxu1 %v2172_v54  ;;  %1951 = vmatpush3.bf16.msra.mxu1 %v2306_v8  ;;  %v2189_v8 = vld [vmem:[%s2443_s30 + $0x18] ss:$12 sps:$4 sm:$0xff]  }
  0x6c   : > { %1952 = vmatprep.subr.bf16.mxu1 %v2316_v9  ;;  %v2191_v9 = vld [vmem:[%s2443_s30 + $0x34] ss:$12 sps:$4 sm:$0xff]  }
  0x6f   : > { %2044 = vmatmul.mubr.msk.bf16.gmra.mrb[36].mxu0 %vm566_vm1, %v2171_v55  ;;  %1953 = vmatpush3.bf16.msra.mxu1 %v2328_v10  ;;  %v2190_v10 = vld [vmem:[%s2422_s26 + $0x68] ss:$0 sps:$4 sm:$0xff]  }
  0x70   : > { %2051 = vmatprep.mubr.msk.bf16.mxu0 %vm2213_vm0, %v2212_v2  ;;  %1954 = vmatprep.subr.bf16.mxu1 %v2336_v12  ;;  %v2196_v12 = vld [vmem:[%s2443_s30 + $0x8] ss:$12 sps:$4 sm:$0xff]  }
  0x72   : > { %1125 = vmatmul.mubr.bf16.gmra.mrb[48].mxu1 %v2174_v56 }
  0x73   : > { %1132 = vmatprep.mubr.bf16.mxu1 %v2175_v57  ;;  %1955 = vmatpush3.bf16.msra.mxu1 %v2346_v13  ;;  %v2197_v13 = vld [vmem:[%s2443_s30 + $0x48] ss:$12 sps:$4 sm:$0xff]  }
  0x74   : > { %1956 = vmatprep.subr.bf16.mxu1 %v2353_v14 }
  0x77   : > { %2052 = vmatmul.mubr.msk.bf16.vlgmr.msra.gmra.mrb[40].mxu0 %vm566_vm1, %v2177_v58  ;;  %1957 = vmatpush3.bf16.msra.mxu1 %v2361_v16 }
  0x78   : > { %2072 = vmatpush3.bf16.msra.mxu0 %v2272_v3  ;;  %2055 = vmatprep.mubr.msk.bf16.mxu0 %vm2213_vm0, %v2212_v2 }
  0x79   : > { %1958 = vmatprep.subr.bf16.mxu1 %v2368_v17  ;;  %2073 = vmatprep.subr.bf16.mxu0 %v2212_v2  ;;  %v2201_v17 = vld [vmem:[%s2443_s30 + $0x38] ss:$12 sps:$4 sm:$0xff]  }
  0x7a   : > { %1133 = vmatmul.mubr.bf16.gmra.mrb[52].mxu1 %v2178_v60 }
  0x7b   : > { %1140 = vmatprep.mubr.bf16.mxu1 %v1739_v61  ;;  %1959 = vmatpush3.bf16.msra.mxu1 %v2379_v19  ;;  %v2203_v19 = vld [vmem:[%s2443_s30 + $0x50] ss:$12 sps:$4 sm:$0xff]  }
  0x7c   : > { %1960 = vmatprep.subr.bf16.mxu1 %v2386_v20  ;;  %2074 = vmatpush3.bf16.msra.mxu0 %v2293_v6 }
  0x7f   : > { %2056 = vmatmul.mubr.msk.bf16.gmra.mrb[44].mxu0 %vm566_vm1, %v2180_v62  ;;  %1961 = vmatpush3.bf16.msra.mxu1 %v2400_v22 }
  0x80   : > { %2059 = vmatprep.mubr.msk.bf16.mxu0 %vm2213_vm0, %v2212_v2  ;;  %2095 = vmatprep.subr.bf16.mxu1 %v2212_v2 }
  0x82   : > { %1141 = vmatmul.mubr.bf16.gmra.mrb[56].mxu1 %v1738_v63 }
  0x83   : > { %1355 = vmatprep.mubr.bf16.mxu1 %v2185_v0 }
  0x87   : > { %2060 = vmatmul.mubr.msk.bf16.gmra.mrb[48].mxu0 %vm566_vm1, %v2182_v1 }
  0x88   : > { %2063 = vmatprep.mubr.msk.bf16.mxu0 %vm2213_vm0, %v2212_v2 }
  0x8a   : > { %1356 = vmatmul.mubr.bf16.vlgmr.msra.gmra.mrb[60].mxu1 %v2183_v4 }
  0x8b   : > { %1363 = vmatprep.mubr.bf16.mxu1 %v2187_v5  ;;  %2097 = vmatpush3.bf16.msra.mxu1 %v2272_v3  ;;  %v2194_v3 = vld [vmem:[%s2443_s30 + $0x4c] ss:$12 sps:$4 sm:$0xff]  }
  0x8c   : > { %2096 = vmatprep.subr.bf16.mxu1 %v2212_v2 }
  0x8f   : > { %2064 = vmatmul.mubr.msk.bf16.gmra.mrb[52].mxu0 %vm566_vm1, %v2186_v7  ;;  %2098 = vmatpush3.bf16.msra.mxu1 %v2293_v6  ;;  %v1236_v6 = vld [vmem:[%s2443_s30 + $0x60] sm:$0xff] }
  0x90   : > { %2067 = vmatprep.mubr.msk.bf16.mxu0 %vm2213_vm0, %v2212_v2  ;;  %v1759_v14 = vcombine.high %v1236_v6, %v1236_v6  ;;  %v1758_v16 = vcombine.low %v1236_v6, %v1236_v6 }
  0x92   : > { %1364 = vmatmul.mubr.bf16.gmra.mrb[64].mxu1 %v2189_v8 }
  0x93   : > { %1371 = vmatprep.mubr.bf16.mxu1 %v2191_v9 }
  0x97   : > { %2068 = vmatmul.mubr.msk.bf16.gmra.mrb[56].mxu0 %vm566_vm1, %v2190_v10 }
  0x98   : > { %2075 = vmatprep.mubr.msk.bf16.mxu0 %vm2213_vm0, %v2212_v2 }
  0x9a   : > { %1372 = vmatmul.mubr.bf16.gmra.mrb[68].mxu1 %v2193_v11 }
  0x9b   : > { %1379 = vmatprep.mubr.bf16.mxu1 %v2194_v3 }
  0x9f   : > { %2076 = vmatmul.mubr.msk.bf16.vlgmr.msra.gmra.mrb[60].mxu0 %vm566_vm1, %v2196_v12 }
  0xa0   : > { %2079 = vmatprep.mubr.msk.bf16.mxu0 %vm2213_vm0, %v2212_v2 }
  0xa2   : > { %1380 = vmatmul.mubr.bf16.gmra.mrb[72].mxu1 %v2197_v13 }
  0xa3   : > { %1387 = vmatprep.mubr.bf16.mxu1 %v1759_v14 }
  0xa7   : > { %2080 = vmatmul.mubr.msk.bf16.gmra.mrb[64].mxu0 %vm566_vm1, %v2199_v15 }
  0xa8   : > { %2083 = vmatprep.mubr.msk.bf16.mxu0 %vm2213_vm0, %v2212_v2 }
  0xaa   : > { %1388 = vmatmul.mubr.bf16.gmra.mrb[76].mxu1 %v1758_v16 }
  0xab   : > { %2091 = vmatprep.mubr.msk.bf16.mxu1 %vm2213_vm0, %v2212_v2 }
  0xaf   : > { %2084 = vmatmul.mubr.msk.bf16.gmra.mrb[68].mxu0 %vm566_vm1, %v2201_v17 }
  0xb0   : > { %2087 = vmatprep.mubr.msk.bf16.mxu0 %vm2213_vm0, %v2212_v2 }
  0xb2   : > { %2092 = vmatmul.mubr.msk.bf16.vlgmr.msra.gmra.mrb[80].mxu1 %vm566_vm1, %v2202_v18 }
  0xb7   : > { %2088 = vmatmul.mubr.msk.bf16.gmra.mrb[72].mxu0 %vm566_vm1, %v2203_v19 }
  0xe5   : > { %v688_v20 = vpop.f32.mrb[0].mxu1 }
  0xe6   : > { %v2005_v21 = vpop.f32.mrb[1].mxu1 }
  0xe7   : > { %v691_v22 = vpop.f32.mrb[2].mxu1 }
  0xe8   : > { %v2006_v23 = vpop.f32.mrb[3].mxu1 }
  0xed   : > { %v696_v24 = vpop.f32.mrb[4].mxu1 }
  0xee   : > { %v2009_v25 = vpop.f32.mrb[5].mxu1 }
  0xef   : > { %v699_v26 = vpop.f32.mrb[6].mxu1 }
  0xf0   : > { %v2010_v27 = vpop.f32.mrb[7].mxu1 }
  0xf5   : > { %v704_v28 = vpop.f32.mrb[8].mxu1 }
  0xf6   : > { %v2013_v29 = vpop.f32.mrb[9].mxu1 }
  0xf7   : > { %v707_v30 = vpop.f32.mrb[10].mxu1 }
  0xf8   : > { %v2014_v31 = vpop.f32.mrb[11].mxu1 }
  0xfa   : > { %v1803_v32 = vpop.f32.mrb[0].mxu0 }
  0xfb   : > { %v1804_v33 = vpop.f32.mrb[1].mxu0 }
  0xfc   : > { %v1805_v2 = vadd.f32 %v1804_v33, %v1803_v32  ;;  %v1806_v34 = vpop.f32.mrb[2].mxu0 }
  0xfd   : > { %v1807_v35 = vpop.f32.mrb[3].mxu0  ;;  %v712_v36 = vpop.f32.mrb[12].mxu1 }
  0xfe   : > { %v2576_v37 = vadd.f32 %v1805_v2, %v688_v20  ;;  %v1808_v38 = vadd.f32 %v1807_v35, %v1806_v34  ;;  %v2017_v39 = vpop.f32.mrb[13].mxu1 }
  0xff   : > { %v715_v40 = vpop.f32.mrb[14].mxu1 }
 0x100   : > { %v2578_v41 = vadd.f32 %v1808_v38, %v691_v22  ;;  %v2018_v42 = vpop.f32.mrb[15].mxu1 }
 0x102   : > { %v1809_v43 = vpop.f32.mrb[4].mxu0 }
 0x103   : > { %v1810_v44 = vpop.f32.mrb[5].mxu0 }
 0x104   : > { %v1811_v45 = vadd.f32 %v1810_v44, %v1809_v43  ;;  %v1812_v46 = vpop.f32.mrb[6].mxu0 }
 0x105   : > { %v1813_v47 = vpop.f32.mrb[7].mxu0  ;;  %v720_v48 = vpop.f32.mrb[16].mxu1 }
 0x106   : > { %v2580_v49 = vadd.f32 %v1811_v45, %v696_v24  ;;  %v1814_v50 = vadd.f32 %v1813_v47, %v1812_v46  ;;  %v2021_v51 = vpop.f32.mrb[17].mxu1 }
 0x107   : > { %v723_v52 = vpop.f32.mrb[18].mxu1 }
 0x108   : > { %v2582_v53 = vadd.f32 %v1814_v50, %v699_v26  ;;  %v2022_v54 = vpop.f32.mrb[19].mxu1 }
 0x10a   : > { %v1815_v55 = vpop.f32.mrb[8].mxu0 }
 0x10b   : > { %v1816_v56 = vpop.f32.mrb[9].mxu0 }
 0x10c   : > { %v1817_v57 = vadd.f32 %v1816_v56, %v1815_v55  ;;  %v1818_v58 = vpop.f32.mrb[10].mxu0 }
 0x10d   : > { %v1819_v59 = vpop.f32.mrb[11].mxu0  ;;  %v1856_v60 = vpop.f32.mrb[20].mxu1 }
 0x10e   : > { %v2584_v61 = vadd.f32 %v1817_v57, %v704_v28  ;;  %v1820_v62 = vadd.f32 %v1819_v59, %v1818_v58  ;;  %v1857_v63 = vpop.f32.mrb[21].mxu1 }
 0x10f   : > { %v1858_v0 = vadd.f32 %v1857_v63, %v1856_v60  ;;  %v1859_v1 = vpop.f32.mrb[22].mxu1 }
 0x110   : > { %v2586_v4 = vadd.f32 %v1820_v62, %v707_v30  ;;  %v1860_v5 = vpop.f32.mrb[23].mxu1 }
 0x111   : > { %v1861_v7 = vadd.f32 %v1860_v5, %v1859_v1 }
 0x112   : > { %v1821_v8 = vpop.f32.mrb[12].mxu0 }
 0x113   : > { %v1822_v9 = vpop.f32.mrb[13].mxu0 }
 0x114   : > { %v1823_v10 = vadd.f32 %v1822_v9, %v1821_v8  ;;  %v1824_v11 = vpop.f32.mrb[14].mxu0 }
 0x115   : > { %v1825_v3 = vpop.f32.mrb[15].mxu0  ;;  %v1862_v12 = vpop.f32.mrb[24].mxu1 }
 0x116   : > { %v2588_v6 = vadd.f32 %v1823_v10, %v712_v36  ;;  %v1826_v13 = vadd.f32 %v1825_v3, %v1824_v11  ;;  %v1863_v14 = vpop.f32.mrb[25].mxu1 }
 0x117   : > { %v1864_v15 = vadd.f32 %v1863_v14, %v1862_v12  ;;  %v1865_v16 = vpop.f32.mrb[26].mxu1 }
 0x118   : > { %v2590_v17 = vadd.f32 %v1826_v13, %v715_v40  ;;  %v1866_v18 = vpop.f32.mrb[27].mxu1 }
 0x119   : > { %v1867_v19 = vadd.f32 %v1866_v18, %v1865_v16 }
 0x11a   : > { %v1827_v20 = vpop.f32.mrb[16].mxu0 }
 0x11b   : > { %v1828_v21 = vpop.f32.mrb[17].mxu0 }
 0x11c   : > { %v1829_v22 = vadd.f32 %v1828_v21, %v1827_v20  ;;  %v1830_v23 = vpop.f32.mrb[18].mxu0 }
 0x11d   : > { %v1831_v24 = vpop.f32.mrb[19].mxu0  ;;  %v1868_v25 = vpop.f32.mrb[28].mxu1 }
 0x11e   : > { %v2592_v26 = vadd.f32 %v1829_v22, %v720_v48  ;;  %v1869_v27 = vpop.f32.mrb[29].mxu1 }
 0x11f   : > { %v1870_v28 = vadd.f32 %v1869_v27, %v1868_v25  ;;  %v1871_v29 = vpop.f32.mrb[30].mxu1 }
 0x120   : > { %v1872_v30 = vpop.f32.mrb[31].mxu1 }
 0x121   : > { %v1873_v31 = vadd.f32 %v1872_v30, %v1871_v29 }
 0x122   : > { %v935_v32 = vpop.f32.mrb[20].mxu0 }
 0x123   : > { %v2594_v33 = vadd.f32 %v1858_v0, %v935_v32  ;;  %v2029_v2 = vpop.f32.mrb[21].mxu0 }
 0x124   : > { %v938_v34 = vpop.f32.mrb[22].mxu0 }
 0x125   : > { %v1467_v35 = vmax.f32 %v2576_v37, %v2594_v33  ;;  %v2598_v36 = vadd.f32 %v1861_v7, %v938_v34  ;;  %v2030_v38 = vpop.f32.mrb[23].mxu0  ;;  %v1874_v39 = vpop.f32.mrb[32].mxu1 }
 0x126   : > { %v1875_v40 = vpop.f32.mrb[33].mxu1 }
 0x127   : > { %v1468_v42 = vmax.f32 %v2578_v41, %v2598_v36  ;;  %v1876_v43 = vadd.f32 %v1875_v40, %v1874_v39  ;;  %v1877_v44 = vpop.f32.mrb[34].mxu1 }
 0x128   : > { %v1878_v45 = vpop.f32.mrb[35].mxu1 }
 0x129   : > { %v1879_v46 = vadd.f32 %v1878_v45, %v1877_v44 }
 0x12a   : > { %v943_v47 = vpop.f32.mrb[24].mxu0 }
 0x12b   : > { %v2602_v48 = vadd.f32 %v1864_v15, %v943_v47  ;;  %v2033_v50 = vpop.f32.mrb[25].mxu0 }
 0x12c   : > { %v946_v51 = vpop.f32.mrb[26].mxu0 }
 0x12d   : > { %v1469_v52 = vmax.f32 %v2580_v49, %v2602_v48  ;;  %v2606_v54 = vadd.f32 %v1867_v19, %v946_v51  ;;  %v2034_v55 = vpop.f32.mrb[27].mxu0  ;;  %v1880_v56 = vpop.f32.mrb[36].mxu1 }
 0x12e   : > { %v1881_v57 = vpop.f32.mrb[37].mxu1 }
 0x12f   : > { %v1470_v58 = vmax.f32 %v2582_v53, %v2606_v54  ;;  %v1882_v59 = vadd.f32 %v1881_v57, %v1880_v56  ;;  %v1883_v60 = vpop.f32.mrb[38].mxu1 }
 0x130   : > { %v1884_v62 = vpop.f32.mrb[39].mxu1 }
 0x132   : > { %v951_v63 = vpop.f32.mrb[28].mxu0 }
 0x133   : > { %v2610_v0 = vadd.f32 %v1870_v28, %v951_v63  ;;  %v2037_v1 = vpop.f32.mrb[29].mxu0 }
 0x134   : > { %v954_v5 = vpop.f32.mrb[30].mxu0 }
 0x135   : > { %v1471_v7 = vmax.f32 %v2584_v61, %v2610_v0  ;;  %v2614_v8 = vadd.f32 %v1873_v31, %v954_v5  ;;  %v2038_v9 = vpop.f32.mrb[31].mxu0  ;;  %v1909_v10 = vpop.f32.mrb[40].mxu1 }
 0x136   : > { %v1910_v11 = vpop.f32.mrb[41].mxu1 }
 0x137   : > { %v1472_v3 = vmax.f32 %v2586_v4, %v2614_v8  ;;  %v1911_v12 = vadd.f32 %v1910_v11, %v1909_v10  ;;  %v1912_v13 = vpop.f32.mrb[42].mxu1 }
 0x138   : > { %v1913_v14 = vpop.f32.mrb[43].mxu1 }
 0x139   : > { %v1914_v15 = vadd.f32 %v1913_v14, %v1912_v13 }
 0x13a   : > { %v959_v16 = vpop.f32.mrb[32].mxu0 }
 0x13b   : > { %v2618_v18 = vadd.f32 %v1876_v43, %v959_v16  ;;  %v2041_v19 = vpop.f32.mrb[33].mxu0 }
 0x13c   : > { %v962_v20 = vpop.f32.mrb[34].mxu0 }
 0x13d   : > { %v1473_v21 = vmax.f32 %v2588_v6, %v2618_v18  ;;  %v2622_v22 = vadd.f32 %v1879_v46, %v962_v20  ;;  %v2042_v23 = vpop.f32.mrb[35].mxu0  ;;  %v1915_v24 = vpop.f32.mrb[44].mxu1 }
 0x13e   : > { %v1916_v25 = vpop.f32.mrb[45].mxu1 }
 0x13f   : > { %v1474_v27 = vmax.f32 %v2590_v17, %v2622_v22  ;;  %v1917_v28 = vadd.f32 %v1916_v25, %v1915_v24  ;;  %v1918_v29 = vpop.f32.mrb[46].mxu1 }
 0x140   : > { %v1919_v30 = vpop.f32.mrb[47].mxu1 }
 0x141   : > { %v1920_v31 = vadd.f32 %v1919_v30, %v1918_v29 }
 0x142   : > { %v967_v32 = vpop.f32.mrb[36].mxu0 }
 0x143   : > { %v2626_v2 = vadd.f32 %v1882_v59, %v967_v32  ;;  %v2045_v34 = vpop.f32.mrb[37].mxu0 }
 0x144   : > { %v970_v38 = vpop.f32.mrb[38].mxu0 }
 0x145   : > { %v1475_v39 = vmax.f32 %v2592_v26, %v2626_v2  ;;  %v2046_v40 = vpop.f32.mrb[39].mxu0  ;;  %v1921_v43 = vpop.f32.mrb[48].mxu1 }
 0x146   : > { %v1922_v44 = vpop.f32.mrb[49].mxu1 }
 0x147   : > { %v1923_v45 = vadd.f32 %v1922_v44, %v1921_v43  ;;  %v1924_v46 = vpop.f32.mrb[50].mxu1 }
 0x148   : > { %v1925_v47 = vpop.f32.mrb[51].mxu1 }
 0x149   : > { %v1926_v50 = vadd.f32 %v1925_v47, %v1924_v46 }
 0x14a   : > { %v1182_v51 = vpop.f32.mrb[40].mxu0 }
 0x14b   : > { %v2630_v55 = vadd.f32 %v1911_v12, %v1182_v51  ;;  %v2053_v56 = vpop.f32.mrb[41].mxu0 }
 0x14c   : > { %v1185_v57 = vpop.f32.mrb[42].mxu0 }
 0x14d   : > { %v2632_v60 = vadd.f32 %v1914_v15, %v1185_v57  ;;  %v2054_v59 = vpop.f32.mrb[43].mxu0  ;;  %v1927_v62 = vpop.f32.mrb[52].mxu1 }
 0x14e   : > { %v1928_v63 = vpop.f32.mrb[53].mxu1 }
 0x14f   : > { %v1929_v1 = vadd.f32 %v1928_v63, %v1927_v62  ;;  %v1930_v5 = vpop.f32.mrb[54].mxu1 }
 0x150   : > { %v1931_v9 = vpop.f32.mrb[55].mxu1 }
 0x151   : > { %v1932_v10 = vadd.f32 %v1931_v9, %v1930_v5 }
 0x152   : > { %v1190_v11 = vpop.f32.mrb[44].mxu0 }
 0x153   : > { %v2634_v13 = vadd.f32 %v1917_v28, %v1190_v11  ;;  %v2057_v14 = vpop.f32.mrb[45].mxu0 }
 0x154   : > { %v1193_v16 = vpop.f32.mrb[46].mxu0 }
 0x155   : > { %v2636_v19 = vadd.f32 %v1920_v31, %v1193_v16  ;;  %v2058_v12 = vpop.f32.mrb[47].mxu0  ;;  %v1933_v20 = vpop.f32.mrb[56].mxu1 }
 0x156   : > { %v1934_v23 = vpop.f32.mrb[57].mxu1 }
 0x157   : > { %v1935_v24 = vadd.f32 %v1934_v23, %v1933_v20  ;;  %v1936_v15 = vpop.f32.mrb[58].mxu1 }
 0x158   : > { %v1937_v25 = vpop.f32.mrb[59].mxu1 }
 0x15a   : > { %v1198_v29 = vpop.f32.mrb[48].mxu0 }
 0x15b   : > { %v2638_v30 = vadd.f32 %v1923_v45, %v1198_v29  ;;  %v2061_v32 = vpop.f32.mrb[49].mxu0 }
 0x15c   : > { %v1201_v34 = vpop.f32.mrb[50].mxu0 }
 0x15d   : > { %v2640_v38 = vadd.f32 %v1926_v50, %v1201_v34  ;;  %v2062_v40 = vpop.f32.mrb[51].mxu0  ;;  %v1962_v28 = vpop.f32.mrb[60].mxu1 }
 0x15e   : > { %v1963_v43 = vpop.f32.mrb[61].mxu1 }
 0x15f   : > { %v1964_v44 = vadd.f32 %v1963_v43, %v1962_v28  ;;  %v1965_v46 = vpop.f32.mrb[62].mxu1 }
 0x160   : > { %v1966_v31 = vpop.f32.mrb[63].mxu1 }
 0x161   : > { %v1967_v47 = vadd.f32 %v1966_v31, %v1965_v46 }
 0x162   : > { %v1206_v51 = vpop.f32.mrb[52].mxu0 }
 0x163   : > { %v2642_v56 = vadd.f32 %v1929_v1, %v1206_v51  ;;  %v2065_v57 = vpop.f32.mrb[53].mxu0 }
 0x164   : > { %v1209_v59 = vpop.f32.mrb[54].mxu0 }
 0x165   : > { %v2644_v62 = vadd.f32 %v1932_v10, %v1209_v59  ;;  %v2066_v45 = vpop.f32.mrb[55].mxu0  ;;  %v1968_v63 = vpop.f32.mrb[64].mxu1  ;;  %v2652_v59 = vld [vmem:[%s2730_s5] ss:$0 sm:$0xff] }
 0x166   : > { %v1969_v5 = vpop.f32.mrb[65].mxu1 }
 0x167   : > { %v1970_v9 = vadd.f32 %v1969_v5, %v1968_v63  ;;  %v1971_v50 = vpop.f32.mrb[66].mxu1 }
 0x168   : > { %v1972_v11 = vpop.f32.mrb[67].mxu1 }
 0x169   : > { %v1973_v14 = vadd.f32 %v1972_v11, %v1971_v50 }
 0x16a   : > { %v1214_v16 = vpop.f32.mrb[56].mxu0 }
 0x16b   : > { %v2646_v12 = vadd.f32 %v1935_v24, %v1214_v16  ;;  %v2069_v20 = vpop.f32.mrb[57].mxu0 }
 0x16c   : > { %v1217_v23 = vpop.f32.mrb[58].mxu0 }
 0x16d   : > { %v2070_v15 = vpop.f32.mrb[59].mxu0  ;;  %v1974_v25 = vpop.f32.mrb[68].mxu1 }
 0x16e   : > { %v1975_v1 = vpop.f32.mrb[69].mxu1 }
 0x16f   : > { %v1976_v29 = vadd.f32 %v1975_v1, %v1974_v25  ;;  %v1977_v32 = vpop.f32.mrb[70].mxu1 }
 0x170   : > { %v1978_v34 = vpop.f32.mrb[71].mxu1 }
 0x171   : > { %v1979_v10 = vadd.f32 %v1978_v34, %v1977_v32 }
 0x172   : > { %v1429_v40 = vpop.f32.mrb[60].mxu0 }
 0x173   : > { %v1430_v28 = vadd.f32 %v1964_v44, %v1429_v40  ;;  %v2077_v43 = vpop.f32.mrb[61].mxu0 }
 0x174   : > { %v1432_v46 = vpop.f32.mrb[62].mxu0 }
 0x175   : > { %v1476_v31 = vmax.f32 %v2630_v55, %v1430_v28  ;;  %v1433_v51 = vadd.f32 %v1967_v47, %v1432_v46  ;;  %v2078_v57 = vpop.f32.mrb[63].mxu0  ;;  %v1980_v24 = vpop.f32.mrb[72].mxu1 }
 0x176   : > { %v1981_v45 = vpop.f32.mrb[73].mxu1 }
 0x177   : > { %v1485_v63 = vmax.f32 %v1467_v35, %v1476_v31  ;;  %v1477_v5 = vmax.f32 %v2632_v60, %v1433_v51  ;;  %v1982_v44 = vadd.f32 %v1981_v45, %v1980_v24  ;;  %v1983_v50 = vpop.f32.mrb[74].mxu1 }
 0x178   : > { %v1984_v11 = vpop.f32.mrb[75].mxu1 }
 0x179   : > { %v1501_v55 = vadd.f32 %v2652_v59, %v1485_v63  ;;  %v1486_v47 = vmax.f32 %v1468_v42, %v1477_v5  ;;  %v1985_v16 = vadd.f32 %v1984_v11, %v1983_v50 }
 0x17a   : > { %v1437_v20 = vpop.f32.mrb[64].mxu0 }
 0x17b   : > { %v1510_v23 = vmax.f32 %v1501_v55, 0.0  ;;  %v1502_v15 = vadd.f32 %v2652_v59, %v1486_v47  ;;  %v1438_v25 = vadd.f32 %v1970_v9, %v1437_v20  ;;  %v2081_v37 = vpop.f32.mrb[65].mxu0 }
 0x17c   : > { %v1440_v33 = vpop.f32.mrb[66].mxu0 }
 0x17d   : > { %v1778_v35 = vpack.c.bf16 %v1510_v23, %v1510_v23  ;;  %v1511_v60 = vmax.f32 %v1502_v15, 0.0  ;;  %v1478_v41 = vmax.f32 %v2634_v13, %v1438_v25  ;;  %v1441_v36 = vadd.f32 %v1973_v14, %v1440_v33  ;;  %v2082_v42 = vpop.f32.mrb[67].mxu0  ;;  %v1986_v1 = vpop.f32.mrb[76].mxu1 }
 0x17e   : > { %v1987_v32 = vpop.f32.mrb[77].mxu1 }
 0x17f   : > { %1557 = vst.msk [vmem:[%s2667_s10] sm:$0xf] %vm1556_vm2, %v1778_v35  ;;  %v1779_v9 = vpack.c.bf16 %v1511_v60, %v1511_v60  ;;  %v1487_v34 = vmax.f32 %v1469_v52, %v1478_v41  ;;  %v1479_v40 = vmax.f32 %v2636_v19, %v1441_v36  ;;  %v1988_v28 = vadd.f32 %v1987_v32, %v1986_v1  ;;  %v1989_v43 = vpop.f32.mrb[78].mxu1 }
 0x180   : > { %v1990_v46 = vpop.f32.mrb[79].mxu1 }
 0x181   : > { %1558 = vst.msk [vmem:[%s2667_s10 + $0x4] sm:$0xf] %vm1556_vm2, %v1779_v9  ;;  %v1503_v13 = vadd.f32 %v2652_v59, %v1487_v34  ;;  %v1488_v14 = vmax.f32 %v1470_v58, %v1479_v40 }
 0x182   : > { %v1445_v31 = vpop.f32.mrb[68].mxu0 }
 0x183   : > { %v1512_v51 = vmax.f32 %v1503_v13, 0.0  ;;  %v1504_v57 = vadd.f32 %v2652_v59, %v1488_v14  ;;  %v1446_v49 = vadd.f32 %v1976_v29, %v1445_v31  ;;  %v2085_v48 = vpop.f32.mrb[69].mxu0 }
 0x184   : > { %v1448_v52 = vpop.f32.mrb[70].mxu0 }
 0x185   : > { %v1780_v19 = vpack.c.bf16 %v1512_v51, %v1512_v51  ;;  %v1513_v24 = vmax.f32 %v1504_v57, 0.0  ;;  %v1480_v45 = vmax.f32 %v2638_v30, %v1446_v49  ;;  %v1461_v63 = vpop.f32.mrb[80].mxu1  ;;  %v1449_v5 = vadd.f32 %v1979_v10, %v1448_v52  ;;  %v2086_v50 = vpop.f32.mrb[71].mxu0 }
 0x186   : > { %v1462_v11 = vadd.f32 %v1988_v28, %v1461_v63  ;;  %v2093_v55 = vpop.f32.mrb[81].mxu1 }
 0x187   : > { %1559 = vst.msk [vmem:[%s2667_s10 + $0x8] sm:$0xf] %vm1556_vm2, %v1780_v19  ;;  %v1781_v53 = vpack.c.bf16 %v1513_v24, %v1513_v24  ;;  %v1489_v54 = vmax.f32 %v1471_v7, %v1480_v45  ;;  %v1481_v58 = vmax.f32 %v2640_v38, %v1449_v5  ;;  %v1464_v29 = vpop.f32.mrb[82].mxu1 }
 0x188   : > { %v1484_v47 = vmax.f32 %v2646_v12, %v1462_v11  ;;  %v2094_v20 = vpop.f32.mrb[83].mxu1 }
 0x189   : > { %1560 = vst.msk [vmem:[%s2667_s10 + $0xc] sm:$0xf] %vm1556_vm2, %v1781_v53  ;;  %v1505_v30 = vadd.f32 %v2652_v59, %v1489_v54  ;;  %v1490_v10 = vmax.f32 %v1472_v3, %v1481_v58 }
 0x18a   : > { %v1493_v61 = vmax.f32 %v1475_v39, %v1484_v47  ;;  %v1453_v0 = vpop.f32.mrb[72].mxu0 }
 0x18b   : > { %v1514_v7 = vmax.f32 %v1505_v30, 0.0  ;;  %v1506_v38 = vadd.f32 %v2652_v59, %v1490_v10  ;;  %v1454_v12 = vadd.f32 %v1982_v44, %v1453_v0  ;;  %v2089_v23 = vpop.f32.mrb[73].mxu0 }
 0x18c   : > { %v1509_v15 = vadd.f32 %v2652_v59, %v1493_v61  ;;  %v1456_v25 = vpop.f32.mrb[74].mxu0 }
 0x18d   : > { %v1782_v37 = vpack.c.bf16 %v1514_v7, %v1514_v7  ;;  %v1515_v33 = vmax.f32 %v1506_v38, 0.0  ;;  %v1482_v4 = vmax.f32 %v2642_v56, %v1454_v12  ;;  %v1457_v8 = vadd.f32 %v1985_v16, %v1456_v25  ;;  %v2090_v3 = vpop.f32.mrb[75].mxu0 }
 0x18e   : > { %v1518_v26 = vmax.f32 %v1509_v15, 0.0 }
 0x18f   : > { %1561 = vst.msk [vmem:[%s2667_s10 + $0x10] sm:$0xf] %vm1556_vm2, %v1782_v37  ;;  %v1783_v2 = vpack.c.bf16 %v1515_v33, %v1515_v33  ;;  %v1491_v39 = vmax.f32 %v1473_v21, %v1482_v4  ;;  %v1483_v44 = vmax.f32 %v2644_v62, %v1457_v8 }
 0x190   : > { %v1786_v35 = vpack.c.bf16 %v1518_v26, %v1518_v26 }
 0x191   : > { %1562 = vst.msk [vmem:[%s2667_s10 + $0x14] sm:$0xf] %vm1556_vm2, %v1783_v2  ;;  %v1507_v60 = vadd.f32 %v2652_v59, %v1491_v39  ;;  %v1492_v56 = vmax.f32 %v1474_v27, %v1483_v44 }
 0x192   : > { %1565 = vst.msk [vmem:[%s2667_s10 + $0x20] sm:$0xf] %vm1556_vm2, %v1786_v35 }
 0x193   : > { %v1516_v16 = vmax.f32 %v1507_v60, 0.0  ;;  %v1508_v41 = vadd.f32 %v2652_v59, %v1492_v56 }
 0x195   : > { %v1784_v36 = vpack.c.bf16 %v1516_v16, %v1516_v16  ;;  %v1517_v42 = vmax.f32 %v1508_v41, 0.0 }
 0x197   : > { %1563 = vst.msk [vmem:[%s2667_s10 + $0x18] sm:$0xf] %vm1556_vm2, %v1784_v36  ;;  %v1785_v6 = vpack.c.bf16 %v1517_v42, %v1517_v42 }
 0x199   : > { %1564 = vst.msk [vmem:[%s2667_s10 + $0x1c] sm:$0xf] %vm1556_vm2, %v1785_v6 }
 0x19a PF: > { %s16_s21 = sadd.s32 1, %s2210_s21  }
 0x19b   : > { %p13_p4 = scmp.ge.s32.totalorder %s16_s21, 4  }
 0x19d   :  { %15 = sbr.rel (!%p13_p4) target bundleno = 1 (0x1), region = 83 }

// kernel: convnet_forward.7
= control target key start
LH: loop header
LB: loop body
LE: loop exit
PB: predicated region body
PF: predicated region fallthrough
CT: control target
= control target key end

     0   :  { %vm1103_vm0 = vmmov 0   ;;  %s1446_s1 = inlined_call_operand.vmem [shape: bf16[512,256], index: 1, kind: input, shape index: {}]   ;;  %s1447_s0 = inlined_call_operand.vmem [shape: bf16[8,512], index: 0, kind: input, shape index: {}]   ;;  %s1448_s3 = inlined_call_operand.vmem [shape: bf16[256,128], index: 3, kind: input, shape index: {}]   ;;  %s1449_s5 = inlined_call_operand.vmem [shape: bf16[128,128], index: 5, kind: input, shape index: {}]   ;;  %s1450_s2 = inlined_call_operand.vmem [shape: f32[1,256], index: 2, kind: input, shape index: {}]   ;;  %s1451_s4 = inlined_call_operand.vmem [shape: f32[1,128], index: 4, kind: input, shape index: {}]   ;;  %s1452_s7 = inlined_call_operand.vmem [shape: f32[8,128], index: 7, kind: output, shape index: {0}]   ;;  %s1453_s6 = inlined_call_operand.vmem [shape: f32[1,128], index: 6, kind: input, shape index: {}]   ;;  %s1454_s8 = inlined_call_operand.vmem [shape: f32[8,128], index: 8, kind: output, shape index: {1}]  }
   0x1   :  { %v978_v0 = vld [vmem:[%s1446_s1 + $0x4] ss:$8 sps:$4 sm:$0xff]   ;;  %v980_v1 = vld [vmem:[%s1446_s1] ss:$8 sps:$4 sm:$0xff]   ;;  %v981_v2 = vld [vmem:[%s1446_s1 + $0x14] ss:$8 sps:$4 sm:$0xff]  }
   0x2   :  { %441 = vmatprep.subr.bf16.mxu0 %v978_v0  ;;  %v983_v3 = vld [vmem:[%s1446_s1 + $0x10] ss:$8 sps:$4 sm:$0xff]   ;;  %v984_v4 = vld [vmem:[%s1446_s1 + $0x24] ss:$8 sps:$4 sm:$0xff]   ;;  %v986_v5 = vld [vmem:[%s1446_s1 + $0x20] ss:$8 sps:$4 sm:$0xff]  }
   0x3   :  { %442 = vmatpush1.bf16.msra.mxu0 %v980_v1  ;;  %v987_v6 = vld [vmem:[%s1446_s1 + $0x34] ss:$8 sps:$4 sm:$0xff]   ;;  %v989_v7 = vld [vmem:[%s1446_s1 + $0x30] ss:$8 sps:$4 sm:$0xff]   ;;  %v990_v8 = vld [vmem:[%s1446_s1 + $0x44] ss:$8 sps:$4 sm:$0xff]  }
   0x4   :  { %443 = vmatprep.subr.bf16.mxu0 %v981_v2  ;;  %v992_v9 = vld [vmem:[%s1446_s1 + $0x40] ss:$8 sps:$4 sm:$0xff]   ;;  %v993_v10 = vld [vmem:[%s1446_s1 + $0x54] ss:$8 sps:$4 sm:$0xff]   ;;  %v995_v11 = vld [vmem:[%s1446_s1 + $0x50] ss:$8 sps:$4 sm:$0xff]  }
   0x5   :  { %v996_v12 = vld [vmem:[%s1446_s1 + $0x64] ss:$8 sps:$4 sm:$0xff]   ;;  %v998_v15 = vld [vmem:[%s1446_s1 + $0x60] ss:$8 sps:$4 sm:$0xff]   ;;  %v999_v16 = vld [vmem:[%s1446_s1 + $0x74] ss:$8 sps:$4 sm:$0xff]  }
   0x6   :  { %v1191_v13 = vld [vmem:[%s1447_s0] sm:$0xff]  ;;  %v1001_v17 = vld [vmem:[%s1446_s1 + $0x70] ss:$8 sps:$4 sm:$0xff]   ;;  %v1005_v20 = vld [vmem:[%s1446_s1 + $0x94] ss:$8 sps:$4 sm:$0xff]  }
   0x7   :  { %444 = vmatpush1.bf16.msra.mxu0 %v983_v3  ;;  %v826_v14 = vcombine.high %v1191_v13, %v1191_v13  ;;  %v1002_v18 = vld [vmem:[%s1446_s1 + $0x84] ss:$8 sps:$4 sm:$0xff]   ;;  %v1004_v19 = vld [vmem:[%s1446_s1 + $0x80] ss:$8 sps:$4 sm:$0xff]   ;;  %v1007_v21 = vld [vmem:[%s1446_s1 + $0x90] ss:$8 sps:$4 sm:$0xff]   ;;  %v825_v47 = vcombine.low %v1191_v13, %v1191_v13 }
   0x8   :  { %445 = vmatprep.subr.bf16.mxu0 %v984_v4  ;;  %v1008_v22 = vld [vmem:[%s1446_s1 + $0xa4] ss:$8 sps:$4 sm:$0xff]   ;;  %v1010_v23 = vld [vmem:[%s1446_s1 + $0xa0] ss:$8 sps:$4 sm:$0xff]   ;;  %v1011_v24 = vld [vmem:[%s1446_s1 + $0xb4] ss:$8 sps:$4 sm:$0xff]  }
   0x9   :  { %473 = vmatprep.mubr.bf16.mxu0 %v826_v14  ;;  %v1013_v25 = vld [vmem:[%s1446_s1 + $0xb0] ss:$8 sps:$4 sm:$0xff]   ;;  %v1014_v26 = vld [vmem:[%s1446_s1 + $0xc4] ss:$8 sps:$4 sm:$0xff]   ;;  %v1016_v28 = vld [vmem:[%s1446_s1 + $0xc0] ss:$8 sps:$4 sm:$0xff]  }
   0xa   :  { %v1078_v27 = vld [vmem:[%s1448_s3 + $0x40] sm:$0xff]   ;;  %v1017_v30 = vld [vmem:[%s1446_s1 + $0xd4] ss:$8 sps:$4 sm:$0xff]   ;;  %v1080_v31 = vld [vmem:[%s1448_s3 + $0x48] sm:$0xff]  }
   0xb   :  { %446 = vmatpush1.bf16.msra.mxu0 %v986_v5  ;;  %v1079_v29 = vld [vmem:[%s1448_s3] sm:$0xff]   ;;  %919 = vmatprep.subr.bf16.mxu1 %v1078_v27  ;;  %v1081_v32 = vld [vmem:[%s1448_s3 + $0x8] sm:$0xff]   ;;  %v1082_v33 = vld [vmem:[%s1448_s3 + $0x50] sm:$0xff]  }
   0xc   :  { %447 = vmatprep.subr.bf16.mxu0 %v987_v6  ;;  %920 = vmatpush3.bf16.msra.mxu1 %v1079_v29  ;;  %v1019_v34 = vld [vmem:[%s1446_s1 + $0xd0] ss:$8 sps:$4 sm:$0xff]   ;;  %v1020_v35 = vld [vmem:[%s1446_s1 + $0xe4] ss:$8 sps:$4 sm:$0xff]   ;;  %v1022_v38 = vld [vmem:[%s1446_s1 + $0xe0] ss:$8 sps:$4 sm:$0xff]  }
   0xd   :  { %921 = vmatprep.subr.bf16.mxu1 %v1080_v31  ;;  %v1083_v36 = vld [vmem:[%s1448_s3 + $0x10] sm:$0xff]   ;;  %v1084_v37 = vld [vmem:[%s1448_s3 + $0x58] sm:$0xff]   ;;  %v1086_v41 = vld [vmem:[%s1448_s3 + $0x60] sm:$0xff]  }
   0xe   :  { %v1023_v39 = vld [vmem:[%s1446_s1 + $0xf4] ss:$8 sps:$4 sm:$0xff]   ;;  %v1025_v42 = vld [vmem:[%s1446_s1 + $0xf0] ss:$8 sps:$4 sm:$0xff]   ;;  %v1087_v43 = vld [vmem:[%s1448_s3 + $0x20] sm:$0xff]  }
   0xf   :  { %448 = vmatpush1.bf16.msra.mxu0 %v989_v7  ;;  %v1085_v40 = vld [vmem:[%s1448_s3 + $0x18] sm:$0xff]   ;;  %v1285_v44 = vld [vmem:[%s1447_s0 + $0x8] sm:$0xff] }
  0x10   :  { %449 = vmatprep.subr.bf16.mxu0 %v990_v8  ;;  %922 = vmatpush3.bf16.msra.mxu1 %v1081_v32  ;;  %v1031_v45 = vld [vmem:[%s1446_s1 + $0x104] ss:$8 sps:$4 sm:$0xff]   ;;  %v1029_v48 = vld [vmem:[%s1446_s1 + $0x100] ss:$8 sps:$4 sm:$0xff]   ;;  %v828_v49 = vcombine.high %v1285_v44, %v1285_v44  ;;  %v1034_v50 = vld [vmem:[%s1446_s1 + $0x114] ss:$8 sps:$4 sm:$0xff]  }
  0x11   :  { %923 = vmatprep.subr.bf16.mxu1 %v1082_v33  ;;  %v1088_v46 = vld [vmem:[%s1448_s3 + $0x68] sm:$0xff]   ;;  %v1032_v52 = vld [vmem:[%s1446_s1 + $0x110] ss:$8 sps:$4 sm:$0xff]   ;;  %v1040_v55 = vld [vmem:[%s1446_s1 + $0x134] ss:$8 sps:$4 sm:$0xff]  }
  0x12   :  { %v1089_v51 = vld [vmem:[%s1448_s3 + $0x28] sm:$0xff]   ;;  %v1038_v56 = vld [vmem:[%s1446_s1 + $0x130] ss:$8 sps:$4 sm:$0xff]   ;;  %v1046_v59 = vld [vmem:[%s1446_s1 + $0x154] ss:$8 sps:$4 sm:$0xff]  }
  0x13   :  { %450 = vmatpush1.bf16.msra.mxu0 %v992_v9  ;;  %v1037_v53 = vld [vmem:[%s1446_s1 + $0x124] ss:$8 sps:$4 sm:$0xff]   ;;  %v1035_v54 = vld [vmem:[%s1446_s1 + $0x120] ss:$8 sps:$4 sm:$0xff]   ;;  %v1044_v60 = vld [vmem:[%s1446_s1 + $0x150] ss:$8 sps:$4 sm:$0xff]  }
  0x14   :  { %451 = vmatprep.subr.bf16.mxu0 %v993_v10  ;;  %924 = vmatpush3.bf16.msra.mxu1 %v1083_v36  ;;  %v1043_v57 = vld [vmem:[%s1446_s1 + $0x144] ss:$8 sps:$4 sm:$0xff]   ;;  %v1041_v58 = vld [vmem:[%s1446_s1 + $0x140] ss:$8 sps:$4 sm:$0xff]   ;;  %v1052_v63 = vld [vmem:[%s1446_s1 + $0x174] ss:$8 sps:$4 sm:$0xff]  }
  0x15   :  { %925 = vmatprep.subr.bf16.mxu1 %v1084_v37  ;;  %v1049_v61 = vld [vmem:[%s1446_s1 + $0x164] ss:$8 sps:$4 sm:$0xff]   ;;  %v1047_v62 = vld [vmem:[%s1446_s1 + $0x160] ss:$8 sps:$4 sm:$0xff]   ;;  %v1050_v0 = vld [vmem:[%s1446_s1 + $0x170] ss:$8 sps:$4 sm:$0xff]  }
  0x16   :  { %v1055_v1 = vld [vmem:[%s1446_s1 + $0x184] ss:$8 sps:$4 sm:$0xff]   ;;  %v1053_v2 = vld [vmem:[%s1446_s1 + $0x180] ss:$8 sps:$4 sm:$0xff]   ;;  %v1058_v3 = vld [vmem:[%s1446_s1 + $0x194] ss:$8 sps:$4 sm:$0xff]  }
  0x17   :  { %452 = vmatpush1.bf16.msra.mxu0 %v995_v11  ;;  %v1056_v4 = vld [vmem:[%s1446_s1 + $0x190] ss:$8 sps:$4 sm:$0xff]   ;;  %v1061_v5 = vld [vmem:[%s1446_s1 + $0x1a4] ss:$8 sps:$4 sm:$0xff]   ;;  %v1059_v6 = vld [vmem:[%s1446_s1 + $0x1a0] ss:$8 sps:$4 sm:$0xff]  }
  0x18   :  { %453 = vmatprep.subr.bf16.mxu0 %v996_v12  ;;  %926 = vmatpush3.bf16.msra.mxu1 %v1085_v40  ;;  %v1064_v7 = vld [vmem:[%s1446_s1 + $0x1b4] ss:$8 sps:$4 sm:$0xff]   ;;  %v1062_v8 = vld [vmem:[%s1446_s1 + $0x1b0] ss:$8 sps:$4 sm:$0xff]   ;;  %v1067_v9 = vld [vmem:[%s1446_s1 + $0x1c4] ss:$8 sps:$4 sm:$0xff]  }
  0x19   :  { %927 = vmatprep.subr.bf16.mxu1 %v1086_v41  ;;  %v1065_v10 = vld [vmem:[%s1446_s1 + $0x1c0] ss:$8 sps:$4 sm:$0xff]   ;;  %v1070_v11 = vld [vmem:[%s1446_s1 + $0x1d4] ss:$8 sps:$4 sm:$0xff]   ;;  %v1068_v12 = vld [vmem:[%s1446_s1 + $0x1d0] ss:$8 sps:$4 sm:$0xff]  }
  0x1a   :  { %v1073_v13 = vld [vmem:[%s1446_s1 + $0x1e4] ss:$8 sps:$4 sm:$0xff]   ;;  %v1071_v14 = vld [vmem:[%s1446_s1 + $0x1e0] ss:$8 sps:$4 sm:$0xff]  }
  0x1b   :  { %454 = vmatpush1.bf16.msra.mxu0 %v998_v15  ;;  %v1076_v15 = vld [vmem:[%s1446_s1 + $0x1f4] ss:$8 sps:$4 sm:$0xff]   ;;  %v1095_v41 = vld [vmem:[%s1449_s5 + $0x8] sm:$0xff]  }
  0x1c   :  { %455 = vmatprep.subr.bf16.mxu0 %v999_v16  ;;  %928 = vmatpush3.bf16.msra.mxu1 %v1087_v43  ;;  %v1074_v16 = vld [vmem:[%s1446_s1 + $0x1f0] ss:$8 sps:$4 sm:$0xff]  }
  0x1d   :  { %929 = vmatprep.subr.bf16.mxu1 %v1088_v46  ;;  %v1097_v43 = vld [vmem:[%s1449_s5 + $0x18] sm:$0xff]   ;;  %v1100_v46 = vld [vmem:[%s1449_s5 + $0x30] sm:$0xff]  }
  0x1f   :  { %456 = vmatpush1.bf16.msra.mxu0 %v1001_v17  ;;  %v827_v17 = vcombine.low %v1285_v44, %v1285_v44  ;;  %v1098_v44 = vld [vmem:[%s1449_s5 + $0x20] sm:$0xff]  }
  0x20   :  { %457 = vmatprep.subr.bf16.mxu0 %v1002_v18  ;;  %930 = vmatpush3.bf16.msra.mxu1 %v1089_v51  ;;  %v1090_v18 = vld [vmem:[%s1448_s3 + $0x70] sm:$0xff]  }
  0x21   :  { %931 = vmatprep.subr.bf16.mxu1 %v1090_v18 }
  0x23   :  { %458 = vmatpush1.bf16.msra.mxu0 %v1004_v19  ;;  %v1091_v19 = vld [vmem:[%s1448_s3 + $0x30] sm:$0xff]  }
  0x24   :  { %459 = vmatprep.subr.bf16.mxu0 %v1005_v20  ;;  %932 = vmatpush3.bf16.msra.mxu1 %v1091_v19  ;;  %v1092_v20 = vld [vmem:[%s1448_s3 + $0x78] sm:$0xff]  }
  0x25   :  { %933 = vmatprep.subr.bf16.mxu1 %v1092_v20 }
  0x27   :  { %460 = vmatpush1.bf16.msra.mxu0 %v1007_v21  ;;  %v1093_v21 = vld [vmem:[%s1448_s3 + $0x38] sm:$0xff]  }
  0x28   :  { %461 = vmatprep.subr.bf16.mxu0 %v1008_v22  ;;  %934 = vmatpush3.bf16.msra.mxu1 %v1093_v21  ;;  %v1102_v22 = vmov 0.0  }
  0x29   :  { %950 = vmatprep.subr.bf16.mxu1 %v1102_v22 }
  0x2b   :  { %462 = vmatpush1.bf16.msra.mxu0 %v1010_v23  ;;  %v97_v23 = vlaneseq }
  0x2c   :  { %463 = vmatprep.subr.bf16.mxu0 %v1011_v24 }
  0x2d   :  { %v98_v24 = vshrl.u32 %v97_v23, 7 }
  0x2f   :  { %464 = vmatpush1.bf16.msra.mxu0 %v1013_v25  ;;  %v99_v25 = vsub.s32 0, %v98_v24  ;;  %v103_v27 = vsub.s32 1, %v98_v24 }
  0x30   :  { %465 = vmatprep.subr.bf16.mxu0 %v1014_v26  ;;  %v95_v26 = vld [vmem:[%s1450_s2] sm:$0x3] }
  0x31   :  { %v104_v29 = vrot.slane %v95_v26, %v103_v27 }
  0x33   :  { %466 = vmatpush1.bf16.msra.mxu0 %v1016_v28  ;;  %v100_v28 = vrot.slane %v95_v26, %v99_v25 }
  0x34   :  { %467 = vmatprep.subr.bf16.mxu0 %v1017_v30 }
  0x37   :  { %468 = vmatpush1.bf16.msra.mxu0 %v1019_v34 }
  0x38   :  { %469 = vmatprep.subr.bf16.mxu0 %v1020_v35 }
  0x3b   :  { %470 = vmatpush1.bf16.msra.mxu0 %v1022_v38 }
  0x3c   :  { %471 = vmatprep.subr.bf16.mxu0 %v1023_v39  ;;  %v1094_v39 = vld [vmem:[%s1449_s5] sm:$0xff]  }
  0x3f   :  { %472 = vmatpush1.bf16.msra.mxu0 %v1025_v42  ;;  %v1096_v42 = vld [vmem:[%s1449_s5 + $0x10] sm:$0xff]  }
  0x40   :  { %482 = vmatprep.subr.bf16.mxu0 %v1031_v45  ;;  %v1099_v45 = vld [vmem:[%s1449_s5 + $0x28] sm:$0xff]  }
  0x42   :  { %474 = vmatmul.mubr.bf16.vlgmr.msra.gmra.mrb[0].mxu0 %v825_v47  ;;  %v1101_v47 = vld [vmem:[%s1449_s5 + $0x38] sm:$0xff]  }
  0x43   :  { %483 = vmatpush1.bf16.msra.mxu0 %v1029_v48  ;;  %514 = vmatprep.mubr.bf16.mxu0 %v828_v49  ;;  %v893_v49 = vld [vmem:[%s1451_s4] ss:$0 sm:$0xff] }
  0x44   :  { %484 = vmatprep.subr.bf16.mxu0 %v1034_v50 }
  0x47   :  { %485 = vmatpush1.bf16.msra.mxu0 %v1032_v52 }
  0x48   :  { %486 = vmatprep.subr.bf16.mxu0 %v1037_v53 }
  0x4b   :  { %487 = vmatpush1.bf16.msra.mxu0 %v1035_v54 }
  0x4c   :  { %488 = vmatprep.subr.bf16.mxu0 %v1040_v55 }
  0x4f   :  { %489 = vmatpush1.bf16.msra.mxu0 %v1038_v56 }
  0x50   :  { %490 = vmatprep.subr.bf16.mxu0 %v1043_v57  ;;  %v910_v57 = vld [vmem:[%s1453_s6] ss:$0 sm:$0xff] }
  0x53   :  { %491 = vmatpush1.bf16.msra.mxu0 %v1041_v58 }
  0x54   :  { %492 = vmatprep.subr.bf16.mxu0 %v1046_v59 }
  0x57   :  { %493 = vmatpush1.bf16.msra.mxu0 %v1044_v60 }
  0x58   :  { %494 = vmatprep.subr.bf16.mxu0 %v1049_v61 }
  0x5b   :  { %495 = vmatpush1.bf16.msra.mxu0 %v1047_v62 }
  0x5c   :  { %496 = vmatprep.subr.bf16.mxu0 %v1052_v63 }
  0x5f   :  { %497 = vmatpush1.bf16.msra.mxu0 %v1050_v0 }
  0x60   :  { %498 = vmatprep.subr.bf16.mxu0 %v1055_v1 }
  0x63   :  { %499 = vmatpush1.bf16.msra.mxu0 %v1053_v2 }
  0x64   :  { %500 = vmatprep.subr.bf16.mxu0 %v1058_v3 }
  0x67   :  { %501 = vmatpush1.bf16.msra.mxu0 %v1056_v4 }
  0x68   :  { %502 = vmatprep.subr.bf16.mxu0 %v1061_v5 }
  0x6b   :  { %503 = vmatpush1.bf16.msra.mxu0 %v1059_v6 }
  0x6c   :  { %504 = vmatprep.subr.bf16.mxu0 %v1064_v7 }
  0x6f   :  { %505 = vmatpush1.bf16.msra.mxu0 %v1062_v8 }
  0x70   :  { %506 = vmatprep.subr.bf16.mxu0 %v1067_v9 }
  0x73   :  { %507 = vmatpush1.bf16.msra.mxu0 %v1065_v10 }
  0x74   :  { %508 = vmatprep.subr.bf16.mxu0 %v1070_v11 }
  0x77   :  { %509 = vmatpush1.bf16.msra.mxu0 %v1068_v12 }
  0x78   :  { %510 = vmatprep.subr.bf16.mxu0 %v1073_v13 }
  0x7b   :  { %511 = vmatpush1.bf16.msra.mxu0 %v1071_v14 }
  0x7c   :  { %512 = vmatprep.subr.bf16.mxu0 %v1076_v15 }
  0x7f   :  { %513 = vmatpush1.bf16.msra.mxu0 %v1074_v16 }
  0x82   :  { %515 = vmatmul.mubr.bf16.vlgmr.msra.gmra.mrb[0].mxu0 %v827_v17 }
 0x155   :  { %v516_v30 = vpop.f32.mrb[0].mxu0 }
 0x156   :  { %v970_v31 = vadd.f32 %v516_v30, %v100_v28  ;;  %v518_v32 = vpop.f32.mrb[1].mxu0 }
 0x157   :  { %v971_v33 = vadd.f32 %v518_v32, %v104_v29  ;;  %v520_v34 = vpop.f32.mrb[2].mxu0 }
 0x158   :  { %v523_v35 = vmax.f32 %v970_v31, 0.0  ;;  %v521_v36 = vpop.f32.mrb[3].mxu0 }
 0x159   :  { %v524_v37 = vmax.f32 %v971_v33, 0.0 }
 0x15a   :  { %v525_v40 = vpack.c.bf16 %v523_v35, %v523_v35 }
 0x15b   :  { %v526_v38 = vpack.c.bf16 %v524_v37, %v524_v37 }
 0x15d   :  { %694 = vmatprep.mubr.bf16.mxu1 %v526_v38 }
 0x15e   :  { %695 = vmatmul.mubr.bf16.vlgmr.msra.gmra.mrb[0].mxu1 %v525_v40 }
 0x15f   :  { %951 = vmatpush3.bf16.msra.mxu1 %v1094_v39  ;;  %966 = vmatprep.mubr.msk.bf16.mxu1 %vm1103_vm0, %v1102_v22 }
 0x160   :  { %952 = vmatprep.subr.bf16.mxu1 %v1102_v22 }
 0x163   :  { %953 = vmatpush3.bf16.msra.mxu1 %v1095_v41 }
 0x164   :  { %954 = vmatprep.subr.bf16.mxu1 %v1102_v22 }
 0x167   :  { %955 = vmatpush3.bf16.msra.mxu1 %v1096_v42 }
 0x168   :  { %956 = vmatprep.subr.bf16.mxu1 %v1102_v22 }
 0x16b   :  { %957 = vmatpush3.bf16.msra.mxu1 %v1097_v43 }
 0x16c   :  { %958 = vmatprep.subr.bf16.mxu1 %v1102_v22 }
 0x16f   :  { %959 = vmatpush3.bf16.msra.mxu1 %v1098_v44 }
 0x170   :  { %960 = vmatprep.subr.bf16.mxu1 %v1102_v22 }
 0x173   :  { %961 = vmatpush3.bf16.msra.mxu1 %v1099_v45 }
 0x174   :  { %962 = vmatprep.subr.bf16.mxu1 %v1102_v22 }
 0x177   :  { %963 = vmatpush3.bf16.msra.mxu1 %v1100_v46 }
 0x178   :  { %964 = vmatprep.subr.bf16.mxu1 %v1102_v22 }
 0x17b   :  { %965 = vmatpush3.bf16.msra.mxu1 %v1101_v47 }
 0x231   :  { %v935_v48 = vpop.f32.mrb[0].mxu1 }
 0x232   :  { %v936_v50 = vpop.f32.mrb[1].mxu1 }
 0x233   :  { %v937_v51 = vadd.f32 %v936_v50, %v935_v48  ;;  %v938_v52 = vpop.f32.mrb[2].mxu1 }
 0x234   :  { %v939_v53 = vpop.f32.mrb[3].mxu1 }
 0x235   :  { %v697_v54 = vadd.f32 %v937_v51, %v893_v49 }
 0x237   :  { %v702_v55 = vmax.f32 %v697_v54, 0.0 }
 0x239   :  { %703 = vst [vmem:[%s1452_s7] sm:$0xff] %v702_v55  ;;  %v704_v56 = vpack.c.bf16 %v702_v55, %v702_v55 }
 0x23b   :  { %967 = vmatmul.mubr.bf16.vlgmr.msra.gmra.mrb[4].mxu1 %v704_v56 }
 0x30e   :  { %v810_v58 = vpop.f32.mrb[4].mxu1 }
 0x30f   :  { %v811_v59 = vadd.f32 %v910_v57, %v810_v58  ;;  %v968_v60 = vpop.f32.mrb[5].mxu1 }
 0x310   :  { %v813_v61 = vpop.f32.mrb[6].mxu1 }
 0x311   :  { %816 = vst [vmem:[%s1454_s8] sm:$0xff] %v811_v59  ;;  %v969_v62 = vpop.f32.mrb[7].mxu1 }

// kernel: convnet_forward.6
= control target key start
LH: loop header
LB: loop body
LE: loop exit
PB: predicated region body
PF: predicated region fallthrough
CT: control target
= control target key end

     0   :  { %s1704_s21 = smov 0   ;;  %s2119_s0 = inlined_call_operand.vmem [shape: bf16[16,576], index: 0, kind: input, shape index: {}]   ;;  %s2120_s1 = inlined_call_operand.vmem [shape: bf16[16,576], index: 1, kind: input, shape index: {}]   ;;  %s2121_s2 = inlined_call_operand.vmem [shape: bf16[16,576], index: 2, kind: input, shape index: {}]   ;;  %s2122_s3 = inlined_call_operand.vmem [shape: bf16[16,576], index: 3, kind: input, shape index: {}]   ;;  %s2123_s4 = inlined_call_operand.vmem [shape: bf16[576,128], index: 4, kind: input, shape index: {}]   ;;  %s2124_s5 = inlined_call_operand.vmem [shape: f32[1,128], index: 5, kind: input, shape index: {}]   ;;  %s2125_s6 = inlined_call_operand.vmem [shape: bf16[16,128], index: 6, kind: output, shape index: {}]  }
   0x1 LB: > { %s1275_s22 = sadd.s32 4294967295, %s1665_s21   ;;  %p1279_p0 = scmp.ge.s32.totalorder %s1665_s21, 1  ;;  %s1665_s21 = sphi %s1704_s21, %s16_s21  }
   0x2   : > { %p242_p1 = scmp.lt.s32.totalorder %s1665_s21, 3 }
   0x4   : > { %p243_p2 = pnand %p1279_p0, %p242_p1 }
   0x5   : > { %v1715_v0 = vld [vmem:[%s2123_s4 + $0x40] sm:$0xff] (!%p243_p2)   ;;  %v1738_v4 = vld [vmem:[%s2123_s4 + $0x48] sm:$0xff] (!%p243_p2)   ;;  %v1762_v8 = vld [vmem:[%s2123_s4 + $0x50] sm:$0xff] (!%p243_p2)   ;;  %p286_p3 = scmp.lt.s32.totalorder (!%p243_p2), %s1275_s22, 1  ;;  %v1667_v36 = vmov (!%p243_p2), 0.0   ;;  %vm1668_vm0 = vmmov (!%p243_p2), 0  }
   0x6   : > { %246 = sbr.rel (%p243_p2) target bundleno = 397 (0x18d), region = 44  ;;  %v1720_v1 = vld [vmem:[%s2123_s4 + $0xc0] sm:$0xff] (!%p243_p2)   ;;  %1348 = vmatprep.subr.bf16.mxu0 (!%p243_p2), %v1715_v0  ;;  %v1744_v5 = vld [vmem:[%s2123_s4 + $0xc8] sm:$0xff] (!%p243_p2)   ;;  %v1768_v9 = vld [vmem:[%s2123_s4 + $0xd0] sm:$0xff] (!%p243_p2)   ;;  %vm619_vm1 = vcmask (!%p243_p2), 523264  }
   0x7   : > { %v1726_v2 = vld [vmem:[%s2123_s4] sm:$0xff] (!%p243_p2)   ;;  %1370 = vmatprep.subr.bf16.mxu1 (!%p243_p2), %v1720_v1  ;;  %v1750_v6 = vld [vmem:[%s2123_s4 + $0x8] sm:$0xff] (!%p243_p2)   ;;  %v1774_v10 = vld [vmem:[%s2123_s4 + $0x10] sm:$0xff] (!%p243_p2)  }
   0x8   : > { %v1732_v3 = vld [vmem:[%s2123_s4 + $0x80] sm:$0xff] (!%p243_p2)   ;;  %1349 = vmatpush3.bf16.msra.mxu0 (!%p243_p2), %v1726_v2  ;;  %v1756_v7 = vld [vmem:[%s2123_s4 + $0x88] sm:$0xff] (!%p243_p2)   ;;  %v1780_v11 = vld [vmem:[%s2123_s4 + $0x90] sm:$0xff] (!%p243_p2)  }
   0x9   : > { %1371 = vmatpush3.bf16.msra.mxu1 (!%p243_p2), %v1732_v3  ;;  %1350 = vmatprep.subr.bf16.mxu0 (!%p243_p2), %v1738_v4  ;;  %v1786_v12 = vld [vmem:[%s2123_s4 + $0x58] sm:$0xff] (!%p243_p2)   ;;  %v1810_v16 = vld [vmem:[%s2123_s4 + $0x60] sm:$0xff] (!%p243_p2)   ;;  %v1836_v20 = vld [vmem:[%s2123_s4 + $0x68] sm:$0xff] (!%p243_p2)  }
   0xa   : > { %1372 = vmatprep.subr.bf16.mxu1 (!%p243_p2), %v1744_v5  ;;  %v1792_v13 = vld [vmem:[%s2123_s4 + $0xd8] sm:$0xff] (!%p243_p2)   ;;  %v1816_v17 = vld [vmem:[%s2123_s4 + $0xe0] sm:$0xff] (!%p243_p2)   ;;  %v1842_v21 = vld [vmem:[%s2123_s4 + $0xe8] sm:$0xff] (!%p243_p2)  }
   0xb   : > { %v1798_v14 = vld [vmem:[%s2123_s4 + $0x18] sm:$0xff] (!%p243_p2)   ;;  %v1824_v18 = vld [vmem:[%s2123_s4 + $0x20] sm:$0xff] (!%p243_p2)   ;;  %v1852_v22 = vld [vmem:[%s2123_s4 + $0x28] sm:$0xff] (!%p243_p2)  }
   0xc   : > { %1351 = vmatpush3.bf16.msra.mxu0 (!%p243_p2), %v1750_v6  ;;  %v1804_v15 = vld [vmem:[%s2123_s4 + $0x98] sm:$0xff] (!%p243_p2)   ;;  %v1830_v19 = vld [vmem:[%s2123_s4 + $0xa0] sm:$0xff] (!%p243_p2)   ;;  %v1858_v23 = vld [vmem:[%s2123_s4 + $0xa8] sm:$0xff] (!%p243_p2)  }
   0xd   : > { %1373 = vmatpush3.bf16.msra.mxu1 %v1756_v7  ;;  %1352 = vmatprep.subr.bf16.mxu0 %v1762_v8  ;;  %s2127_s22 = smov (!%p286_p3, %s1275_s22), 1  ;;  %v1864_v24 = vld [vmem:[%s2123_s4 + $0x70] sm:$0xff]   ;;  %v1891_v28 = vld [vmem:[%s2123_s4 + $0x78] sm:$0xff]   ;;  %v1926_v39 = vld [vmem:[%s2123_s4 + $0x100] sm:$0xff]  }
   0xe   : > { %1374 = vmatprep.subr.bf16.mxu1 %v1768_v9  ;;  %v1870_v25 = vld [vmem:[%s2123_s4 + $0xf0] sm:$0xff]   ;;  %s1873_s7 = smul.u32 20, %s2127_s22  ;;  %v1897_v29 = vld [vmem:[%s2123_s4 + $0xf8] sm:$0xff]   ;;  %v1938_v40 = vld [vmem:[%s2123_s4 + $0x108] sm:$0xff]   ;;  %s1284_s20 = sshll.u32 %s2127_s22, 2 }
   0xf   : > { %v1879_v26 = vld [vmem:[%s2123_s4 + $0x30] sm:$0xff]   ;;  %v1909_v30 = vld [vmem:[%s2123_s4 + $0x38] sm:$0xff]   ;;  %s309_s25 = scalar_lea.vmem %s2125_s6, %s1284_s20 }
  0x10   : > { %1353 = vmatpush3.bf16.msra.mxu0 %v1774_v10  ;;  %v1885_v27 = vld [vmem:[%s2123_s4 + $0xb0] sm:$0xff]   ;;  %s1903_s18 = scalar_lea.vmem %s2119_s0, %s1873_s7  ;;  %v1915_v31 = vld [vmem:[%s2123_s4 + $0xb8] sm:$0xff]   ;;  %s1932_s29 = scalar_lea.vmem %s2120_s1, %s1873_s7 }
  0x11   : > { %1375 = vmatpush3.bf16.msra.mxu1 %v1780_v11  ;;  %1354 = vmatprep.subr.bf16.mxu0 %v1786_v12  ;;  %v383_v32 = vld [vmem:[%s1903_s18] sm:$0xff]  ;;  %v384_v35 = vld [vmem:[%s1903_s18 + $0x8] sm:$0xff]  ;;  %s1947_s11 = scalar_lea.vmem %s2121_s2, %s1873_s7  ;;  %s1956_s14 = scalar_lea.vmem %s2122_s3, %s1873_s7  ;;  %v1962_v43 = vld [vmem:[%s2123_s4 + $0x110] sm:$0xff]  }
  0x12   : > { %1376 = vmatprep.subr.bf16.mxu1 %v1792_v13  ;;  %v1285_v33 = vcombine.low %v383_v32, %v383_v32  ;;  %v1286_v34 = vcombine.high %v383_v32, %v383_v32  ;;  %v1287_v37 = vcombine.low %v384_v35, %v384_v35  ;;  %v1288_v38 = vcombine.high %v384_v35, %v384_v35  ;;  %v743_v41 = vld [vmem:[%s1932_s29] sm:$0xff]  ;;  %v1971_v44 = vld [vmem:[%s2123_s4 + $0x118] sm:$0xff]   ;;  %v744_v45 = vld [vmem:[%s1932_s29 + $0x8] sm:$0xff] }
  0x13   : > { %v1328_v42 = vcombine.high %v743_v41, %v743_v41  ;;  %v1637_v46 = vld [vmem:[%s1903_s18 + $0x10] ss:$0 sps:$4 sm:$0xff]   ;;  %v1330_v47 = vcombine.high %v744_v45, %v744_v45  ;;  %v1327_v48 = vcombine.low %v743_v41, %v743_v41  ;;  %v1329_v49 = vcombine.low %v744_v45, %v744_v45  ;;  %v886_v50 = vld [vmem:[%s1947_s11] sm:$0xff]  ;;  %v887_v52 = vld [vmem:[%s1947_s11 + $0x8] sm:$0xff] }
  0x14   : > { %1355 = vmatpush3.bf16.msra.mxu0 %v1798_v14  ;;  %655 = vmatprep.mubr.bf16.mxu0 %v1286_v34  ;;  %v1646_v51 = vld [vmem:[%s1932_s29 + $0x10] ss:$0 sps:$4 sm:$0xff]   ;;  %v1334_v53 = vcombine.high %v886_v50, %v886_v50  ;;  %v1336_v54 = vcombine.high %v887_v52, %v887_v52  ;;  %v1333_v55 = vcombine.low %v886_v50, %v886_v50  ;;  %v1029_v57 = vld [vmem:[%s1956_s14] sm:$0xff]  ;;  %v1030_v59 = vld [vmem:[%s1956_s14 + $0x8] sm:$0xff] }
  0x15   : > { %1377 = vmatpush3.bf16.msra.mxu1 %v1804_v15  ;;  %1356 = vmatprep.subr.bf16.mxu0 %v1810_v16  ;;  %v1335_v56 = vcombine.low %v887_v52, %v887_v52  ;;  %v1340_v58 = vcombine.high %v1029_v57, %v1029_v57  ;;  %v1651_v60 = vld [vmem:[%s1947_s11 + $0x10] ss:$0 sps:$4 sm:$0xff]   ;;  %v1342_v61 = vcombine.high %v1030_v59, %v1030_v59 }
  0x16   : > { %1378 = vmatprep.subr.bf16.mxu1 %v1816_v17  ;;  %695 = vmatprep.mubr.bf16.mxu1 %v1288_v38  ;;  %v1339_v62 = vcombine.low %v1029_v57, %v1029_v57  ;;  %v1341_v63 = vcombine.low %v1030_v59, %v1030_v59 }
  0x18   : > { %1357 = vmatpush3.bf16.msra.mxu0 %v1824_v18 }
  0x19   : > { %1379 = vmatpush3.bf16.msra.mxu1 %v1830_v19  ;;  %1358 = vmatprep.subr.bf16.mxu0 %v1836_v20 }
  0x1a   : > { %1380 = vmatprep.subr.bf16.mxu1 %v1842_v21 }
  0x1c   : > { %1359 = vmatpush3.bf16.msra.mxu0 %v1852_v22 }
  0x1d   : > { %1381 = vmatpush3.bf16.msra.mxu1 %v1858_v23  ;;  %1360 = vmatprep.subr.bf16.mxu0 %v1864_v24 }
  0x1e   : > { %1382 = vmatprep.subr.bf16.mxu1 %v1870_v25 }
  0x20   : > { %1361 = vmatpush3.bf16.msra.mxu0 %v1879_v26 }
  0x21   : > { %1383 = vmatpush3.bf16.msra.mxu1 %v1885_v27  ;;  %1362 = vmatprep.subr.bf16.mxu0 %v1891_v28 }
  0x22   : > { %1384 = vmatprep.subr.bf16.mxu1 %v1897_v29 }
  0x24   : > { %1363 = vmatpush3.bf16.msra.mxu0 %v1909_v30 }
  0x25   : > { %1385 = vmatpush3.bf16.msra.mxu1 %v1915_v31  ;;  %1544 = vmatprep.subr.bf16.mxu0 %v1667_v36 }
  0x26   : > { %1397 = vmatprep.subr.bf16.mxu1 %v1715_v0 }
  0x27   : > { %656 = vmatmul.mubr.bf16.vlgmr.msra.gmra.mrb[0].mxu0 %v1285_v33 }
  0x28   : > { %696 = vmatmul.mubr.bf16.vlgmr.msra.gmra.mrb[0].mxu1 %v1287_v37  ;;  %1545 = vmatpush3.bf16.msra.mxu0 %v1926_v39 }
  0x29   : > { %1398 = vmatpush3.bf16.msra.mxu1 %v1726_v2  ;;  %1546 = vmatprep.subr.bf16.mxu0 %v1667_v36 }
  0x2a   : > { %1399 = vmatprep.subr.bf16.mxu1 %v1738_v4  ;;  %1552 = vmatprep.mubr.msk.bf16.mxu0 %vm1668_vm0, %v1667_v36 }
  0x2b   : > { %798 = vmatprep.mubr.bf16.mxu1 %v1328_v42 }
  0x2c   : > { %1547 = vmatpush3.bf16.msra.mxu0 %v1938_v40 }
  0x2d   : > { %1400 = vmatpush3.bf16.msra.mxu1 %v1750_v6  ;;  %1548 = vmatprep.subr.bf16.mxu0 %v1667_v36 }
  0x2e   : > { %1401 = vmatprep.subr.bf16.mxu1 %v1762_v8 }
  0x30   : > { %1549 = vmatpush3.bf16.msra.mxu0 %v1962_v43 }
  0x31   : > { %1402 = vmatpush3.bf16.msra.mxu1 %v1774_v10  ;;  %1550 = vmatprep.subr.bf16.mxu0 %v1667_v36 }
  0x32   : > { %1403 = vmatprep.subr.bf16.mxu1 %v1786_v12 }
  0x34   : > { %1551 = vmatpush3.bf16.msra.mxu0 %v1971_v44 }
  0x35   : > { %1404 = vmatpush3.bf16.msra.mxu1 %v1798_v14  ;;  %1419 = vmatprep.subr.bf16.mxu0 %v1720_v1 }
  0x36   : > { %1405 = vmatprep.subr.bf16.mxu1 %v1810_v16 }
  0x37   : > { %1553 = vmatmul.mubr.msk.bf16.vlgmr.msra.gmra.mrb[4].mxu0 %vm619_vm1, %v1637_v46 }
  0x38   : > { %1420 = vmatpush3.bf16.msra.mxu0 %v1732_v3  ;;  %838 = vmatprep.mubr.bf16.mxu0 %v1330_v47 }
  0x39   : > { %1406 = vmatpush3.bf16.msra.mxu1 %v1824_v18  ;;  %1421 = vmatprep.subr.bf16.mxu0 %v1744_v5 }
  0x3a   : > { %1407 = vmatprep.subr.bf16.mxu1 %v1836_v20 }
  0x3c   : > { %1422 = vmatpush3.bf16.msra.mxu0 %v1756_v7 }
  0x3d   : > { %1408 = vmatpush3.bf16.msra.mxu1 %v1852_v22  ;;  %1423 = vmatprep.subr.bf16.mxu0 %v1768_v9 }
  0x3e   : > { %1409 = vmatprep.subr.bf16.mxu1 %v1864_v24 }
  0x40   : > { %1424 = vmatpush3.bf16.msra.mxu0 %v1780_v11 }
  0x41   : > { %1410 = vmatpush3.bf16.msra.mxu1 %v1879_v26  ;;  %1425 = vmatprep.subr.bf16.mxu0 %v1792_v13 }
  0x42   : > { %1411 = vmatprep.subr.bf16.mxu1 %v1891_v28 }
  0x44   : > { %1426 = vmatpush3.bf16.msra.mxu0 %v1804_v15 }
  0x45   : > { %1412 = vmatpush3.bf16.msra.mxu1 %v1909_v30  ;;  %1427 = vmatprep.subr.bf16.mxu0 %v1816_v17 }
  0x46   : > { %1556 = vmatprep.subr.bf16.mxu1 %v1667_v36 }
  0x48   : > { %799 = vmatmul.mubr.bf16.vlgmr.msra.gmra.mrb[4].mxu1 %v1327_v48  ;;  %1428 = vmatpush3.bf16.msra.mxu0 %v1830_v19 }
  0x49   : > { %1557 = vmatpush3.bf16.msra.mxu1 %v1926_v39  ;;  %1429 = vmatprep.subr.bf16.mxu0 %v1842_v21 }
  0x4a   : > { %1558 = vmatprep.subr.bf16.mxu1 %v1667_v36  ;;  %1564 = vmatprep.mubr.msk.bf16.mxu1 %vm1668_vm0, %v1667_v36 }
  0x4c   : > { %1430 = vmatpush3.bf16.msra.mxu0 %v1858_v23 }
  0x4d   : > { %1559 = vmatpush3.bf16.msra.mxu1 %v1938_v40  ;;  %1431 = vmatprep.subr.bf16.mxu0 %v1870_v25 }
  0x4e   : > { %1560 = vmatprep.subr.bf16.mxu1 %v1667_v36 }
  0x50   : > { %1432 = vmatpush3.bf16.msra.mxu0 %v1885_v27 }
  0x51   : > { %1561 = vmatpush3.bf16.msra.mxu1 %v1962_v43  ;;  %1433 = vmatprep.subr.bf16.mxu0 %v1897_v29 }
  0x52   : > { %1562 = vmatprep.subr.bf16.mxu1 %v1667_v36 }
  0x54   : > { %1434 = vmatpush3.bf16.msra.mxu0 %v1915_v31 }
  0x55   : > { %1563 = vmatpush3.bf16.msra.mxu1 %v1971_v44  ;;  %1446 = vmatprep.subr.bf16.mxu0 %v1715_v0 }
  0x56   : > { %1468 = vmatprep.subr.bf16.mxu1 %v1720_v1 }
  0x57   : > { %839 = vmatmul.mubr.bf16.vlgmr.msra.gmra.mrb[8].mxu0 %v1329_v49 }
  0x58   : > { %1565 = vmatmul.mubr.msk.bf16.vlgmr.msra.gmra.mrb[8].mxu1 %vm619_vm1, %v1646_v51  ;;  %1447 = vmatpush3.bf16.msra.mxu0 %v1726_v2 }
  0x59   : > { %1469 = vmatpush3.bf16.msra.mxu1 %v1732_v3  ;;  %1448 = vmatprep.subr.bf16.mxu0 %v1738_v4 }
  0x5a   : > { %1470 = vmatprep.subr.bf16.mxu1 %v1744_v5  ;;  %941 = vmatprep.mubr.bf16.mxu0 %v1334_v53 }
  0x5b   : > { %981 = vmatprep.mubr.bf16.mxu1 %v1336_v54 }
  0x5c   : > { %1449 = vmatpush3.bf16.msra.mxu0 %v1750_v6 }
  0x5d   : > { %1471 = vmatpush3.bf16.msra.mxu1 %v1756_v7  ;;  %1450 = vmatprep.subr.bf16.mxu0 %v1762_v8 }
  0x5e   : > { %1472 = vmatprep.subr.bf16.mxu1 %v1768_v9 }
  0x60   : > { %1451 = vmatpush3.bf16.msra.mxu0 %v1774_v10 }
  0x61   : > { %1473 = vmatpush3.bf16.msra.mxu1 %v1780_v11  ;;  %1452 = vmatprep.subr.bf16.mxu0 %v1786_v12 }
  0x62   : > { %1474 = vmatprep.subr.bf16.mxu1 %v1792_v13 }
  0x64   : > { %1453 = vmatpush3.bf16.msra.mxu0 %v1798_v14 }
  0x65   : > { %1475 = vmatpush3.bf16.msra.mxu1 %v1804_v15  ;;  %1454 = vmatprep.subr.bf16.mxu0 %v1810_v16 }
  0x66   : > { %1476 = vmatprep.subr.bf16.mxu1 %v1816_v17 }
  0x68   : > { %1455 = vmatpush3.bf16.msra.mxu0 %v1824_v18 }
  0x69   : > { %1477 = vmatpush3.bf16.msra.mxu1 %v1830_v19  ;;  %1456 = vmatprep.subr.bf16.mxu0 %v1836_v20 }
  0x6a   : > { %1478 = vmatprep.subr.bf16.mxu1 %v1842_v21 }
  0x6c   : > { %1457 = vmatpush3.bf16.msra.mxu0 %v1852_v22 }
  0x6d   : > { %1479 = vmatpush3.bf16.msra.mxu1 %v1858_v23  ;;  %1458 = vmatprep.subr.bf16.mxu0 %v1864_v24 }
  0x6e   : > { %1480 = vmatprep.subr.bf16.mxu1 %v1870_v25 }
  0x70   : > { %1459 = vmatpush3.bf16.msra.mxu0 %v1879_v26 }
  0x71   : > { %1481 = vmatpush3.bf16.msra.mxu1 %v1885_v27  ;;  %1460 = vmatprep.subr.bf16.mxu0 %v1891_v28 }
  0x72   : > { %1482 = vmatprep.subr.bf16.mxu1 %v1897_v29 }
  0x74   : > { %1461 = vmatpush3.bf16.msra.mxu0 %v1909_v30 }
  0x75   : > { %1483 = vmatpush3.bf16.msra.mxu1 %v1915_v31  ;;  %1568 = vmatprep.subr.bf16.mxu0 %v1667_v36 }
  0x76   : > { %1495 = vmatprep.subr.bf16.mxu1 %v1715_v0  ;;  %v1656_v0 = vld [vmem:[%s1956_s14 + $0x10] ss:$0 sps:$4 sm:$0xff]  }
  0x77   : > { %942 = vmatmul.mubr.bf16.vlgmr.msra.gmra.mrb[12].mxu0 %v1333_v55 }
  0x78   : > { %982 = vmatmul.mubr.bf16.vlgmr.msra.gmra.mrb[12].mxu1 %v1335_v56  ;;  %1569 = vmatpush3.bf16.msra.mxu0 %v1926_v39 }
  0x79   : > { %1496 = vmatpush3.bf16.msra.mxu1 %v1726_v2  ;;  %1570 = vmatprep.subr.bf16.mxu0 %v1667_v36 }
  0x7a   : > { %1497 = vmatprep.subr.bf16.mxu1 %v1738_v4  ;;  %1576 = vmatprep.mubr.msk.bf16.mxu0 %vm1668_vm0, %v1667_v36 }
  0x7b   : > { %1084 = vmatprep.mubr.bf16.mxu1 %v1340_v58 }
  0x7c   : > { %1571 = vmatpush3.bf16.msra.mxu0 %v1938_v40 }
  0x7d   : > { %1498 = vmatpush3.bf16.msra.mxu1 %v1750_v6  ;;  %1572 = vmatprep.subr.bf16.mxu0 %v1667_v36 }
  0x7e   : > { %1499 = vmatprep.subr.bf16.mxu1 %v1762_v8 }
  0x80   : > { %1573 = vmatpush3.bf16.msra.mxu0 %v1962_v43 }
  0x81   : > { %1500 = vmatpush3.bf16.msra.mxu1 %v1774_v10  ;;  %1574 = vmatprep.subr.bf16.mxu0 %v1667_v36 }
  0x82   : > { %1501 = vmatprep.subr.bf16.mxu1 %v1786_v12 }
  0x84   : > { %1575 = vmatpush3.bf16.msra.mxu0 %v1971_v44 }
  0x85   : > { %1502 = vmatpush3.bf16.msra.mxu1 %v1798_v14  ;;  %1517 = vmatprep.subr.bf16.mxu0 %v1720_v1 }
  0x86   : > { %1503 = vmatprep.subr.bf16.mxu1 %v1810_v16 }
  0x87   : > { %1577 = vmatmul.mubr.msk.bf16.vlgmr.msra.gmra.mrb[16].mxu0 %vm619_vm1, %v1651_v60 }
  0x88   : > { %1518 = vmatpush3.bf16.msra.mxu0 %v1732_v3  ;;  %1124 = vmatprep.mubr.bf16.mxu0 %v1342_v61 }
  0x89   : > { %1504 = vmatpush3.bf16.msra.mxu1 %v1824_v18  ;;  %1519 = vmatprep.subr.bf16.mxu0 %v1744_v5 }
  0x8a   : > { %1505 = vmatprep.subr.bf16.mxu1 %v1836_v20 }
  0x8c   : > { %1520 = vmatpush3.bf16.msra.mxu0 %v1756_v7 }
  0x8d   : > { %1506 = vmatpush3.bf16.msra.mxu1 %v1852_v22  ;;  %1521 = vmatprep.subr.bf16.mxu0 %v1768_v9 }
  0x8e   : > { %1507 = vmatprep.subr.bf16.mxu1 %v1864_v24 }
  0x90   : > { %1522 = vmatpush3.bf16.msra.mxu0 %v1780_v11 }
  0x91   : > { %1508 = vmatpush3.bf16.msra.mxu1 %v1879_v26  ;;  %1523 = vmatprep.subr.bf16.mxu0 %v1792_v13 }
  0x92   : > { %1509 = vmatprep.subr.bf16.mxu1 %v1891_v28 }
  0x94   : > { %1524 = vmatpush3.bf16.msra.mxu0 %v1804_v15 }
  0x95   : > { %1510 = vmatpush3.bf16.msra.mxu1 %v1909_v30  ;;  %1525 = vmatprep.subr.bf16.mxu0 %v1816_v17 }
  0x96   : > { %1580 = vmatprep.subr.bf16.mxu1 %v1667_v36 }
  0x98   : > { %1526 = vmatpush3.bf16.msra.mxu0 %v1830_v19  ;;  %1085 = vmatmul.mubr.bf16.vlgmr.msra.gmra.mrb[16].mxu1 %v1339_v62 }
  0x99   : > { %1581 = vmatpush3.bf16.msra.mxu1 %v1926_v39  ;;  %1527 = vmatprep.subr.bf16.mxu0 %v1842_v21 }
  0x9a   : > { %1582 = vmatprep.subr.bf16.mxu1 %v1667_v36  ;;  %1588 = vmatprep.mubr.msk.bf16.mxu1 %vm1668_vm0, %v1667_v36 }
  0x9c   : > { %1528 = vmatpush3.bf16.msra.mxu0 %v1858_v23 }
  0x9d   : > { %1583 = vmatpush3.bf16.msra.mxu1 %v1938_v40  ;;  %1529 = vmatprep.subr.bf16.mxu0 %v1870_v25 }
  0x9e   : > { %1584 = vmatprep.subr.bf16.mxu1 %v1667_v36 }
  0xa0   : > { %1530 = vmatpush3.bf16.msra.mxu0 %v1885_v27 }
  0xa1   : > { %1585 = vmatpush3.bf16.msra.mxu1 %v1962_v43  ;;  %1531 = vmatprep.subr.bf16.mxu0 %v1897_v29 }
  0xa2   : > { %1586 = vmatprep.subr.bf16.mxu1 %v1667_v36 }
  0xa4   : > { %1532 = vmatpush3.bf16.msra.mxu0 %v1915_v31 }
  0xa5   : > { %1587 = vmatpush3.bf16.msra.mxu1 %v1971_v44 }
  0xa7   : > { %1125 = vmatmul.mubr.bf16.vlgmr.msra.gmra.mrb[20].mxu0 %v1341_v63 }
  0xa8   : > { %1589 = vmatmul.mubr.msk.bf16.vlgmr.msra.gmra.mrb[20].mxu1 %vm619_vm1, %v1656_v0 }
  0xfa   : > { %v1364_v1 = vpop.f32.mrb[0].mxu0 }
  0xfb   : > { %v1386_v2 = vpop.f32.mrb[0].mxu1  ;;  %v1365_v3 = vpop.f32.mrb[1].mxu0 }
  0xfc   : > { %v1366_v4 = vadd.f32 %v1365_v3, %v1364_v1  ;;  %v1387_v5 = vpop.f32.mrb[1].mxu1  ;;  %v1367_v6 = vpop.f32.mrb[2].mxu0  ;;  %v1345_v3 = vld [vmem:[%s2124_s5] ss:$0 sm:$0xff] }
  0xfd   : > { %v1388_v7 = vadd.f32 %v1387_v5, %v1386_v2  ;;  %v1368_v8 = vpop.f32.mrb[3].mxu0  ;;  %v1389_v9 = vpop.f32.mrb[2].mxu1 }
  0xfe   : > { %v1390_v10 = vpop.f32.mrb[3].mxu1 }
  0xff   : > { %v698_v11 = vadd.f32 %v1388_v7, %v1366_v4 }
 0x10a   : > { %v737_v12 = vpop.f32.mrb[4].mxu0 }
 0x10b   : > { %v738_v13 = vadd.f32 %v737_v12, %v698_v11  ;;  %v1554_v14 = vpop.f32.mrb[5].mxu0 }
 0x10c   : > { %v740_v15 = vpop.f32.mrb[6].mxu0 }
 0x10d   : > { %v1555_v16 = vpop.f32.mrb[7].mxu0 }
 0x11b   : > { %v1413_v17 = vpop.f32.mrb[4].mxu1 }
 0x11c   : > { %v1414_v18 = vpop.f32.mrb[5].mxu1 }
 0x11d   : > { %v1415_v19 = vadd.f32 %v1414_v18, %v1413_v17  ;;  %v1416_v20 = vpop.f32.mrb[6].mxu1 }
 0x11e   : > { %v1417_v21 = vpop.f32.mrb[7].mxu1 }
 0x12a   : > { %v1435_v22 = vpop.f32.mrb[8].mxu0 }
 0x12b   : > { %v1436_v23 = vpop.f32.mrb[9].mxu0  ;;  %v880_v24 = vpop.f32.mrb[8].mxu1 }
 0x12c   : > { %v1437_v25 = vadd.f32 %v1436_v23, %v1435_v22  ;;  %v1438_v26 = vpop.f32.mrb[10].mxu0  ;;  %v1566_v27 = vpop.f32.mrb[9].mxu1 }
 0x12d   : > { %v1439_v28 = vpop.f32.mrb[11].mxu0  ;;  %v883_v29 = vpop.f32.mrb[10].mxu1 }
 0x12e   : > { %v841_v30 = vadd.f32 %v1437_v25, %v1415_v19  ;;  %v1567_v31 = vpop.f32.mrb[11].mxu1 }
 0x130   : > { %v881_v32 = vadd.f32 %v880_v24, %v841_v30 }
 0x132   : > { %v1172_v33 = vmax.f32 %v738_v13, %v881_v32 }
 0x14a   : > { %v1462_v34 = vpop.f32.mrb[12].mxu0 }
 0x14b   : > { %v1484_v35 = vpop.f32.mrb[12].mxu1  ;;  %v1463_v36 = vpop.f32.mrb[13].mxu0 }
 0x14c   : > { %v1464_v37 = vadd.f32 %v1463_v36, %v1462_v34  ;;  %v1485_v38 = vpop.f32.mrb[13].mxu1  ;;  %v1465_v39 = vpop.f32.mrb[14].mxu0 }
 0x14d   : > { %v1486_v40 = vadd.f32 %v1485_v38, %v1484_v35  ;;  %v1466_v41 = vpop.f32.mrb[15].mxu0  ;;  %v1487_v42 = vpop.f32.mrb[14].mxu1 }
 0x14e   : > { %v1488_v43 = vpop.f32.mrb[15].mxu1 }
 0x14f   : > { %v984_v44 = vadd.f32 %v1486_v40, %v1464_v37 }
 0x15a   : > { %v1023_v45 = vpop.f32.mrb[16].mxu0 }
 0x15b   : > { %v1024_v46 = vadd.f32 %v1023_v45, %v984_v44  ;;  %v1578_v47 = vpop.f32.mrb[17].mxu0 }
 0x15c   : > { %v1026_v48 = vpop.f32.mrb[18].mxu0 }
 0x15d   : > { %v1579_v49 = vpop.f32.mrb[19].mxu0 }
 0x16b   : > { %v1511_v50 = vpop.f32.mrb[16].mxu1 }
 0x16c   : > { %v1512_v51 = vpop.f32.mrb[17].mxu1 }
 0x16d   : > { %v1513_v52 = vadd.f32 %v1512_v51, %v1511_v50  ;;  %v1514_v53 = vpop.f32.mrb[18].mxu1 }
 0x16e   : > { %v1515_v54 = vpop.f32.mrb[19].mxu1 }
 0x17a   : > { %v1533_v55 = vpop.f32.mrb[20].mxu0 }
 0x17b   : > { %v1534_v56 = vpop.f32.mrb[21].mxu0  ;;  %v1166_v57 = vpop.f32.mrb[20].mxu1 }
 0x17c   : > { %v1535_v58 = vadd.f32 %v1534_v56, %v1533_v55  ;;  %v1536_v59 = vpop.f32.mrb[22].mxu0  ;;  %v1590_v60 = vpop.f32.mrb[21].mxu1 }
 0x17d   : > { %v1537_v61 = vpop.f32.mrb[23].mxu0  ;;  %v1169_v62 = vpop.f32.mrb[22].mxu1 }
 0x17e   : > { %v1127_v63 = vadd.f32 %v1535_v58, %v1513_v52  ;;  %v1591_v0 = vpop.f32.mrb[23].mxu1 }
 0x180   : > { %v1167_v1 = vadd.f32 %v1166_v57, %v1127_v63 }
 0x182   : > { %v1173_v2 = vmax.f32 %v1024_v46, %v1167_v1 }
 0x184   : > { %v1174_v4 = vmax.f32 %v1172_v33, %v1173_v2 }
 0x186   : > { %v1182_v5 = vadd.f32 %v1345_v3, %v1174_v4 }
 0x188   : > { %v1183_v6 = vmax.f32 %v1182_v5, 0.0 }
 0x18a   : > { %v1184_v7 = vpack.c.bf16 %v1183_v6, %v1183_v6 }
 0x18c   : > { %1185 = vst [vmem:[%s309_s25] sm:$0xf] %v1184_v7 }
 0x18d PF: > { %s16_s21 = sadd.s32 1, %s1665_s21  }
 0x18e   : > { %p13_p4 = scmp.ge.s32.totalorder %s16_s21, 4  }
 0x190   :  { %15 = sbr.rel (!%p13_p4) target bundleno = 1 (0x1), region = 83 }

</bundles_post_ra>
